<compile_context>
chip_gen: v7x
topology: tpu7x:2x2x1
jax: 0.10.0
libtpu: 0.0.40
codegen_flags: <defaults>
</compile_context>

<pallas_src>
import numpy as np
import jax
import jax.numpy as jnp
from jax import lax
from jax.experimental import pallas as pl
from jax.experimental.pallas import tpu as pltpu


def _crf_kernel(hidden_ref,    # (TB, T, H) bf16  batch-tile of hidden states
                w_ref,         # (H, L)     bf16  linear weight
                b_ref,         # (1, L)     f32   linear bias
                mask_ref,      # (T, TB)    i32   attention mask (time-major)
                labels_ref,    # (T, TB)    i32   gold labels (time-major)
                start_ref,     # (L, 1)     f32   CRF start transitions
                end_ref,       # (L, 1)     f32   CRF end transitions
                trans_ref,     # (L, L)     f32   CRF transitions
                loss_ref,      # (1, 1)     f32   out: per-tile -sum log-lik
                pred_ref,      # (T, TB)    i32   out: Viterbi decode, 0-padded
                emis_btl_ref,  # scratch (TB, T, L) f32  matmul-native emissions
                emis_ref,      # scratch (T, L, TB) f32  recursion-layout emissions
                hist_ref):     # scratch (T, L, TB) i32  Viterbi backpointers
    TB, T, H = hidden_ref.shape
    L = w_ref.shape[1]
    f32 = jnp.float32

    # ---------------- Linear emissions (Dropout is identity in eval) ----------
    # bf16 operands on the MXU, f32 accumulation.
    h2 = hidden_ref[...].reshape(TB * T, H)
    e2 = jnp.dot(h2, w_ref[...], preferred_element_type=f32) + b_ref[...]
    emis_btl_ref[...] = e2.reshape(TB, T, L)

    # ---------------- Relayout emissions to (T, L, TB) ------------------------
    # tags on sublanes, batch on lanes.  The per-step (TB,L)->(L,TB) transpose
    # is done with an exact identity matmul (standard A @ B.T dot_general).
    eyeL = (lax.broadcasted_iota(jnp.int32, (L, L), 0)
            == lax.broadcasted_iota(jnp.int32, (L, L), 1)).astype(f32)

    def fill_step(t, carry):
        slab = emis_btl_ref[:, pl.ds(t, 1), :][:, 0, :]          # (TB, L)
        et = lax.dot_general(eyeL, slab,
                             dimension_numbers=(((1,), (1,)), ((), ())),
                             preferred_element_type=f32)          # (L, TB)
        emis_ref[pl.ds(t, 1)] = et[None]
        return carry

    lax.fori_loop(0, T, fill_step, 0)

    trans = trans_ref[...]            # (L, L)
    start = start_ref[...]            # (L, 1)
    end = end_ref[...]                # (L, 1)
    maski = mask_ref[...]             # (T, TB) i32
    maskf = maski.astype(f32)
    labels = labels_ref[...]          # (T, TB) i32

    # ---------------- Gold-path (numerator) score, vectorized over time -------
    # Assumes contiguous right-padded mask with mask[:, 0] == 1 (torchcrf).
    oh = (lax.broadcasted_iota(jnp.int32, (T, L, TB), 1)
          == labels[:, None, :]).astype(f32)                      # (T, L, TB)

    gold_emis = jnp.sum(jnp.sum(emis_ref[...] * oh, axis=1) * maskf,
                        axis=0, keepdims=True)                    # (1, TB)
    gold_start = jnp.sum(start * oh[0], axis=0, keepdims=True)    # (1, TB)

    if T > 1:
        oh_prev = oh[:-1]
        oh_cur = oh[1:]
        acc = jnp.zeros((T - 1, TB), f32)
        for i in range(L):                                        # L small/static
            row_i = trans[i:i + 1, :][:, :, None]                 # (1, L, 1)
            s_i = jnp.sum(row_i * oh_cur, axis=1)                 # (T-1, TB)
            acc = acc + oh_prev[:, i, :] * s_i
        gold_trans = jnp.sum(acc * maskf[1:], axis=0, keepdims=True)
    else:
        gold_trans = jnp.zeros((1, TB), f32)

    seq_end = jnp.sum(maski, axis=0, keepdims=True) - 1           # (1, TB) i32
    time_oh = (lax.broadcasted_iota(jnp.int32, (T, TB), 0)
               == seq_end).astype(f32)                            # (T, TB)
    last_oh = jnp.sum(time_oh[:, None, :] * oh, axis=0)           # (L, TB)
    gold_end = jnp.sum(end * last_oh, axis=0, keepdims=True)      # (1, TB)

    num = gold_start + gold_emis + gold_trans + gold_end          # (1, TB)

    # ---------------- Serial CRF recursion (forward LSE + Viterbi) ------------
    e0 = emis_ref[0]                                              # (L, TB)
    alpha0 = start + e0
    hist_ref[0] = jnp.zeros((L, TB), jnp.int32)
    iota_prev = lax.broadcasted_iota(jnp.int32, (L, 1, 1), 0)     # hoisted

    def one_step(i, carry):
        alpha, vscore = carry
        e_i = emis_ref[pl.ds(i, 1)][0]                            # (L, TB)
        m_i = mask_ref[pl.ds(i, 1), :].astype(f32)                # (1, TB)
        te = trans[:, :, None] + e_i[None, :, :]                  # (Lp, Lc, TB)

        # forward algorithm: log-sum-exp over previous tag (leading axis)
        A = alpha[:, None, :] + te
        a_max = jnp.max(A, axis=0)                                # (L, TB)
        nxt = a_max + jnp.log(jnp.sum(jnp.exp(A - a_max[None]), axis=0))
        alpha = jnp.where(m_i > 0.0, nxt, alpha)

        # Viterbi: max over previous tag + first-max backpointers
        V = vscore[:, None, :] + te
        next_v = jnp.max(V, axis=0)                               # (L, TB)
        idx = jnp.min(jnp.where(V >= next_v[None], iota_prev, L),
                      axis=0).astype(jnp.int32)                   # (L, TB)
        hist_ref[pl.ds(i, 1)] = idx[None]
        vscore = jnp.where(m_i > 0.0, next_v, vscore)
        return alpha, vscore

    if T > 1:
        steps = T - 1
        unroll = next(u for u in (8, 4, 2, 1) if steps % u == 0)

        def step_block(blk, carry):                               # manual unroll
            for j in range(unroll):
                carry = one_step(1 + blk * unroll + j, carry)
            return carry

        alpha, vscore = lax.fori_loop(0, steps // unroll, step_block,
                                      (alpha0, alpha0))
    else:
        alpha, vscore = alpha0, alpha0

    # ---------------- loss = -(numerator - logsumexp(alpha + end)) ------------
    af = alpha + end                                              # (L, TB)
    a_max = jnp.max(af, axis=0, keepdims=True)
    denom = a_max + jnp.log(jnp.sum(jnp.exp(af - a_max), axis=0, keepdims=True))
    loss_ref[...] = jnp.reshape(-jnp.sum(num - denom), (1, 1))

    # ---------------- Viterbi backtrack: one row store per timestep -----------
    vf = vscore + end
    v_max = jnp.max(vf, axis=0, keepdims=True)
    iota_l = lax.broadcasted_iota(jnp.int32, (L, TB), 0)
    best_last = jnp.min(jnp.where(vf >= v_max, iota_l, L),
                        axis=0, keepdims=True).astype(jnp.int32)  # (1, TB)

    def back_step(k, cur):
        t = T - 1 - k
        cur = jnp.where(t == seq_end, best_last, cur)             # (1, TB)
        col = jnp.where(t <= seq_end, cur, 0)
        pred_ref[pl.ds(t, 1), :] = col
        hist_t = hist_ref[pl.ds(t, 1)][0]                         # (L, TB)
        prev = jnp.sum(jnp.where(iota_l == cur, hist_t, 0),
                       axis=0, keepdims=True).astype(jnp.int32)
        return jnp.where((t >= 1) & (t <= seq_end), prev, cur)

    lax.fori_loop(0, T, back_step, best_last)


def crf_classifier_forward(hidden_states, attention_mask, labels, params,
                           *, batch_tile=None):
    """Returns (loss, pred_labels) — the NEROutputs fields."""
    B, T, H = hidden_states.shape
    L = params["w"].shape[1]
    if batch_tile is None:
        batch_tile = B if B <= 128 else max(d for d in range(1, 129) if B % d == 0)
    TB = batch_tile
    assert B % TB == 0, "batch must be divisible by batch_tile"
    G = B // TB

    # Big activation tensor stays batch-first and is cast to bf16 (halves HBM
    # traffic + native MXU path).  CRF parameters / math stay f32.
    hidden_bf16 = hidden_states.astype(jnp.bfloat16)                    # (B, T, H)
    w_bf16 = params["w"].astype(jnp.bfloat16)                           # (H, L)
    b = params["b"].astype(jnp.float32).reshape(1, L)
    start_c = params["start"].astype(jnp.float32).reshape(L, 1)
    end_c = params["end"].astype(jnp.float32).reshape(L, 1)
    trans = params["trans"].astype(jnp.float32)

    # mask / labels are tiny: reorder host-side to (G, T, TB) time-major tiles.
    def _tile_tb(x):
        return jnp.transpose(x.astype(jnp.int32), (1, 0)) \
                  .reshape(T, G, TB).transpose(1, 0, 2)

    mask_r = _tile_tb(attention_mask)
    labels_r = _tile_tb(labels)

    # Generous scoped-VMEM budget hint (double-buffered hidden + scratches).
    def _r(x, m):
        return (x + m - 1) // m * m
    est = (2 * TB * T * _r(H, 128) * 2
           + TB * _r(T, 8) * _r(L, 128) * 4
           + 6 * T * _r(L, 8) * _r(TB, 128) * 4
           + 8 * _r(T, 8) * _r(TB, 128) * 4
           + (1 << 22))
    vmem_limit = int(min(128 * 1024 * 1024, max(32 * 1024 * 1024, est)))

    grid_spec = pltpu.PrefetchScalarGridSpec(
        num_scalar_prefetch=0,
        grid=(G,),
        in_specs=[
            pl.BlockSpec((TB, T, H), lambda i: (i, 0, 0)),     # hidden tile
            pl.BlockSpec((H, L), lambda i: (0, 0)),            # w
            pl.BlockSpec((1, L), lambda i: (0, 0)),            # b
            pl.BlockSpec((None, T, TB), lambda i: (i, 0, 0)),  # mask
            pl.BlockSpec((None, T, TB), lambda i: (i, 0, 0)),  # labels
            pl.BlockSpec((L, 1), lambda i: (0, 0)),            # start
            pl.BlockSpec((L, 1), lambda i: (0, 0)),            # end
            pl.BlockSpec((L, L), lambda i: (0, 0)),            # trans
        ],
        out_specs=(
            pl.BlockSpec((None, 1, 1), lambda i: (i, 0, 0)),   # per-tile loss
            pl.BlockSpec((None, T, TB), lambda i: (i, 0, 0)),  # pred (time-major)
        ),
        scratch_shapes=[
            pltpu.VMEM((TB, T, L), jnp.float32),
            pltpu.VMEM((T, L, TB), jnp.float32),
            pltpu.VMEM((T, L, TB), jnp.int32),
        ],
    )

    losses, pred_r = pl.pallas_call(
        _crf_kernel,
        out_shape=(jax.ShapeDtypeStruct((G, 1, 1), jnp.float32),
                   jax.ShapeDtypeStruct((G, T, TB), jnp.int32)),
        grid_spec=grid_spec,
        compiler_params=pltpu.CompilerParams(
            dimension_semantics=("parallel",),
            vmem_limit_bytes=vmem_limit),
    )(hidden_bf16, w_bf16, b, mask_r, labels_r, start_c, end_c, trans)

    loss = jnp.sum(losses)
    pred = pred_r.transpose(0, 2, 1).reshape(B, T)
    return loss, pred


# ----------------------------- pure-JAX reference -----------------------------
def reference_forward(hidden, mask, labels, params):
    hb = hidden.astype(jnp.bfloat16).astype(jnp.float32)
    w = params["w"].astype(jnp.bfloat16).astype(jnp.float32)
    b = params["b"].astype(jnp.float32)
    start = params["start"].astype(jnp.float32)
    end = params["end"].astype(jnp.float32)
    trans = params["trans"].astype(jnp.float32)
    emis = jnp.einsum("bth,hl->btl", hb, w) + b
    B, T, L = emis.shape
    maskf = mask.astype(jnp.float32)
    ar = jnp.arange(B)

    num = start[labels[:, 0]] + emis[ar, 0, labels[:, 0]]
    for i in range(1, T):
        num = num + (trans[labels[:, i - 1], labels[:, i]]
                     + emis[ar, i, labels[:, i]]) * maskf[:, i]
    seq_end = mask.sum(axis=1) - 1
    num = num + end[labels[ar, seq_end]]

    alpha = start[None] + emis[:, 0]
    for i in range(1, T):
        A = alpha[:, :, None] + trans[None] + emis[:, i][:, None, :]
        nxt = jax.scipy.special.logsumexp(A, axis=1)
        alpha = jnp.where(maskf[:, i][:, None] > 0, nxt, alpha)
    denom = jax.scipy.special.logsumexp(alpha + end[None], axis=1)
    loss = -jnp.sum(num - denom)

    v = start[None] + emis[:, 0]
    hist = []
    for i in range(1, T):
        V = v[:, :, None] + trans[None] + emis[:, i][:, None, :]
        hist.append(np.asarray(V.argmax(axis=1)))
        v = jnp.where(maskf[:, i][:, None] > 0, V.max(axis=1), v)
    v_np = np.asarray(v + end[None])
    se = np.asarray(seq_end)
    preds = []
    for bdx in range(B):
        cur = int(np.argmax(v_np[bdx]))
        tags = [cur]
        for hh in reversed(hist[:se[bdx]]):
            cur = int(hh[bdx, cur])
            tags.append(cur)
        tags.reverse()
        tags += [0] * (T - len(tags))
        preds.append(tags)
    return loss, np.array(preds, dtype=np.int32)


if __name__ == "__main__":
    B, T, H, L = 4, 9, 32, 5
    key = jax.random.PRNGKey(0)
    k_h, k_w, k_b, k_s, k_e, k_t, k_l = jax.random.split(key, 7)

    hidden_states = jax.random.normal(k_h, (B, T, H), jnp.float32)
    # contiguous right-padded masks, mask[:, 0] == 1 (torchcrf contract)
    attention_mask = jnp.array(
        [[1, 1, 1, 1, 1, 1, 1, 1, 1],
         [1, 1, 1, 1, 1, 0, 0, 0, 0],
         [1, 1, 1, 1, 1, 1, 1, 0, 0],
         [1, 0, 0, 0, 0, 0, 0, 0, 0]], jnp.int32)
    labels = jax.random.randint(k_l, (B, T), 0, L, jnp.int32)

    params = {
        "w": jax.random.normal(k_w, (H, L), jnp.float32) * 0.1,
        "b": jax.random.normal(k_b, (L,), jnp.float32) * 0.1,
        "start": jax.random.uniform(k_s, (L,), jnp.float32, -0.1, 0.1),
        "end": jax.random.uniform(k_e, (L,), jnp.float32, -0.1, 0.1),
        "trans": jax.random.uniform(k_t, (L, L), jnp.float32, -0.1, 0.1),
    }

    loss, pred = crf_classifier_forward(hidden_states, attention_mask, labels,
                                        params, batch_tile=2)
    jax.block_until_ready((loss, pred))

    ref_loss, ref_pred = reference_forward(hidden_states, attention_mask,
                                           labels, params)
    assert np.allclose(np.asarray(loss), np.asarray(ref_loss),
                       rtol=1e-3, atol=1e-3), (loss, ref_loss)
    assert np.array_equal(np.asarray(pred), ref_pred), (pred, ref_pred)

    print("KERNEL_OK")
</pallas_src>

<mosaic_0001>
module attributes {stable_mosaic.version = 11 : i64} {
  func.func @_crf_kernel(%arg0: i32, %arg1: memref<2x9x32xbf16, #tpu.memory_space<vmem>>, %arg2: memref<32x5xbf16, #tpu.memory_space<vmem>>, %arg3: memref<1x5xf32, #tpu.memory_space<vmem>>, %arg4: memref<1x9x2xi32, #tpu.memory_space<vmem>>, %arg5: memref<1x9x2xi32, #tpu.memory_space<vmem>>, %arg6: memref<5x1xf32, #tpu.memory_space<vmem>>, %arg7: memref<5x1xf32, #tpu.memory_space<vmem>>, %arg8: memref<5x5xf32, #tpu.memory_space<vmem>>, %arg9: memref<1x1x1xf32, #tpu.memory_space<vmem>>, %arg10: memref<1x9x2xi32, #tpu.memory_space<vmem>>, %arg11: memref<2x9x5xf32, #tpu.memory_space<vmem>>, %arg12: memref<9x5x2xf32, #tpu.memory_space<vmem>>, %arg13: memref<9x5x2xi32, #tpu.memory_space<vmem>>) attributes {dimension_semantics = [#tpu.dimension_semantics<parallel>], iteration_bounds = array<i64: 2>, scalar_prefetch = 0 : i64, scratch_operands = 3 : i64, tpu.core_type = #tpu.core_type<tc>, window_params = [{transform_indices = @transform_0, window_bounds = array<i64: 2, 9, 32>}, {pipeline_mode = #tpu.pipeline_mode<synchronous>, transform_indices = @transform_1, window_bounds = array<i64: 32, 5>}, {pipeline_mode = #tpu.pipeline_mode<synchronous>, transform_indices = @transform_2, window_bounds = array<i64: 1, 5>}, {transform_indices = @transform_3, window_bounds = array<i64: 1, 9, 2>}, {transform_indices = @transform_4, window_bounds = array<i64: 1, 9, 2>}, {pipeline_mode = #tpu.pipeline_mode<synchronous>, transform_indices = @transform_5, window_bounds = array<i64: 5, 1>}, {pipeline_mode = #tpu.pipeline_mode<synchronous>, transform_indices = @transform_6, window_bounds = array<i64: 5, 1>}, {pipeline_mode = #tpu.pipeline_mode<synchronous>, transform_indices = @transform_7, window_bounds = array<i64: 5, 5>}, {transform_indices = @transform_8, window_bounds = array<i64: 1, 1, 1>}, {transform_indices = @transform_9, window_bounds = array<i64: 1, 9, 2>}]} {
    %c0 = arith.constant 0 : index
    %c0_0 = arith.constant 0 : index
    %c0_1 = arith.constant 0 : index
    %0 = vector.load %arg1[%c0, %c0_0, %c0_1] : memref<2x9x32xbf16, #tpu.memory_space<vmem>>, vector<2x9x32xbf16>
    %1 = vector.shape_cast %0 : vector<2x9x32xbf16> to vector<18x32xbf16>
    %c0_2 = arith.constant 0 : index
    %c0_3 = arith.constant 0 : index
    %2 = vector.load %arg2[%c0_2, %c0_3] : memref<32x5xbf16, #tpu.memory_space<vmem>>, vector<32x5xbf16>
    %cst = arith.constant dense<0.000000e+00> : vector<18x5xf32>
    %3 = tpu.matmul %1, %2, %cst {dimension_numbers = #tpu.dot_dimension_numbers<[1], [0], [0], [1], [0, 0, 1, 1], [], []>} : vector<18x32xbf16>, vector<32x5xbf16>, vector<18x5xf32> -> vector<18x5xf32>
    %c0_4 = arith.constant 0 : index
    %c0_5 = arith.constant 0 : index
    %4 = vector.load %arg3[%c0_4, %c0_5] : memref<1x5xf32, #tpu.memory_space<vmem>>, vector<1x5xf32>
    %5 = vector.broadcast %4 : vector<1x5xf32> to vector<18x5xf32>
    %6 = arith.addf %3, %5 : vector<18x5xf32>
    %7 = vector.shape_cast %6 : vector<18x5xf32> to vector<2x9x5xf32>
    %c0_6 = arith.constant 0 : index
    %c0_7 = arith.constant 0 : index
    %c0_8 = arith.constant 0 : index
    %8 = vector.load %arg11[%c0_6, %c0_7, %c0_8] : memref<2x9x5xf32, #tpu.memory_space<vmem>>, vector<2x9x5xf32>
    tpu.vector_store %arg11[%c0_6, %c0_7, %c0_8], %7 {strides = array<i32>} : memref<2x9x5xf32, #tpu.memory_space<vmem>>, vector<2x9x5xf32>,
    %9 = tpu.iota {dimensions = array<i32: 0>} : vector<5x5xi32>
    %10 = tpu.iota {dimensions = array<i32: 1>} : vector<5x5xi32>
    %11 = arith.cmpi eq, %9, %10 : vector<5x5xi32>
    %12 = arith.extui %11 : vector<5x5xi1> to vector<5x5xi32>
    %13 = arith.sitofp %12 : vector<5x5xi32> to vector<5x5xf32>
    %c0_i32 = arith.constant 0 : i32
    %c9_i32 = arith.constant 9 : i32
    %14 = arith.addi %c0_i32, %c9_i32 : i32
    %c1_i32 = arith.constant 1 : i32
    scf.for %arg14 = %c0_i32 to %14 step %c1_i32  : i32 {
      %c0_183 = arith.constant 0 : index
      %564 = arith.index_cast %arg14 : i32 to index
      %c0_184 = arith.constant 0 : index
      %565 = vector.load %arg11[%c0_183, %564, %c0_184] : memref<2x9x5xf32, #tpu.memory_space<vmem>>, vector<2x1x5xf32>
      %566 = vector.shape_cast %565 : vector<2x1x5xf32> to vector<2x5xf32>
      %cst_185 = arith.constant dense<0.000000e+00> : vector<5x2xf32>
      %567 = tpu.matmul %13, %566, %cst_185 {dimension_numbers = #tpu.dot_dimension_numbers<[1], [1], [0], [0], [0, 0, 1, 0], [], []>} : vector<5x5xf32>, vector<2x5xf32>, vector<5x2xf32> -> vector<5x2xf32>
      %568 = vector.shape_cast %567 : vector<5x2xf32> to vector<1x5x2xf32>
      %569 = arith.index_cast %arg14 : i32 to index
      %c0_186 = arith.constant 0 : index
      %c0_187 = arith.constant 0 : index
      %570 = vector.load %arg12[%569, %c0_186, %c0_187] : memref<9x5x2xf32, #tpu.memory_space<vmem>>, vector<1x5x2xf32>
      tpu.vector_store %arg12[%569, %c0_186, %c0_187], %568 {strides = array<i32>} : memref<9x5x2xf32, #tpu.memory_space<vmem>>, vector<1x5x2xf32>,
    }
    %c9_i32_9 = arith.constant 9 : i32
    %c0_10 = arith.constant 0 : index
    %c0_11 = arith.constant 0 : index
    %15 = vector.load %arg8[%c0_10, %c0_11] : memref<5x5xf32, #tpu.memory_space<vmem>>, vector<5x5xf32>
    %c0_12 = arith.constant 0 : index
    %c0_13 = arith.constant 0 : index
    %16 = vector.load %arg6[%c0_12, %c0_13] : memref<5x1xf32, #tpu.memory_space<vmem>>, vector<5x1xf32>
    %c0_14 = arith.constant 0 : index
    %c0_15 = arith.constant 0 : index
    %17 = vector.load %arg7[%c0_14, %c0_15] : memref<5x1xf32, #tpu.memory_space<vmem>>, vector<5x1xf32>
    %c0_16 = arith.constant 0 : index
    %c0_17 = arith.constant 0 : index
    %c0_18 = arith.constant 0 : index
    %18 = vector.load %arg4[%c0_16, %c0_17, %c0_18] : memref<1x9x2xi32, #tpu.memory_space<vmem>>, vector<1x9x2xi32>
    %19 = vector.shape_cast %18 : vector<1x9x2xi32> to vector<9x2xi32>
    %20 = arith.sitofp %19 : vector<9x2xi32> to vector<9x2xf32>
    %c0_19 = arith.constant 0 : index
    %c0_20 = arith.constant 0 : index
    %c0_21 = arith.constant 0 : index
    %21 = vector.load %arg5[%c0_19, %c0_20, %c0_21] : memref<1x9x2xi32, #tpu.memory_space<vmem>>, vector<1x9x2xi32>
    %22 = vector.shape_cast %21 : vector<1x9x2xi32> to vector<9x2xi32>
    %23 = tpu.iota {dimensions = array<i32: 1>} : vector<9x5x2xi32>
    %24 = vector.shape_cast %22 : vector<9x2xi32> to vector<9x1x2xi32>
    %25 = vector.broadcast %24 : vector<9x1x2xi32> to vector<9x5x2xi32>
    %26 = arith.cmpi eq, %23, %25 : vector<9x5x2xi32>
    %27 = arith.extui %26 : vector<9x5x2xi1> to vector<9x5x2xi32>
    %28 = arith.sitofp %27 : vector<9x5x2xi32> to vector<9x5x2xf32>
    %c0_22 = arith.constant 0 : index
    %c0_23 = arith.constant 0 : index
    %c0_24 = arith.constant 0 : index
    %29 = vector.load %arg12[%c0_22, %c0_23, %c0_24] : memref<9x5x2xf32, #tpu.memory_space<vmem>>, vector<9x5x2xf32>
    %30 = arith.mulf %29, %28 : vector<9x5x2xf32>
    %cst_25 = arith.constant dense<0.000000e+00> : vector<9x2xf32>
    %31 = vector.multi_reduction <add>, %30, %cst_25 [1] : vector<9x5x2xf32> to vector<9x2xf32>
    %32 = arith.mulf %31, %20 : vector<9x2xf32>
    %cst_26 = arith.constant dense<0.000000e+00> : vector<2xf32>
    %33 = vector.multi_reduction <add>, %32, %cst_26 [0] : vector<9x2xf32> to vector<2xf32>
    %34 = vector.shape_cast %33 : vector<2xf32> to vector<1x2xf32>
    %35 = vector.extract_strided_slice %28 {offsets = [0, 0, 0], sizes = [1, 5, 2], strides = [1, 1, 1]} : vector<9x5x2xf32> to vector<1x5x2xf32>
    %36 = vector.shape_cast %35 : vector<1x5x2xf32> to vector<5x2xf32>
    %37 = vector.broadcast %16 : vector<5x1xf32> to vector<5x2xf32>
    %38 = arith.mulf %37, %36 : vector<5x2xf32>
    %cst_27 = arith.constant dense<0.000000e+00> : vector<2xf32>
    %39 = vector.multi_reduction <add>, %38, %cst_27 [0] : vector<5x2xf32> to vector<2xf32>
    %40 = vector.shape_cast %39 : vector<2xf32> to vector<1x2xf32>
    %41 = vector.extract_strided_slice %28 {offsets = [0, 0, 0], sizes = [8, 5, 2], strides = [1, 1, 1]} : vector<9x5x2xf32> to vector<8x5x2xf32>
    %42 = vector.extract_strided_slice %28 {offsets = [1, 0, 0], sizes = [8, 5, 2], strides = [1, 1, 1]} : vector<9x5x2xf32> to vector<8x5x2xf32>
    %cst_28 = arith.constant 0.000000e+00 : f32
    %43 = vector.broadcast %cst_28 : f32 to vector<8x2xf32>
    %44 = vector.extract_strided_slice %15 {offsets = [0, 0], sizes = [1, 5], strides = [1, 1]} : vector<5x5xf32> to vector<1x5xf32>
    %45 = vector.shape_cast %44 : vector<1x5xf32> to vector<1x5x1xf32>
    %46 = vector.broadcast %45 : vector<1x5x1xf32> to vector<8x5x2xf32>
    %47 = arith.mulf %46, %42 : vector<8x5x2xf32>
    %cst_29 = arith.constant dense<0.000000e+00> : vector<8x2xf32>
    %48 = vector.multi_reduction <add>, %47, %cst_29 [1] : vector<8x5x2xf32> to vector<8x2xf32>
    %49 = vector.extract_strided_slice %41 {offsets = [0, 0, 0], sizes = [8, 1, 2], strides = [1, 1, 1]} : vector<8x5x2xf32> to vector<8x1x2xf32>
    %50 = vector.shape_cast %49 : vector<8x1x2xf32> to vector<8x2xf32>
    %51 = arith.mulf %50, %48 : vector<8x2xf32>
    %52 = arith.addf %43, %51 : vector<8x2xf32>
    %53 = vector.extract_strided_slice %15 {offsets = [1, 0], sizes = [1, 5], strides = [1, 1]} : vector<5x5xf32> to vector<1x5xf32>
    %54 = vector.shape_cast %53 : vector<1x5xf32> to vector<1x5x1xf32>
    %55 = vector.broadcast %54 : vector<1x5x1xf32> to vector<8x5x2xf32>
    %56 = arith.mulf %55, %42 : vector<8x5x2xf32>
    %cst_30 = arith.constant dense<0.000000e+00> : vector<8x2xf32>
    %57 = vector.multi_reduction <add>, %56, %cst_30 [1] : vector<8x5x2xf32> to vector<8x2xf32>
    %58 = vector.extract_strided_slice %41 {offsets = [0, 1, 0], sizes = [8, 1, 2], strides = [1, 1, 1]} : vector<8x5x2xf32> to vector<8x1x2xf32>
    %59 = vector.shape_cast %58 : vector<8x1x2xf32> to vector<8x2xf32>
    %60 = arith.mulf %59, %57 : vector<8x2xf32>
    %61 = arith.addf %52, %60 : vector<8x2xf32>
    %62 = vector.extract_strided_slice %15 {offsets = [2, 0], sizes = [1, 5], strides = [1, 1]} : vector<5x5xf32> to vector<1x5xf32>
    %63 = vector.shape_cast %62 : vector<1x5xf32> to vector<1x5x1xf32>
    %64 = vector.broadcast %63 : vector<1x5x1xf32> to vector<8x5x2xf32>
    %65 = arith.mulf %64, %42 : vector<8x5x2xf32>
    %cst_31 = arith.constant dense<0.000000e+00> : vector<8x2xf32>
    %66 = vector.multi_reduction <add>, %65, %cst_31 [1] : vector<8x5x2xf32> to vector<8x2xf32>
    %67 = vector.extract_strided_slice %41 {offsets = [0, 2, 0], sizes = [8, 1, 2], strides = [1, 1, 1]} : vector<8x5x2xf32> to vector<8x1x2xf32>
    %68 = vector.shape_cast %67 : vector<8x1x2xf32> to vector<8x2xf32>
    %69 = arith.mulf %68, %66 : vector<8x2xf32>
    %70 = arith.addf %61, %69 : vector<8x2xf32>
    %71 = vector.extract_strided_slice %15 {offsets = [3, 0], sizes = [1, 5], strides = [1, 1]} : vector<5x5xf32> to vector<1x5xf32>
    %72 = vector.shape_cast %71 : vector<1x5xf32> to vector<1x5x1xf32>
    %73 = vector.broadcast %72 : vector<1x5x1xf32> to vector<8x5x2xf32>
    %74 = arith.mulf %73, %42 : vector<8x5x2xf32>
    %cst_32 = arith.constant dense<0.000000e+00> : vector<8x2xf32>
    %75 = vector.multi_reduction <add>, %74, %cst_32 [1] : vector<8x5x2xf32> to vector<8x2xf32>
    %76 = vector.extract_strided_slice %41 {offsets = [0, 3, 0], sizes = [8, 1, 2], strides = [1, 1, 1]} : vector<8x5x2xf32> to vector<8x1x2xf32>
    %77 = vector.shape_cast %76 : vector<8x1x2xf32> to vector<8x2xf32>
    %78 = arith.mulf %77, %75 : vector<8x2xf32>
    %79 = arith.addf %70, %78 : vector<8x2xf32>
    %80 = vector.extract_strided_slice %15 {offsets = [4, 0], sizes = [1, 5], strides = [1, 1]} : vector<5x5xf32> to vector<1x5xf32>
    %81 = vector.shape_cast %80 : vector<1x5xf32> to vector<1x5x1xf32>
    %82 = vector.broadcast %81 : vector<1x5x1xf32> to vector<8x5x2xf32>
    %83 = arith.mulf %82, %42 : vector<8x5x2xf32>
    %cst_33 = arith.constant dense<0.000000e+00> : vector<8x2xf32>
    %84 = vector.multi_reduction <add>, %83, %cst_33 [1] : vector<8x5x2xf32> to vector<8x2xf32>
    %85 = vector.extract_strided_slice %41 {offsets = [0, 4, 0], sizes = [8, 1, 2], strides = [1, 1, 1]} : vector<8x5x2xf32> to vector<8x1x2xf32>
    %86 = vector.shape_cast %85 : vector<8x1x2xf32> to vector<8x2xf32>
    %87 = arith.mulf %86, %84 : vector<8x2xf32>
    %88 = arith.addf %79, %87 : vector<8x2xf32>
    %89 = vector.extract_strided_slice %20 {offsets = [1, 0], sizes = [8, 2], strides = [1, 1]} : vector<9x2xf32> to vector<8x2xf32>
    %90 = arith.mulf %88, %89 : vector<8x2xf32>
    %cst_34 = arith.constant dense<0.000000e+00> : vector<2xf32>
    %91 = vector.multi_reduction <add>, %90, %cst_34 [0] : vector<8x2xf32> to vector<2xf32>
    %92 = vector.shape_cast %91 : vector<2xf32> to vector<1x2xf32>
    %cst_35 = arith.constant dense<0> : vector<2xi32>
    %93 = vector.multi_reduction <add>, %19, %cst_35 [0] : vector<9x2xi32> to vector<2xi32>
    %94 = vector.shape_cast %93 : vector<2xi32> to vector<1x2xi32>
    %c1_i32_36 = arith.constant 1 : i32
    %95 = vector.broadcast %c1_i32_36 : i32 to vector<1x2xi32>
    %96 = arith.subi %94, %95 : vector<1x2xi32>
    %97 = tpu.iota {dimensions = array<i32: 0>} : vector<9x2xi32>
    %98 = vector.broadcast %96 : vector<1x2xi32> to vector<9x2xi32>
    %99 = arith.cmpi eq, %97, %98 : vector<9x2xi32>
    %100 = arith.extui %99 : vector<9x2xi1> to vector<9x2xi32>
    %101 = arith.sitofp %100 : vector<9x2xi32> to vector<9x2xf32>
    %102 = vector.shape_cast %101 : vector<9x2xf32> to vector<9x1x2xf32>
    %103 = vector.broadcast %102 : vector<9x1x2xf32> to vector<9x5x2xf32>
    %104 = arith.mulf %103, %28 : vector<9x5x2xf32>
    %cst_37 = arith.constant dense<0.000000e+00> : vector<5x2xf32>
    %105 = vector.multi_reduction <add>, %104, %cst_37 [0] : vector<9x5x2xf32> to vector<5x2xf32>
    %106 = vector.broadcast %17 : vector<5x1xf32> to vector<5x2xf32>
    %107 = arith.mulf %106, %105 : vector<5x2xf32>
    %cst_38 = arith.constant dense<0.000000e+00> : vector<2xf32>
    %108 = vector.multi_reduction <add>, %107, %cst_38 [0] : vector<5x2xf32> to vector<2xf32>
    %109 = vector.shape_cast %108 : vector<2xf32> to vector<1x2xf32>
    %110 = arith.addf %40, %34 : vector<1x2xf32>
    %111 = arith.addf %110, %92 : vector<1x2xf32>
    %112 = arith.addf %111, %109 : vector<1x2xf32>
    %c0_39 = arith.constant 0 : index
    %c0_40 = arith.constant 0 : index
    %c0_41 = arith.constant 0 : index
    %113 = vector.load %arg12[%c0_39, %c0_40, %c0_41] : memref<9x5x2xf32, #tpu.memory_space<vmem>>, vector<1x5x2xf32>
    %114 = vector.shape_cast %113 : vector<1x5x2xf32> to vector<5x2xf32>
    %115 = vector.broadcast %16 : vector<5x1xf32> to vector<5x2xf32>
    %116 = arith.addf %115, %114 : vector<5x2xf32>
    %c0_i32_42 = arith.constant 0 : i32
    %117 = vector.broadcast %c0_i32_42 : i32 to vector<5x2xi32>
    %c0_43 = arith.constant 0 : index
    %c0_44 = arith.constant 0 : index
    %c0_45 = arith.constant 0 : index
    %118 = vector.load %arg13[%c0_43, %c0_44, %c0_45] : memref<9x5x2xi32, #tpu.memory_space<vmem>>, vector<1x5x2xi32>
    %119 = vector.shape_cast %118 : vector<1x5x2xi32> to vector<5x2xi32>
    %120 = vector.shape_cast %117 : vector<5x2xi32> to vector<1x5x2xi32>
    tpu.vector_store %arg13[%c0_43, %c0_44, %c0_45], %120 {strides = array<i32>} : memref<9x5x2xi32, #tpu.memory_space<vmem>>, vector<1x5x2xi32>,
    %121 = tpu.iota {dimensions = array<i32: 0>} : vector<5x1x1xi32>
    %c0_i32_46 = arith.constant 0 : i32
    %c8_i32 = arith.constant 8 : i32
    %122 = arith.muli %c0_i32_46, %c8_i32 : i32
    %c1_i32_47 = arith.constant 1 : i32
    %123 = arith.addi %c1_i32_47, %122 : i32
    %c0_i32_48 = arith.constant 0 : i32
    %124 = arith.addi %123, %c0_i32_48 : i32
    %125 = arith.index_cast %124 : i32 to index
    %c0_49 = arith.constant 0 : index
    %c0_50 = arith.constant 0 : index
    %126 = vector.load %arg12[%125, %c0_49, %c0_50] : memref<9x5x2xf32, #tpu.memory_space<vmem>>, vector<1x5x2xf32>
    %127 = vector.shape_cast %126 : vector<1x5x2xf32> to vector<5x2xf32>
    %c0_51 = arith.constant 0 : index
    %128 = arith.index_cast %124 : i32 to index
    %c0_52 = arith.constant 0 : index
    %129 = vector.load %arg4[%c0_51, %128, %c0_52] : memref<1x9x2xi32, #tpu.memory_space<vmem>>, vector<1x1x2xi32>
    %130 = vector.shape_cast %129 : vector<1x1x2xi32> to vector<1x2xi32>
    %131 = arith.sitofp %130 : vector<1x2xi32> to vector<1x2xf32>
    %132 = vector.shape_cast %15 : vector<5x5xf32> to vector<5x5x1xf32>
    %133 = vector.shape_cast %127 : vector<5x2xf32> to vector<1x5x2xf32>
    %134 = vector.broadcast %132 : vector<5x5x1xf32> to vector<5x5x2xf32>
    %135 = vector.broadcast %133 : vector<1x5x2xf32> to vector<5x5x2xf32>
    %136 = arith.addf %134, %135 : vector<5x5x2xf32>
    %137 = vector.shape_cast %116 : vector<5x2xf32> to vector<5x1x2xf32>
    %138 = vector.broadcast %137 : vector<5x1x2xf32> to vector<5x5x2xf32>
    %139 = arith.addf %138, %136 : vector<5x5x2xf32>
    %cst_53 = arith.constant dense<0xFF800000> : vector<5x2xf32>
    %140 = vector.multi_reduction <maximumf>, %139, %cst_53 [0] : vector<5x5x2xf32> to vector<5x2xf32>
    %141 = vector.shape_cast %140 : vector<5x2xf32> to vector<1x5x2xf32>
    %142 = vector.broadcast %141 : vector<1x5x2xf32> to vector<5x5x2xf32>
    %143 = arith.subf %139, %142 : vector<5x5x2xf32>
    %144 = math.exp %143 : vector<5x5x2xf32>
    %cst_54 = arith.constant dense<0.000000e+00> : vector<5x2xf32>
    %145 = vector.multi_reduction <add>, %144, %cst_54 [0] : vector<5x5x2xf32> to vector<5x2xf32>
    %146 = math.log %145 : vector<5x2xf32>
    %147 = arith.addf %140, %146 : vector<5x2xf32>
    %cst_55 = arith.constant 0.000000e+00 : f32
    %148 = vector.broadcast %cst_55 : f32 to vector<1x2xf32>
    %149 = arith.cmpf ogt, %131, %148 : vector<1x2xf32>
    %150 = vector.shape_cast %149 : vector<1x2xi1> to vector<1x2xi1>
    %151 = vector.broadcast %150 : vector<1x2xi1> to vector<5x2xi1>
    %152 = arith.select %151, %147, %116 : vector<5x2xi1>, vector<5x2xf32>
    %153 = vector.shape_cast %116 : vector<5x2xf32> to vector<5x1x2xf32>
    %154 = vector.broadcast %153 : vector<5x1x2xf32> to vector<5x5x2xf32>
    %155 = arith.addf %154, %136 : vector<5x5x2xf32>
    %cst_56 = arith.constant dense<0xFF800000> : vector<5x2xf32>
    %156 = vector.multi_reduction <maximumf>, %155, %cst_56 [0] : vector<5x5x2xf32> to vector<5x2xf32>
    %157 = vector.shape_cast %156 : vector<5x2xf32> to vector<1x5x2xf32>
    %158 = vector.broadcast %157 : vector<1x5x2xf32> to vector<5x5x2xf32>
    %159 = arith.cmpf oge, %155, %158 : vector<5x5x2xf32>
    %c5_i32 = arith.constant 5 : i32
    %160 = vector.shape_cast %121 : vector<5x1x1xi32> to vector<5x1x1xi32>
    %161 = vector.broadcast %160 : vector<5x1x1xi32> to vector<5x5x2xi32>
    %162 = vector.broadcast %c5_i32 : i32 to vector<5x5x2xi32>
    %163 = arith.select %159, %161, %162 : vector<5x5x2xi1>, vector<5x5x2xi32>
    %cst_57 = arith.constant dense<2147483647> : vector<5x2xi32>
    %164 = vector.multi_reduction <minsi>, %163, %cst_57 [0] : vector<5x5x2xi32> to vector<5x2xi32>
    %165 = vector.shape_cast %164 : vector<5x2xi32> to vector<1x5x2xi32>
    %166 = arith.index_cast %124 : i32 to index
    %c0_58 = arith.constant 0 : index
    %c0_59 = arith.constant 0 : index
    %167 = vector.load %arg13[%166, %c0_58, %c0_59] : memref<9x5x2xi32, #tpu.memory_space<vmem>>, vector<1x5x2xi32>
    tpu.vector_store %arg13[%166, %c0_58, %c0_59], %165 {strides = array<i32>} : memref<9x5x2xi32, #tpu.memory_space<vmem>>, vector<1x5x2xi32>,
    %cst_60 = arith.constant 0.000000e+00 : f32
    %168 = vector.broadcast %cst_60 : f32 to vector<1x2xf32>
    %169 = arith.cmpf ogt, %131, %168 : vector<1x2xf32>
    %170 = vector.shape_cast %169 : vector<1x2xi1> to vector<1x2xi1>
    %171 = vector.broadcast %170 : vector<1x2xi1> to vector<5x2xi1>
    %172 = arith.select %171, %156, %116 : vector<5x2xi1>, vector<5x2xf32>
    %c8_i32_61 = arith.constant 8 : i32
    %173 = arith.muli %c0_i32_46, %c8_i32_61 : i32
    %c1_i32_62 = arith.constant 1 : i32
    %174 = arith.addi %c1_i32_62, %173 : i32
    %c1_i32_63 = arith.constant 1 : i32
    %175 = arith.addi %174, %c1_i32_63 : i32
    %176 = arith.index_cast %175 : i32 to index
    %c0_64 = arith.constant 0 : index
    %c0_65 = arith.constant 0 : index
    %177 = vector.load %arg12[%176, %c0_64, %c0_65] : memref<9x5x2xf32, #tpu.memory_space<vmem>>, vector<1x5x2xf32>
    %178 = vector.shape_cast %177 : vector<1x5x2xf32> to vector<5x2xf32>
    %c0_66 = arith.constant 0 : index
    %179 = arith.index_cast %175 : i32 to index
    %c0_67 = arith.constant 0 : index
    %180 = vector.load %arg4[%c0_66, %179, %c0_67] : memref<1x9x2xi32, #tpu.memory_space<vmem>>, vector<1x1x2xi32>
    %181 = vector.shape_cast %180 : vector<1x1x2xi32> to vector<1x2xi32>
    %182 = arith.sitofp %181 : vector<1x2xi32> to vector<1x2xf32>
    %183 = vector.shape_cast %15 : vector<5x5xf32> to vector<5x5x1xf32>
    %184 = vector.shape_cast %178 : vector<5x2xf32> to vector<1x5x2xf32>
    %185 = vector.broadcast %183 : vector<5x5x1xf32> to vector<5x5x2xf32>
    %186 = vector.broadcast %184 : vector<1x5x2xf32> to vector<5x5x2xf32>
    %187 = arith.addf %185, %186 : vector<5x5x2xf32>
    %188 = vector.shape_cast %152 : vector<5x2xf32> to vector<5x1x2xf32>
    %189 = vector.broadcast %188 : vector<5x1x2xf32> to vector<5x5x2xf32>
    %190 = arith.addf %189, %187 : vector<5x5x2xf32>
    %cst_68 = arith.constant dense<0xFF800000> : vector<5x2xf32>
    %191 = vector.multi_reduction <maximumf>, %190, %cst_68 [0] : vector<5x5x2xf32> to vector<5x2xf32>
    %192 = vector.shape_cast %191 : vector<5x2xf32> to vector<1x5x2xf32>
    %193 = vector.broadcast %192 : vector<1x5x2xf32> to vector<5x5x2xf32>
    %194 = arith.subf %190, %193 : vector<5x5x2xf32>
    %195 = math.exp %194 : vector<5x5x2xf32>
    %cst_69 = arith.constant dense<0.000000e+00> : vector<5x2xf32>
    %196 = vector.multi_reduction <add>, %195, %cst_69 [0] : vector<5x5x2xf32> to vector<5x2xf32>
    %197 = math.log %196 : vector<5x2xf32>
    %198 = arith.addf %191, %197 : vector<5x2xf32>
    %cst_70 = arith.constant 0.000000e+00 : f32
    %199 = vector.broadcast %cst_70 : f32 to vector<1x2xf32>
    %200 = arith.cmpf ogt, %182, %199 : vector<1x2xf32>
    %201 = vector.shape_cast %200 : vector<1x2xi1> to vector<1x2xi1>
    %202 = vector.broadcast %201 : vector<1x2xi1> to vector<5x2xi1>
    %203 = arith.select %202, %198, %152 : vector<5x2xi1>, vector<5x2xf32>
    %204 = vector.shape_cast %172 : vector<5x2xf32> to vector<5x1x2xf32>
    %205 = vector.broadcast %204 : vector<5x1x2xf32> to vector<5x5x2xf32>
    %206 = arith.addf %205, %187 : vector<5x5x2xf32>
    %cst_71 = arith.constant dense<0xFF800000> : vector<5x2xf32>
    %207 = vector.multi_reduction <maximumf>, %206, %cst_71 [0] : vector<5x5x2xf32> to vector<5x2xf32>
    %208 = vector.shape_cast %207 : vector<5x2xf32> to vector<1x5x2xf32>
    %209 = vector.broadcast %208 : vector<1x5x2xf32> to vector<5x5x2xf32>
    %210 = arith.cmpf oge, %206, %209 : vector<5x5x2xf32>
    %c5_i32_72 = arith.constant 5 : i32
    %211 = vector.shape_cast %121 : vector<5x1x1xi32> to vector<5x1x1xi32>
    %212 = vector.broadcast %211 : vector<5x1x1xi32> to vector<5x5x2xi32>
    %213 = vector.broadcast %c5_i32_72 : i32 to vector<5x5x2xi32>
    %214 = arith.select %210, %212, %213 : vector<5x5x2xi1>, vector<5x5x2xi32>
    %cst_73 = arith.constant dense<2147483647> : vector<5x2xi32>
    %215 = vector.multi_reduction <minsi>, %214, %cst_73 [0] : vector<5x5x2xi32> to vector<5x2xi32>
    %216 = vector.shape_cast %215 : vector<5x2xi32> to vector<1x5x2xi32>
    %217 = arith.index_cast %175 : i32 to index
    %c0_74 = arith.constant 0 : index
    %c0_75 = arith.constant 0 : index
    %218 = vector.load %arg13[%217, %c0_74, %c0_75] : memref<9x5x2xi32, #tpu.memory_space<vmem>>, vector<1x5x2xi32>
    tpu.vector_store %arg13[%217, %c0_74, %c0_75], %216 {strides = array<i32>} : memref<9x5x2xi32, #tpu.memory_space<vmem>>, vector<1x5x2xi32>,
    %cst_76 = arith.constant 0.000000e+00 : f32
    %219 = vector.broadcast %cst_76 : f32 to vector<1x2xf32>
    %220 = arith.cmpf ogt, %182, %219 : vector<1x2xf32>
    %221 = vector.shape_cast %220 : vector<1x2xi1> to vector<1x2xi1>
    %222 = vector.broadcast %221 : vector<1x2xi1> to vector<5x2xi1>
    %223 = arith.select %222, %207, %172 : vector<5x2xi1>, vector<5x2xf32>
    %c8_i32_77 = arith.constant 8 : i32
    %224 = arith.muli %c0_i32_46, %c8_i32_77 : i32
    %c1_i32_78 = arith.constant 1 : i32
    %225 = arith.addi %c1_i32_78, %224 : i32
    %c2_i32 = arith.constant 2 : i32
    %226 = arith.addi %225, %c2_i32 : i32
    %227 = arith.index_cast %226 : i32 to index
    %c0_79 = arith.constant 0 : index
    %c0_80 = arith.constant 0 : index
    %228 = vector.load %arg12[%227, %c0_79, %c0_80] : memref<9x5x2xf32, #tpu.memory_space<vmem>>, vector<1x5x2xf32>
    %229 = vector.shape_cast %228 : vector<1x5x2xf32> to vector<5x2xf32>
    %c0_81 = arith.constant 0 : index
    %230 = arith.index_cast %226 : i32 to index
    %c0_82 = arith.constant 0 : index
    %231 = vector.load %arg4[%c0_81, %230, %c0_82] : memref<1x9x2xi32, #tpu.memory_space<vmem>>, vector<1x1x2xi32>
    %232 = vector.shape_cast %231 : vector<1x1x2xi32> to vector<1x2xi32>
    %233 = arith.sitofp %232 : vector<1x2xi32> to vector<1x2xf32>
    %234 = vector.shape_cast %15 : vector<5x5xf32> to vector<5x5x1xf32>
    %235 = vector.shape_cast %229 : vector<5x2xf32> to vector<1x5x2xf32>
    %236 = vector.broadcast %234 : vector<5x5x1xf32> to vector<5x5x2xf32>
    %237 = vector.broadcast %235 : vector<1x5x2xf32> to vector<5x5x2xf32>
    %238 = arith.addf %236, %237 : vector<5x5x2xf32>
    %239 = vector.shape_cast %203 : vector<5x2xf32> to vector<5x1x2xf32>
    %240 = vector.broadcast %239 : vector<5x1x2xf32> to vector<5x5x2xf32>
    %241 = arith.addf %240, %238 : vector<5x5x2xf32>
    %cst_83 = arith.constant dense<0xFF800000> : vector<5x2xf32>
    %242 = vector.multi_reduction <maximumf>, %241, %cst_83 [0] : vector<5x5x2xf32> to vector<5x2xf32>
    %243 = vector.shape_cast %242 : vector<5x2xf32> to vector<1x5x2xf32>
    %244 = vector.broadcast %243 : vector<1x5x2xf32> to vector<5x5x2xf32>
    %245 = arith.subf %241, %244 : vector<5x5x2xf32>
    %246 = math.exp %245 : vector<5x5x2xf32>
    %cst_84 = arith.constant dense<0.000000e+00> : vector<5x2xf32>
    %247 = vector.multi_reduction <add>, %246, %cst_84 [0] : vector<5x5x2xf32> to vector<5x2xf32>
    %248 = math.log %247 : vector<5x2xf32>
    %249 = arith.addf %242, %248 : vector<5x2xf32>
    %cst_85 = arith.constant 0.000000e+00 : f32
    %250 = vector.broadcast %cst_85 : f32 to vector<1x2xf32>
    %251 = arith.cmpf ogt, %233, %250 : vector<1x2xf32>
    %252 = vector.shape_cast %251 : vector<1x2xi1> to vector<1x2xi1>
    %253 = vector.broadcast %252 : vector<1x2xi1> to vector<5x2xi1>
    %254 = arith.select %253, %249, %203 : vector<5x2xi1>, vector<5x2xf32>
    %255 = vector.shape_cast %223 : vector<5x2xf32> to vector<5x1x2xf32>
    %256 = vector.broadcast %255 : vector<5x1x2xf32> to vector<5x5x2xf32>
    %257 = arith.addf %256, %238 : vector<5x5x2xf32>
    %cst_86 = arith.constant dense<0xFF800000> : vector<5x2xf32>
    %258 = vector.multi_reduction <maximumf>, %257, %cst_86 [0] : vector<5x5x2xf32> to vector<5x2xf32>
    %259 = vector.shape_cast %258 : vector<5x2xf32> to vector<1x5x2xf32>
    %260 = vector.broadcast %259 : vector<1x5x2xf32> to vector<5x5x2xf32>
    %261 = arith.cmpf oge, %257, %260 : vector<5x5x2xf32>
    %c5_i32_87 = arith.constant 5 : i32
    %262 = vector.shape_cast %121 : vector<5x1x1xi32> to vector<5x1x1xi32>
    %263 = vector.broadcast %262 : vector<5x1x1xi32> to vector<5x5x2xi32>
    %264 = vector.broadcast %c5_i32_87 : i32 to vector<5x5x2xi32>
    %265 = arith.select %261, %263, %264 : vector<5x5x2xi1>, vector<5x5x2xi32>
    %cst_88 = arith.constant dense<2147483647> : vector<5x2xi32>
    %266 = vector.multi_reduction <minsi>, %265, %cst_88 [0] : vector<5x5x2xi32> to vector<5x2xi32>
    %267 = vector.shape_cast %266 : vector<5x2xi32> to vector<1x5x2xi32>
    %268 = arith.index_cast %226 : i32 to index
    %c0_89 = arith.constant 0 : index
    %c0_90 = arith.constant 0 : index
    %269 = vector.load %arg13[%268, %c0_89, %c0_90] : memref<9x5x2xi32, #tpu.memory_space<vmem>>, vector<1x5x2xi32>
    tpu.vector_store %arg13[%268, %c0_89, %c0_90], %267 {strides = array<i32>} : memref<9x5x2xi32, #tpu.memory_space<vmem>>, vector<1x5x2xi32>,
    %cst_91 = arith.constant 0.000000e+00 : f32
    %270 = vector.broadcast %cst_91 : f32 to vector<1x2xf32>
    %271 = arith.cmpf ogt, %233, %270 : vector<1x2xf32>
    %272 = vector.shape_cast %271 : vector<1x2xi1> to vector<1x2xi1>
    %273 = vector.broadcast %272 : vector<1x2xi1> to vector<5x2xi1>
    %274 = arith.select %273, %258, %223 : vector<5x2xi1>, vector<5x2xf32>
    %c8_i32_92 = arith.constant 8 : i32
    %275 = arith.muli %c0_i32_46, %c8_i32_92 : i32
    %c1_i32_93 = arith.constant 1 : i32
    %276 = arith.addi %c1_i32_93, %275 : i32
    %c3_i32 = arith.constant 3 : i32
    %277 = arith.addi %276, %c3_i32 : i32
    %278 = arith.index_cast %277 : i32 to index
    %c0_94 = arith.constant 0 : index
    %c0_95 = arith.constant 0 : index
    %279 = vector.load %arg12[%278, %c0_94, %c0_95] : memref<9x5x2xf32, #tpu.memory_space<vmem>>, vector<1x5x2xf32>
    %280 = vector.shape_cast %279 : vector<1x5x2xf32> to vector<5x2xf32>
    %c0_96 = arith.constant 0 : index
    %281 = arith.index_cast %277 : i32 to index
    %c0_97 = arith.constant 0 : index
    %282 = vector.load %arg4[%c0_96, %281, %c0_97] : memref<1x9x2xi32, #tpu.memory_space<vmem>>, vector<1x1x2xi32>
    %283 = vector.shape_cast %282 : vector<1x1x2xi32> to vector<1x2xi32>
    %284 = arith.sitofp %283 : vector<1x2xi32> to vector<1x2xf32>
    %285 = vector.shape_cast %15 : vector<5x5xf32> to vector<5x5x1xf32>
    %286 = vector.shape_cast %280 : vector<5x2xf32> to vector<1x5x2xf32>
    %287 = vector.broadcast %285 : vector<5x5x1xf32> to vector<5x5x2xf32>
    %288 = vector.broadcast %286 : vector<1x5x2xf32> to vector<5x5x2xf32>
    %289 = arith.addf %287, %288 : vector<5x5x2xf32>
    %290 = vector.shape_cast %254 : vector<5x2xf32> to vector<5x1x2xf32>
    %291 = vector.broadcast %290 : vector<5x1x2xf32> to vector<5x5x2xf32>
    %292 = arith.addf %291, %289 : vector<5x5x2xf32>
    %cst_98 = arith.constant dense<0xFF800000> : vector<5x2xf32>
    %293 = vector.multi_reduction <maximumf>, %292, %cst_98 [0] : vector<5x5x2xf32> to vector<5x2xf32>
    %294 = vector.shape_cast %293 : vector<5x2xf32> to vector<1x5x2xf32>
    %295 = vector.broadcast %294 : vector<1x5x2xf32> to vector<5x5x2xf32>
    %296 = arith.subf %292, %295 : vector<5x5x2xf32>
    %297 = math.exp %296 : vector<5x5x2xf32>
    %cst_99 = arith.constant dense<0.000000e+00> : vector<5x2xf32>
    %298 = vector.multi_reduction <add>, %297, %cst_99 [0] : vector<5x5x2xf32> to vector<5x2xf32>
    %299 = math.log %298 : vector<5x2xf32>
    %300 = arith.addf %293, %299 : vector<5x2xf32>
    %cst_100 = arith.constant 0.000000e+00 : f32
    %301 = vector.broadcast %cst_100 : f32 to vector<1x2xf32>
    %302 = arith.cmpf ogt, %284, %301 : vector<1x2xf32>
    %303 = vector.shape_cast %302 : vector<1x2xi1> to vector<1x2xi1>
    %304 = vector.broadcast %303 : vector<1x2xi1> to vector<5x2xi1>
    %305 = arith.select %304, %300, %254 : vector<5x2xi1>, vector<5x2xf32>
    %306 = vector.shape_cast %274 : vector<5x2xf32> to vector<5x1x2xf32>
    %307 = vector.broadcast %306 : vector<5x1x2xf32> to vector<5x5x2xf32>
    %308 = arith.addf %307, %289 : vector<5x5x2xf32>
    %cst_101 = arith.constant dense<0xFF800000> : vector<5x2xf32>
    %309 = vector.multi_reduction <maximumf>, %308, %cst_101 [0] : vector<5x5x2xf32> to vector<5x2xf32>
    %310 = vector.shape_cast %309 : vector<5x2xf32> to vector<1x5x2xf32>
    %311 = vector.broadcast %310 : vector<1x5x2xf32> to vector<5x5x2xf32>
    %312 = arith.cmpf oge, %308, %311 : vector<5x5x2xf32>
    %c5_i32_102 = arith.constant 5 : i32
    %313 = vector.shape_cast %121 : vector<5x1x1xi32> to vector<5x1x1xi32>
    %314 = vector.broadcast %313 : vector<5x1x1xi32> to vector<5x5x2xi32>
    %315 = vector.broadcast %c5_i32_102 : i32 to vector<5x5x2xi32>
    %316 = arith.select %312, %314, %315 : vector<5x5x2xi1>, vector<5x5x2xi32>
    %cst_103 = arith.constant dense<2147483647> : vector<5x2xi32>
    %317 = vector.multi_reduction <minsi>, %316, %cst_103 [0] : vector<5x5x2xi32> to vector<5x2xi32>
    %318 = vector.shape_cast %317 : vector<5x2xi32> to vector<1x5x2xi32>
    %319 = arith.index_cast %277 : i32 to index
    %c0_104 = arith.constant 0 : index
    %c0_105 = arith.constant 0 : index
    %320 = vector.load %arg13[%319, %c0_104, %c0_105] : memref<9x5x2xi32, #tpu.memory_space<vmem>>, vector<1x5x2xi32>
    tpu.vector_store %arg13[%319, %c0_104, %c0_105], %318 {strides = array<i32>} : memref<9x5x2xi32, #tpu.memory_space<vmem>>, vector<1x5x2xi32>,
    %cst_106 = arith.constant 0.000000e+00 : f32
    %321 = vector.broadcast %cst_106 : f32 to vector<1x2xf32>
    %322 = arith.cmpf ogt, %284, %321 : vector<1x2xf32>
    %323 = vector.shape_cast %322 : vector<1x2xi1> to vector<1x2xi1>
    %324 = vector.broadcast %323 : vector<1x2xi1> to vector<5x2xi1>
    %325 = arith.select %324, %309, %274 : vector<5x2xi1>, vector<5x2xf32>
    %c8_i32_107 = arith.constant 8 : i32
    %326 = arith.muli %c0_i32_46, %c8_i32_107 : i32
    %c1_i32_108 = arith.constant 1 : i32
    %327 = arith.addi %c1_i32_108, %326 : i32
    %c4_i32 = arith.constant 4 : i32
    %328 = arith.addi %327, %c4_i32 : i32
    %329 = arith.index_cast %328 : i32 to index
    %c0_109 = arith.constant 0 : index
    %c0_110 = arith.constant 0 : index
    %330 = vector.load %arg12[%329, %c0_109, %c0_110] : memref<9x5x2xf32, #tpu.memory_space<vmem>>, vector<1x5x2xf32>
    %331 = vector.shape_cast %330 : vector<1x5x2xf32> to vector<5x2xf32>
    %c0_111 = arith.constant 0 : index
    %332 = arith.index_cast %328 : i32 to index
    %c0_112 = arith.constant 0 : index
    %333 = vector.load %arg4[%c0_111, %332, %c0_112] : memref<1x9x2xi32, #tpu.memory_space<vmem>>, vector<1x1x2xi32>
    %334 = vector.shape_cast %333 : vector<1x1x2xi32> to vector<1x2xi32>
    %335 = arith.sitofp %334 : vector<1x2xi32> to vector<1x2xf32>
    %336 = vector.shape_cast %15 : vector<5x5xf32> to vector<5x5x1xf32>
    %337 = vector.shape_cast %331 : vector<5x2xf32> to vector<1x5x2xf32>
    %338 = vector.broadcast %336 : vector<5x5x1xf32> to vector<5x5x2xf32>
    %339 = vector.broadcast %337 : vector<1x5x2xf32> to vector<5x5x2xf32>
    %340 = arith.addf %338, %339 : vector<5x5x2xf32>
    %341 = vector.shape_cast %305 : vector<5x2xf32> to vector<5x1x2xf32>
    %342 = vector.broadcast %341 : vector<5x1x2xf32> to vector<5x5x2xf32>
    %343 = arith.addf %342, %340 : vector<5x5x2xf32>
    %cst_113 = arith.constant dense<0xFF800000> : vector<5x2xf32>
    %344 = vector.multi_reduction <maximumf>, %343, %cst_113 [0] : vector<5x5x2xf32> to vector<5x2xf32>
    %345 = vector.shape_cast %344 : vector<5x2xf32> to vector<1x5x2xf32>
    %346 = vector.broadcast %345 : vector<1x5x2xf32> to vector<5x5x2xf32>
    %347 = arith.subf %343, %346 : vector<5x5x2xf32>
    %348 = math.exp %347 : vector<5x5x2xf32>
    %cst_114 = arith.constant dense<0.000000e+00> : vector<5x2xf32>
    %349 = vector.multi_reduction <add>, %348, %cst_114 [0] : vector<5x5x2xf32> to vector<5x2xf32>
    %350 = math.log %349 : vector<5x2xf32>
    %351 = arith.addf %344, %350 : vector<5x2xf32>
    %cst_115 = arith.constant 0.000000e+00 : f32
    %352 = vector.broadcast %cst_115 : f32 to vector<1x2xf32>
    %353 = arith.cmpf ogt, %335, %352 : vector<1x2xf32>
    %354 = vector.shape_cast %353 : vector<1x2xi1> to vector<1x2xi1>
    %355 = vector.broadcast %354 : vector<1x2xi1> to vector<5x2xi1>
    %356 = arith.select %355, %351, %305 : vector<5x2xi1>, vector<5x2xf32>
    %357 = vector.shape_cast %325 : vector<5x2xf32> to vector<5x1x2xf32>
    %358 = vector.broadcast %357 : vector<5x1x2xf32> to vector<5x5x2xf32>
    %359 = arith.addf %358, %340 : vector<5x5x2xf32>
    %cst_116 = arith.constant dense<0xFF800000> : vector<5x2xf32>
    %360 = vector.multi_reduction <maximumf>, %359, %cst_116 [0] : vector<5x5x2xf32> to vector<5x2xf32>
    %361 = vector.shape_cast %360 : vector<5x2xf32> to vector<1x5x2xf32>
    %362 = vector.broadcast %361 : vector<1x5x2xf32> to vector<5x5x2xf32>
    %363 = arith.cmpf oge, %359, %362 : vector<5x5x2xf32>
    %c5_i32_117 = arith.constant 5 : i32
    %364 = vector.shape_cast %121 : vector<5x1x1xi32> to vector<5x1x1xi32>
    %365 = vector.broadcast %364 : vector<5x1x1xi32> to vector<5x5x2xi32>
    %366 = vector.broadcast %c5_i32_117 : i32 to vector<5x5x2xi32>
    %367 = arith.select %363, %365, %366 : vector<5x5x2xi1>, vector<5x5x2xi32>
    %cst_118 = arith.constant dense<2147483647> : vector<5x2xi32>
    %368 = vector.multi_reduction <minsi>, %367, %cst_118 [0] : vector<5x5x2xi32> to vector<5x2xi32>
    %369 = vector.shape_cast %368 : vector<5x2xi32> to vector<1x5x2xi32>
    %370 = arith.index_cast %328 : i32 to index
    %c0_119 = arith.constant 0 : index
    %c0_120 = arith.constant 0 : index
    %371 = vector.load %arg13[%370, %c0_119, %c0_120] : memref<9x5x2xi32, #tpu.memory_space<vmem>>, vector<1x5x2xi32>
    tpu.vector_store %arg13[%370, %c0_119, %c0_120], %369 {strides = array<i32>} : memref<9x5x2xi32, #tpu.memory_space<vmem>>, vector<1x5x2xi32>,
    %cst_121 = arith.constant 0.000000e+00 : f32
    %372 = vector.broadcast %cst_121 : f32 to vector<1x2xf32>
    %373 = arith.cmpf ogt, %335, %372 : vector<1x2xf32>
    %374 = vector.shape_cast %373 : vector<1x2xi1> to vector<1x2xi1>
    %375 = vector.broadcast %374 : vector<1x2xi1> to vector<5x2xi1>
    %376 = arith.select %375, %360, %325 : vector<5x2xi1>, vector<5x2xf32>
    %c8_i32_122 = arith.constant 8 : i32
    %377 = arith.muli %c0_i32_46, %c8_i32_122 : i32
    %c1_i32_123 = arith.constant 1 : i32
    %378 = arith.addi %c1_i32_123, %377 : i32
    %c5_i32_124 = arith.constant 5 : i32
    %379 = arith.addi %378, %c5_i32_124 : i32
    %380 = arith.index_cast %379 : i32 to index
    %c0_125 = arith.constant 0 : index
    %c0_126 = arith.constant 0 : index
    %381 = vector.load %arg12[%380, %c0_125, %c0_126] : memref<9x5x2xf32, #tpu.memory_space<vmem>>, vector<1x5x2xf32>
    %382 = vector.shape_cast %381 : vector<1x5x2xf32> to vector<5x2xf32>
    %c0_127 = arith.constant 0 : index
    %383 = arith.index_cast %379 : i32 to index
    %c0_128 = arith.constant 0 : index
    %384 = vector.load %arg4[%c0_127, %383, %c0_128] : memref<1x9x2xi32, #tpu.memory_space<vmem>>, vector<1x1x2xi32>
    %385 = vector.shape_cast %384 : vector<1x1x2xi32> to vector<1x2xi32>
    %386 = arith.sitofp %385 : vector<1x2xi32> to vector<1x2xf32>
    %387 = vector.shape_cast %15 : vector<5x5xf32> to vector<5x5x1xf32>
    %388 = vector.shape_cast %382 : vector<5x2xf32> to vector<1x5x2xf32>
    %389 = vector.broadcast %387 : vector<5x5x1xf32> to vector<5x5x2xf32>
    %390 = vector.broadcast %388 : vector<1x5x2xf32> to vector<5x5x2xf32>
    %391 = arith.addf %389, %390 : vector<5x5x2xf32>
    %392 = vector.shape_cast %356 : vector<5x2xf32> to vector<5x1x2xf32>
    %393 = vector.broadcast %392 : vector<5x1x2xf32> to vector<5x5x2xf32>
    %394 = arith.addf %393, %391 : vector<5x5x2xf32>
    %cst_129 = arith.constant dense<0xFF800000> : vector<5x2xf32>
    %395 = vector.multi_reduction <maximumf>, %394, %cst_129 [0] : vector<5x5x2xf32> to vector<5x2xf32>
    %396 = vector.shape_cast %395 : vector<5x2xf32> to vector<1x5x2xf32>
    %397 = vector.broadcast %396 : vector<1x5x2xf32> to vector<5x5x2xf32>
    %398 = arith.subf %394, %397 : vector<5x5x2xf32>
    %399 = math.exp %398 : vector<5x5x2xf32>
    %cst_130 = arith.constant dense<0.000000e+00> : vector<5x2xf32>
    %400 = vector.multi_reduction <add>, %399, %cst_130 [0] : vector<5x5x2xf32> to vector<5x2xf32>
    %401 = math.log %400 : vector<5x2xf32>
    %402 = arith.addf %395, %401 : vector<5x2xf32>
    %cst_131 = arith.constant 0.000000e+00 : f32
    %403 = vector.broadcast %cst_131 : f32 to vector<1x2xf32>
    %404 = arith.cmpf ogt, %386, %403 : vector<1x2xf32>
    %405 = vector.shape_cast %404 : vector<1x2xi1> to vector<1x2xi1>
    %406 = vector.broadcast %405 : vector<1x2xi1> to vector<5x2xi1>
    %407 = arith.select %406, %402, %356 : vector<5x2xi1>, vector<5x2xf32>
    %408 = vector.shape_cast %376 : vector<5x2xf32> to vector<5x1x2xf32>
    %409 = vector.broadcast %408 : vector<5x1x2xf32> to vector<5x5x2xf32>
    %410 = arith.addf %409, %391 : vector<5x5x2xf32>
    %cst_132 = arith.constant dense<0xFF800000> : vector<5x2xf32>
    %411 = vector.multi_reduction <maximumf>, %410, %cst_132 [0] : vector<5x5x2xf32> to vector<5x2xf32>
    %412 = vector.shape_cast %411 : vector<5x2xf32> to vector<1x5x2xf32>
    %413 = vector.broadcast %412 : vector<1x5x2xf32> to vector<5x5x2xf32>
    %414 = arith.cmpf oge, %410, %413 : vector<5x5x2xf32>
    %c5_i32_133 = arith.constant 5 : i32
    %415 = vector.shape_cast %121 : vector<5x1x1xi32> to vector<5x1x1xi32>
    %416 = vector.broadcast %415 : vector<5x1x1xi32> to vector<5x5x2xi32>
    %417 = vector.broadcast %c5_i32_133 : i32 to vector<5x5x2xi32>
    %418 = arith.select %414, %416, %417 : vector<5x5x2xi1>, vector<5x5x2xi32>
    %cst_134 = arith.constant dense<2147483647> : vector<5x2xi32>
    %419 = vector.multi_reduction <minsi>, %418, %cst_134 [0] : vector<5x5x2xi32> to vector<5x2xi32>
    %420 = vector.shape_cast %419 : vector<5x2xi32> to vector<1x5x2xi32>
    %421 = arith.index_cast %379 : i32 to index
    %c0_135 = arith.constant 0 : index
    %c0_136 = arith.constant 0 : index
    %422 = vector.load %arg13[%421, %c0_135, %c0_136] : memref<9x5x2xi32, #tpu.memory_space<vmem>>, vector<1x5x2xi32>
    tpu.vector_store %arg13[%421, %c0_135, %c0_136], %420 {strides = array<i32>} : memref<9x5x2xi32, #tpu.memory_space<vmem>>, vector<1x5x2xi32>,
    %cst_137 = arith.constant 0.000000e+00 : f32
    %423 = vector.broadcast %cst_137 : f32 to vector<1x2xf32>
    %424 = arith.cmpf ogt, %386, %423 : vector<1x2xf32>
    %425 = vector.shape_cast %424 : vector<1x2xi1> to vector<1x2xi1>
    %426 = vector.broadcast %425 : vector<1x2xi1> to vector<5x2xi1>
    %427 = arith.select %426, %411, %376 : vector<5x2xi1>, vector<5x2xf32>
    %c8_i32_138 = arith.constant 8 : i32
    %428 = arith.muli %c0_i32_46, %c8_i32_138 : i32
    %c1_i32_139 = arith.constant 1 : i32
    %429 = arith.addi %c1_i32_139, %428 : i32
    %c6_i32 = arith.constant 6 : i32
    %430 = arith.addi %429, %c6_i32 : i32
    %431 = arith.index_cast %430 : i32 to index
    %c0_140 = arith.constant 0 : index
    %c0_141 = arith.constant 0 : index
    %432 = vector.load %arg12[%431, %c0_140, %c0_141] : memref<9x5x2xf32, #tpu.memory_space<vmem>>, vector<1x5x2xf32>
    %433 = vector.shape_cast %432 : vector<1x5x2xf32> to vector<5x2xf32>
    %c0_142 = arith.constant 0 : index
    %434 = arith.index_cast %430 : i32 to index
    %c0_143 = arith.constant 0 : index
    %435 = vector.load %arg4[%c0_142, %434, %c0_143] : memref<1x9x2xi32, #tpu.memory_space<vmem>>, vector<1x1x2xi32>
    %436 = vector.shape_cast %435 : vector<1x1x2xi32> to vector<1x2xi32>
    %437 = arith.sitofp %436 : vector<1x2xi32> to vector<1x2xf32>
    %438 = vector.shape_cast %15 : vector<5x5xf32> to vector<5x5x1xf32>
    %439 = vector.shape_cast %433 : vector<5x2xf32> to vector<1x5x2xf32>
    %440 = vector.broadcast %438 : vector<5x5x1xf32> to vector<5x5x2xf32>
    %441 = vector.broadcast %439 : vector<1x5x2xf32> to vector<5x5x2xf32>
    %442 = arith.addf %440, %441 : vector<5x5x2xf32>
    %443 = vector.shape_cast %407 : vector<5x2xf32> to vector<5x1x2xf32>
    %444 = vector.broadcast %443 : vector<5x1x2xf32> to vector<5x5x2xf32>
    %445 = arith.addf %444, %442 : vector<5x5x2xf32>
    %cst_144 = arith.constant dense<0xFF800000> : vector<5x2xf32>
    %446 = vector.multi_reduction <maximumf>, %445, %cst_144 [0] : vector<5x5x2xf32> to vector<5x2xf32>
    %447 = vector.shape_cast %446 : vector<5x2xf32> to vector<1x5x2xf32>
    %448 = vector.broadcast %447 : vector<1x5x2xf32> to vector<5x5x2xf32>
    %449 = arith.subf %445, %448 : vector<5x5x2xf32>
    %450 = math.exp %449 : vector<5x5x2xf32>
    %cst_145 = arith.constant dense<0.000000e+00> : vector<5x2xf32>
    %451 = vector.multi_reduction <add>, %450, %cst_145 [0] : vector<5x5x2xf32> to vector<5x2xf32>
    %452 = math.log %451 : vector<5x2xf32>
    %453 = arith.addf %446, %452 : vector<5x2xf32>
    %cst_146 = arith.constant 0.000000e+00 : f32
    %454 = vector.broadcast %cst_146 : f32 to vector<1x2xf32>
    %455 = arith.cmpf ogt, %437, %454 : vector<1x2xf32>
    %456 = vector.shape_cast %455 : vector<1x2xi1> to vector<1x2xi1>
    %457 = vector.broadcast %456 : vector<1x2xi1> to vector<5x2xi1>
    %458 = arith.select %457, %453, %407 : vector<5x2xi1>, vector<5x2xf32>
    %459 = vector.shape_cast %427 : vector<5x2xf32> to vector<5x1x2xf32>
    %460 = vector.broadcast %459 : vector<5x1x2xf32> to vector<5x5x2xf32>
    %461 = arith.addf %460, %442 : vector<5x5x2xf32>
    %cst_147 = arith.constant dense<0xFF800000> : vector<5x2xf32>
    %462 = vector.multi_reduction <maximumf>, %461, %cst_147 [0] : vector<5x5x2xf32> to vector<5x2xf32>
    %463 = vector.shape_cast %462 : vector<5x2xf32> to vector<1x5x2xf32>
    %464 = vector.broadcast %463 : vector<1x5x2xf32> to vector<5x5x2xf32>
    %465 = arith.cmpf oge, %461, %464 : vector<5x5x2xf32>
    %c5_i32_148 = arith.constant 5 : i32
    %466 = vector.shape_cast %121 : vector<5x1x1xi32> to vector<5x1x1xi32>
    %467 = vector.broadcast %466 : vector<5x1x1xi32> to vector<5x5x2xi32>
    %468 = vector.broadcast %c5_i32_148 : i32 to vector<5x5x2xi32>
    %469 = arith.select %465, %467, %468 : vector<5x5x2xi1>, vector<5x5x2xi32>
    %cst_149 = arith.constant dense<2147483647> : vector<5x2xi32>
    %470 = vector.multi_reduction <minsi>, %469, %cst_149 [0] : vector<5x5x2xi32> to vector<5x2xi32>
    %471 = vector.shape_cast %470 : vector<5x2xi32> to vector<1x5x2xi32>
    %472 = arith.index_cast %430 : i32 to index
    %c0_150 = arith.constant 0 : index
    %c0_151 = arith.constant 0 : index
    %473 = vector.load %arg13[%472, %c0_150, %c0_151] : memref<9x5x2xi32, #tpu.memory_space<vmem>>, vector<1x5x2xi32>
    tpu.vector_store %arg13[%472, %c0_150, %c0_151], %471 {strides = array<i32>} : memref<9x5x2xi32, #tpu.memory_space<vmem>>, vector<1x5x2xi32>,
    %cst_152 = arith.constant 0.000000e+00 : f32
    %474 = vector.broadcast %cst_152 : f32 to vector<1x2xf32>
    %475 = arith.cmpf ogt, %437, %474 : vector<1x2xf32>
    %476 = vector.shape_cast %475 : vector<1x2xi1> to vector<1x2xi1>
    %477 = vector.broadcast %476 : vector<1x2xi1> to vector<5x2xi1>
    %478 = arith.select %477, %462, %427 : vector<5x2xi1>, vector<5x2xf32>
    %c8_i32_153 = arith.constant 8 : i32
    %479 = arith.muli %c0_i32_46, %c8_i32_153 : i32
    %c1_i32_154 = arith.constant 1 : i32
    %480 = arith.addi %c1_i32_154, %479 : i32
    %c7_i32 = arith.constant 7 : i32
    %481 = arith.addi %480, %c7_i32 : i32
    %482 = arith.index_cast %481 : i32 to index
    %c0_155 = arith.constant 0 : index
    %c0_156 = arith.constant 0 : index
    %483 = vector.load %arg12[%482, %c0_155, %c0_156] : memref<9x5x2xf32, #tpu.memory_space<vmem>>, vector<1x5x2xf32>
    %484 = vector.shape_cast %483 : vector<1x5x2xf32> to vector<5x2xf32>
    %c0_157 = arith.constant 0 : index
    %485 = arith.index_cast %481 : i32 to index
    %c0_158 = arith.constant 0 : index
    %486 = vector.load %arg4[%c0_157, %485, %c0_158] : memref<1x9x2xi32, #tpu.memory_space<vmem>>, vector<1x1x2xi32>
    %487 = vector.shape_cast %486 : vector<1x1x2xi32> to vector<1x2xi32>
    %488 = arith.sitofp %487 : vector<1x2xi32> to vector<1x2xf32>
    %489 = vector.shape_cast %15 : vector<5x5xf32> to vector<5x5x1xf32>
    %490 = vector.shape_cast %484 : vector<5x2xf32> to vector<1x5x2xf32>
    %491 = vector.broadcast %489 : vector<5x5x1xf32> to vector<5x5x2xf32>
    %492 = vector.broadcast %490 : vector<1x5x2xf32> to vector<5x5x2xf32>
    %493 = arith.addf %491, %492 : vector<5x5x2xf32>
    %494 = vector.shape_cast %458 : vector<5x2xf32> to vector<5x1x2xf32>
    %495 = vector.broadcast %494 : vector<5x1x2xf32> to vector<5x5x2xf32>
    %496 = arith.addf %495, %493 : vector<5x5x2xf32>
    %cst_159 = arith.constant dense<0xFF800000> : vector<5x2xf32>
    %497 = vector.multi_reduction <maximumf>, %496, %cst_159 [0] : vector<5x5x2xf32> to vector<5x2xf32>
    %498 = vector.shape_cast %497 : vector<5x2xf32> to vector<1x5x2xf32>
    %499 = vector.broadcast %498 : vector<1x5x2xf32> to vector<5x5x2xf32>
    %500 = arith.subf %496, %499 : vector<5x5x2xf32>
    %501 = math.exp %500 : vector<5x5x2xf32>
    %cst_160 = arith.constant dense<0.000000e+00> : vector<5x2xf32>
    %502 = vector.multi_reduction <add>, %501, %cst_160 [0] : vector<5x5x2xf32> to vector<5x2xf32>
    %503 = math.log %502 : vector<5x2xf32>
    %504 = arith.addf %497, %503 : vector<5x2xf32>
    %cst_161 = arith.constant 0.000000e+00 : f32
    %505 = vector.broadcast %cst_161 : f32 to vector<1x2xf32>
    %506 = arith.cmpf ogt, %488, %505 : vector<1x2xf32>
    %507 = vector.shape_cast %506 : vector<1x2xi1> to vector<1x2xi1>
    %508 = vector.broadcast %507 : vector<1x2xi1> to vector<5x2xi1>
    %509 = arith.select %508, %504, %458 : vector<5x2xi1>, vector<5x2xf32>
    %510 = vector.shape_cast %478 : vector<5x2xf32> to vector<5x1x2xf32>
    %511 = vector.broadcast %510 : vector<5x1x2xf32> to vector<5x5x2xf32>
    %512 = arith.addf %511, %493 : vector<5x5x2xf32>
    %cst_162 = arith.constant dense<0xFF800000> : vector<5x2xf32>
    %513 = vector.multi_reduction <maximumf>, %512, %cst_162 [0] : vector<5x5x2xf32> to vector<5x2xf32>
    %514 = vector.shape_cast %513 : vector<5x2xf32> to vector<1x5x2xf32>
    %515 = vector.broadcast %514 : vector<1x5x2xf32> to vector<5x5x2xf32>
    %516 = arith.cmpf oge, %512, %515 : vector<5x5x2xf32>
    %c5_i32_163 = arith.constant 5 : i32
    %517 = vector.shape_cast %121 : vector<5x1x1xi32> to vector<5x1x1xi32>
    %518 = vector.broadcast %517 : vector<5x1x1xi32> to vector<5x5x2xi32>
    %519 = vector.broadcast %c5_i32_163 : i32 to vector<5x5x2xi32>
    %520 = arith.select %516, %518, %519 : vector<5x5x2xi1>, vector<5x5x2xi32>
    %cst_164 = arith.constant dense<2147483647> : vector<5x2xi32>
    %521 = vector.multi_reduction <minsi>, %520, %cst_164 [0] : vector<5x5x2xi32> to vector<5x2xi32>
    %522 = vector.shape_cast %521 : vector<5x2xi32> to vector<1x5x2xi32>
    %523 = arith.index_cast %481 : i32 to index
    %c0_165 = arith.constant 0 : index
    %c0_166 = arith.constant 0 : index
    %524 = vector.load %arg13[%523, %c0_165, %c0_166] : memref<9x5x2xi32, #tpu.memory_space<vmem>>, vector<1x5x2xi32>
    tpu.vector_store %arg13[%523, %c0_165, %c0_166], %522 {strides = array<i32>} : memref<9x5x2xi32, #tpu.memory_space<vmem>>, vector<1x5x2xi32>,
    %cst_167 = arith.constant 0.000000e+00 : f32
    %525 = vector.broadcast %cst_167 : f32 to vector<1x2xf32>
    %526 = arith.cmpf ogt, %488, %525 : vector<1x2xf32>
    %527 = vector.shape_cast %526 : vector<1x2xi1> to vector<1x2xi1>
    %528 = vector.broadcast %527 : vector<1x2xi1> to vector<5x2xi1>
    %529 = arith.select %528, %513, %478 : vector<5x2xi1>, vector<5x2xf32>
    %c1_i32_168 = arith.constant 1 : i32
    %530 = vector.broadcast %17 : vector<5x1xf32> to vector<5x2xf32>
    %531 = arith.addf %509, %530 : vector<5x2xf32>
    %cst_169 = arith.constant dense<0xFF800000> : vector<2xf32>
    %532 = vector.multi_reduction <maximumf>, %531, %cst_169 [0] : vector<5x2xf32> to vector<2xf32>
    %533 = vector.shape_cast %532 : vector<2xf32> to vector<1x2xf32>
    %534 = vector.broadcast %533 : vector<1x2xf32> to vector<5x2xf32>
    %535 = arith.subf %531, %534 : vector<5x2xf32>
    %536 = math.exp %535 : vector<5x2xf32>
    %cst_170 = arith.constant dense<0.000000e+00> : vector<2xf32>
    %537 = vector.multi_reduction <add>, %536, %cst_170 [0] : vector<5x2xf32> to vector<2xf32>
    %538 = vector.shape_cast %537 : vector<2xf32> to vector<1x2xf32>
    %539 = math.log %538 : vector<1x2xf32>
    %540 = arith.addf %533, %539 : vector<1x2xf32>
    %541 = arith.subf %112, %540 : vector<1x2xf32>
    %542 = vector.shape_cast %541 : vector<1x2xf32> to vector<1x1x2xf32>
    %cst_171 = arith.constant dense<0.000000e+00> : vector<1xf32>
    %543 = vector.multi_reduction <add>, %542, %cst_171 [1, 2] : vector<1x1x2xf32> to vector<1xf32>
    %544 = vector.shape_cast %543 : vector<1xf32> to vector<1x1x1xf32>
    %545 = vector.extract %544[0, 0, 0] : f32 from vector<1x1x1xf32>
    %cst_172 = arith.constant 0.000000e+00 : f32
    %546 = arith.subf %cst_172, %545 : f32
    %547 = vector.broadcast %546 : f32 to vector<1x1xf32>
    %c0_173 = arith.constant 0 : index
    %c0_174 = arith.constant 0 : index
    %c0_175 = arith.constant 0 : index
    %548 = vector.load %arg9[%c0_173, %c0_174, %c0_175] : memref<1x1x1xf32, #tpu.memory_space<vmem>>, vector<1x1x1xf32>
    %549 = vector.shape_cast %548 : vector<1x1x1xf32> to vector<1x1xf32>
    %550 = vector.shape_cast %547 : vector<1x1xf32> to vector<1x1x1xf32>
    tpu.vector_store %arg9[%c0_173, %c0_174, %c0_175], %550 {strides = array<i32>} : memref<1x1x1xf32, #tpu.memory_space<vmem>>, vector<1x1x1xf32>,
    %551 = vector.broadcast %17 : vector<5x1xf32> to vector<5x2xf32>
    %552 = arith.addf %529, %551 : vector<5x2xf32>
    %cst_176 = arith.constant dense<0xFF800000> : vector<2xf32>
    %553 = vector.multi_reduction <maximumf>, %552, %cst_176 [0] : vector<5x2xf32> to vector<2xf32>
    %554 = vector.shape_cast %553 : vector<2xf32> to vector<1x2xf32>
    %555 = tpu.iota {dimensions = array<i32: 0>} : vector<5x2xi32>
    %556 = vector.broadcast %554 : vector<1x2xf32> to vector<5x2xf32>
    %557 = arith.cmpf oge, %552, %556 : vector<5x2xf32>
    %c5_i32_177 = arith.constant 5 : i32
    %558 = vector.broadcast %c5_i32_177 : i32 to vector<5x2xi32>
    %559 = arith.select %557, %555, %558 : vector<5x2xi1>, vector<5x2xi32>
    %cst_178 = arith.constant dense<2147483647> : vector<2xi32>
    %560 = vector.multi_reduction <minsi>, %559, %cst_178 [0] : vector<5x2xi32> to vector<2xi32>
    %561 = vector.shape_cast %560 : vector<2xi32> to vector<1x2xi32>
    %c0_i32_179 = arith.constant 0 : i32
    %c9_i32_180 = arith.constant 9 : i32
    %562 = arith.addi %c0_i32_179, %c9_i32_180 : i32
    %c1_i32_181 = arith.constant 1 : i32
    %563 = scf.for %arg14 = %c0_i32_179 to %562 step %c1_i32_181 iter_args(%arg15 = %561) -> (vector<1x2xi32>)  : i32 {
      %c8_i32_183 = arith.constant 8 : i32
      %564 = arith.subi %c8_i32_183, %arg14 : i32
      %565 = vector.broadcast %564 : i32 to vector<1x2xi32>
      %566 = arith.cmpi eq, %565, %96 : vector<1x2xi32>
      %567 = arith.select %566, %561, %arg15 : vector<1x2xi1>, vector<1x2xi32>
      %568 = vector.broadcast %564 : i32 to vector<1x2xi32>
      %569 = arith.cmpi sle, %568, %96 : vector<1x2xi32>
      %c0_i32_184 = arith.constant 0 : i32
      %570 = vector.broadcast %c0_i32_184 : i32 to vector<1x2xi32>
      %571 = arith.select %569, %567, %570 : vector<1x2xi1>, vector<1x2xi32>
      %c0_185 = arith.constant 0 : index
      %572 = arith.index_cast %564 : i32 to index
      %c0_186 = arith.constant 0 : index
      %573 = vector.load %arg10[%c0_185, %572, %c0_186] : memref<1x9x2xi32, #tpu.memory_space<vmem>>, vector<1x1x2xi32>
      %574 = vector.shape_cast %573 : vector<1x1x2xi32> to vector<1x2xi32>
      %575 = vector.shape_cast %571 : vector<1x2xi32> to vector<1x1x2xi32>
      tpu.vector_store %arg10[%c0_185, %572, %c0_186], %575 {strides = array<i32>} : memref<1x9x2xi32, #tpu.memory_space<vmem>>, vector<1x1x2xi32>,
      %576 = arith.index_cast %564 : i32 to index
      %c0_187 = arith.constant 0 : index
      %c0_188 = arith.constant 0 : index
      %577 = vector.load %arg13[%576, %c0_187, %c0_188] : memref<9x5x2xi32, #tpu.memory_space<vmem>>, vector<1x5x2xi32>
      %578 = vector.shape_cast %577 : vector<1x5x2xi32> to vector<5x2xi32>
      %579 = vector.broadcast %567 : vector<1x2xi32> to vector<5x2xi32>
      %580 = arith.cmpi eq, %555, %579 : vector<5x2xi32>
      %c0_i32_189 = arith.constant 0 : i32
      %581 = vector.broadcast %c0_i32_189 : i32 to vector<5x2xi32>
      %582 = arith.select %580, %578, %581 : vector<5x2xi1>, vector<5x2xi32>
      %cst_190 = arith.constant dense<0> : vector<2xi32>
      %583 = vector.multi_reduction <add>, %582, %cst_190 [0] : vector<5x2xi32> to vector<2xi32>
      %584 = vector.shape_cast %583 : vector<2xi32> to vector<1x2xi32>
      %c1_i32_191 = arith.constant 1 : i32
      %585 = arith.cmpi sge, %564, %c1_i32_191 : i32
      %586 = vector.broadcast %564 : i32 to vector<1x2xi32>
      %587 = arith.cmpi sle, %586, %96 : vector<1x2xi32>
      %588 = vector.broadcast %585 : i1 to vector<1x2xi1>
      %589 = arith.andi %588, %587 : vector<1x2xi1>
      %590 = arith.select %589, %584, %567 : vector<1x2xi1>, vector<1x2xi32>
      scf.yield %590 : vector<1x2xi32>
    }
    %c9_i32_182 = arith.constant 9 : i32
    return
  }
  func.func @transform_0(%arg0: i32) -> (i32, i32, i32) {
    %c0_i32 = arith.constant 0 : i32
    %c0_i32_0 = arith.constant 0 : i32
    %c0_i32_1 = arith.constant 0 : i32
    return %arg0, %c0_i32, %c0_i32_0 : i32, i32, i32
  }
  func.func @transform_1(%arg0: i32) -> (i32, i32) {
    %c0_i32 = arith.constant 0 : i32
    %c0_i32_0 = arith.constant 0 : i32
    %c0_i32_1 = arith.constant 0 : i32
    return %c0_i32, %c0_i32_0 : i32, i32
  }
  func.func @transform_2(%arg0: i32) -> (i32, i32) {
    %c0_i32 = arith.constant 0 : i32
    %c0_i32_0 = arith.constant 0 : i32
    %c0_i32_1 = arith.constant 0 : i32
    return %c0_i32, %c0_i32_0 : i32, i32
  }
  func.func @transform_3(%arg0: i32) -> (i32, i32, i32) {
    %c0_i32 = arith.constant 0 : i32
    %c0_i32_0 = arith.constant 0 : i32
    %c0_i32_1 = arith.constant 0 : i32
    return %arg0, %c0_i32, %c0_i32_0 : i32, i32, i32
  }
  func.func @transform_4(%arg0: i32) -> (i32, i32, i32) {
    %c0_i32 = arith.constant 0 : i32
    %c0_i32_0 = arith.constant 0 : i32
    %c0_i32_1 = arith.constant 0 : i32
    return %arg0, %c0_i32, %c0_i32_0 : i32, i32, i32
  }
  func.func @transform_5(%arg0: i32) -> (i32, i32) {
    %c0_i32 = arith.constant 0 : i32
    %c0_i32_0 = arith.constant 0 : i32
    %c0_i32_1 = arith.constant 0 : i32
    return %c0_i32, %c0_i32_0 : i32, i32
  }
  func.func @transform_6(%arg0: i32) -> (i32, i32) {
    %c0_i32 = arith.constant 0 : i32
    %c0_i32_0 = arith.constant 0 : i32
    %c0_i32_1 = arith.constant 0 : i32
    return %c0_i32, %c0_i32_0 : i32, i32
  }
  func.func @transform_7(%arg0: i32) -> (i32, i32) {
    %c0_i32 = arith.constant 0 : i32
    %c0_i32_0 = arith.constant 0 : i32
    %c0_i32_1 = arith.constant 0 : i32
    return %c0_i32, %c0_i32_0 : i32, i32
  }
  func.func @transform_8(%arg0: i32) -> (i32, i32, i32) {
    %c0_i32 = arith.constant 0 : i32
    %c0_i32_0 = arith.constant 0 : i32
    %c0_i32_1 = arith.constant 0 : i32
    return %arg0, %c0_i32, %c0_i32_0 : i32, i32, i32
  }
  func.func @transform_9(%arg0: i32) -> (i32, i32, i32) {
    %c0_i32 = arith.constant 0 : i32
    %c0_i32_0 = arith.constant 0 : i32
    %c0_i32_1 = arith.constant 0 : i32
    return %arg0, %c0_i32, %c0_i32_0 : i32, i32, i32
  }
}

</mosaic_0001>

<bundles_post_ra>
// kernel: tpu_custom_call.1
= control target key start
LH: loop header
LB: loop body
LE: loop exit
PB: predicated region body
PF: predicated region fallthrough
CT: control target
= control target key end

     0   :  { %s4303_s30 = smov 0   ;;  %s5892_s0 = inlined_call_operand.vmem [shape: bf16[4,9,32], index: 0, kind: input, shape index: {}]   ;;  %s5893_s1 = inlined_call_operand.vmem [shape: bf16[32,5], index: 1, kind: input, shape index: {}]   ;;  %s5894_s2 = inlined_call_operand.vmem [shape: f32[1,5], index: 2, kind: input, shape index: {}]   ;;  %s5895_s3 = inlined_call_operand.vmem [shape: s32[2,9,2], index: 3, kind: input, shape index: {}]   ;;  %s5896_s4 = inlined_call_operand.vmem [shape: s32[2,9,2], index: 4, kind: input, shape index: {}]   ;;  %s5897_s5 = inlined_call_operand.vmem [shape: f32[5,1], index: 5, kind: input, shape index: {}]   ;;  %s5898_s6 = inlined_call_operand.vmem [shape: f32[5,1], index: 6, kind: input, shape index: {}]   ;;  %s5899_s7 = inlined_call_operand.vmem [shape: f32[5,5], index: 7, kind: input, shape index: {}]   ;;  %s5900_s8 = inlined_call_operand.vmem [shape: f32[2,1,1], index: 8, kind: output, shape index: {0}]   ;;  %s5901_s9 = inlined_call_operand.vmem [shape: s32[2,9,2], index: 9, kind: output, shape index: {1}]  }
   0x1 LB: > { %s4309_s10 = sadd.s32 4294967295, %s4233_s30   ;;  %p4001_p0 = scmp.ge.s32.totalorder %s4233_s30, 1  ;;  %s4233_s30 = sphi %s4303_s30, %s20_s30  }
   0x2   : > { %p312_p1 = scmp.lt.s32.totalorder %s4233_s30, 3 }
   0x4   : > { %p313_p2 = pnand %p4001_p0, %p312_p1 }
   0x6   : > { %316 = sbr.rel (%p313_p2) target bundleno = 1271 (0x4f7), region = 52 }
   0xd   : > { %p369_p3 = scmp.lt.s32.totalorder %s4309_s10, 1  ;;  %v4111_v0 = vld [vmem:[%s5893_s1] sm:$0xff]   ;;  %v407_v1 = vlaneseq  ;;  %v4112_v2 = vld [vmem:[%s5893_s1 + $0x8] sm:$0xff]   ;;  %s4002_s15 = sshll.u32 %s4309_s10, 1  ;;  %v4247_v5 = vmov 1966171168  }
   0xe   : > { %4058 = vmatprep.subr.bf16.mxu0 %v4111_v0  ;;  %p4326_p4 = scmp.lt.s32.totalorder %s4002_s15, 3  ;;  %v405_v6 = vunpack.c.l.s4 %v4247_v5  ;;  %v5902_v7 = vmov 0.0   ;;  %vm585_vm1 = vcmask 261120   ;;  %v4015_v49 = vld [vmem:[%s5894_s2] ss:$0 sm:$0xff]  ;;  %vm895_vm2 = vcmask 32768  }
   0xf   : > { %s6083_s10 = smov (!%p369_p3, %s4309_s10), 1  ;;  %v4324_v3 = vshrl.u32 %v407_v1, 7  ;;  %v902_v4 = vand.u32 127, %v407_v1  ;;  %4059 = vmatpush3.bf16.msra.mxu0 %v4111_v0  ;;  %vm893_vm3 = vcmask 39936   ;;  %s4235_s18 = smov 0  }
  0x10   : > { %s4331_s17 = sshll.u32 %s6083_s10, 4  ;;  %s381_s20 = scalar_lea.vmem %s5900_s8, %s6083_s10  ;;  %4060 = vmatprep.subr.bf16.mxu0 %v4112_v2  ;;  %v406_v9 = vunpack.c.0.s8 %v405_v6 }
  0x11   : > { %5951 = vst [vmem:[#allocation5_spill] sm:$0xff] %v4324_v3  ;;  %vm903_vm0 = vcmp.eq.s32.totalorder %v4324_v3, %v902_v4  ;;  %s4342_s23 = scalar_lea.vmem %s5895_s3, %s4331_s17  ;;  %s4348_s26 = scalar_lea.vmem %s5896_s4, %s4331_s17 }
  0x12   : > { %v4351_v8 = vsel %vm903_vm0, 1.0, %v5902_v7  ;;  %s386_s29 = scalar_lea.vmem %s5901_s9, %s4331_s17  ;;  %s6085_s15 = smov (!%p4326_p4, %s4002_s15), 3  ;;  %v4363_v10 = vsub.s32 %v406_v9, %v4324_v3 }
  0x13   : > { %4061 = vmatpush3.bf16.msra.mxu0 %v4112_v2  ;;  %s4048_s11 = sshll.u32 %s6085_s15, 3 }
  0x14   : > { %s367_s14 = scalar_lea.vmem %s5892_s0, %s4048_s11  ;;  %5953 = vst [vmem:[#allocation6_spill] sm:$0xff] %v4363_v10 }
  0x15   : > { %v4011_v11 = vld.sshfl [vmem:[%s367_s14] sm:$0x33 pattern:$0x75316420] }
  0x16   : > { %v4012_v12 = vld.sshfl [vmem:[%s367_s14 + $0x4] sm:$0x1 pattern:$0x75316420]  ;;  %v403_v13 = vcombine.high %v4011_v11, %v4011_v11  ;;  %v410_v15 = vrot.slane %v4011_v11, %v4363_v10 }
  0x17   : > { %v4013_v14 = vld.sshfl [vmem:[%s367_s14 + $0x8] sm:$0x33 pattern:$0x75316420]  ;;  %v433_v16 = vrot.slane %v4012_v12, %v4363_v10 }
  0x18   : > { %v417_v17 = vrot.slane %v403_v13, %v4363_v10  ;;  %v441_v18 = vcombine.high %v4013_v14, %v4013_v14  ;;  %v448_v19 = vrot.slane %v4013_v14, %v4363_v10  ;;  %v4014_v20 = vld.sshfl [vmem:[%s367_s14 + $0xc] sm:$0x1 pattern:$0x75316420] }
  0x19   : > { %v471_v27 = vrot.slane %v4014_v20, %v4363_v10 }
  0x1a   : > { %v455_v21 = vrot.slane %v441_v18, %v4363_v10  ;;  %v456_v22 = vcombine.high %v448_v19, %v448_v19  ;;  %v482_v23 = vunpack.i.h.s16 %v448_v19  ;;  %v4016_v24 = vpack.i.b16 %v448_v19, %v433_v16 }
  0x1b   : > { %v510_v25 = vcombine.low %v410_v15, %v417_v17  ;;  %v4021_v26 = vcombine.high %v410_v15, %v417_v17 }
  0x1c   : > { %v457_v28 = vcombine.high %v455_v21, %v455_v21  ;;  %v484_v29 = vunpack.i.h.s16 %v455_v21  ;;  %v486_v30 = vunpack.i.h.s16 %v456_v22  ;;  %v4017_v31 = vpack.i.b16 %v455_v21, %v482_v23 }
  0x1d   : > { %v520_v32 = vrot.slane %v510_v25, %v4363_v10  ;;  %v527_v33 = vrot.slane %v4021_v26, %v4363_v10 }
  0x1e   : > { %v4018_v34 = vpack.i.b16 %v456_v22, %v484_v29  ;;  %v4019_v35 = vpack.i.b16 %v457_v28, %v486_v30  ;;  %v512_v36 = vcombine.low %v4016_v24, %v4017_v31  ;;  %v488_v37 = vunpack.i.h.s16 %v457_v28 }
  0x1f   : > { %v542_v40 = vcombine.low %v520_v32, %v527_v33 }
  0x20   : > { %v513_v38 = vcombine.low %v4018_v34, %v4019_v35  ;;  %v534_v39 = vrot.slane %v512_v36, %v4363_v10  ;;  %v4020_v41 = vpack.i.b16 %v471_v27, %v488_v37 }
  0x21   : > { %v550_v45 = vrot.slane %v542_v40, %v4363_v10 }
  0x22   : > { %v541_v42 = vrot.slane %v513_v38, %v4363_v10  ;;  %v565_v43 = vrot.slane %v4020_v41, %v4363_v10 }
  0x24   : > { %v543_v44 = vcombine.low %v534_v39, %v541_v42  ;;  %v572_v47 = vrot.slane %v565_v43, %v4363_v10 }
  0x26   : > { %v557_v46 = vrot.slane %v543_v44, %v4363_v10 }
  0x28   : > { %v558_v48 = vcombine.low %v550_v45, %v557_v46 }
  0x2a   : > { %4062 = vmatprep.mubr.msk.bf16.mxu0 %vm585_vm1, %v558_v48 }
  0x2b   : > { %4063 = vmatmul.mubr.msk.bf16.vlgmr.msra.gmra.mrb[0].mxu0 %vm585_vm1, %v572_v47 }
  0xfe   : > { %v4064_v50 = vpop.f32.mrb[0].mxu0 }
  0xff   : > { %v635_v51 = vadd.f32 %v4064_v50, %v4015_v49  ;;  %v626_v52 = vpop.f32.mrb[1].mxu0 }
 0x100   : > { %v627_v53 = vadd.f32 %v4015_v49, %v626_v52  ;;  %v4065_v54 = vpop.f32.mrb[2].mxu0 }
 0x101   : > { %v747_v55 = vrot.slane %v635_v51, %v4363_v10  ;;  %v629_v56 = vpop.f32.mrb[3].mxu0 }
 0x102   : > { %v643_v57 = vcombine.high %v627_v53, %v627_v53  ;;  %v650_v58 = vrot.slane %v627_v53, %v4363_v10  ;;  %v630_v59 = vadd.f32 %v4015_v49, %v629_v56 }
 0x103   : > { %v748_v60 = vcombine.high %v747_v55, %v747_v55  ;;  %v755_v0 = vrot.slane %v747_v55, %v4363_v10 }
 0x104   : > { %v657_v61 = vrot.slane %v643_v57, %v4363_v10  ;;  %v658_v62 = vcombine.high %v650_v58, %v650_v58  ;;  %v692_v63 = vcombine.high %v630_v59, %v630_v59  ;;  %v699_v2 = vrot.slane %v630_v59, %v4363_v10 }
 0x105   : > { %v762_v1 = vrot.slane %v748_v60, %v4363_v10  ;;  %v666_v5 = vrot.slane %v650_v58, %v4363_v10 }
 0x106   : > { %v659_v4 = vcombine.high %v657_v61, %v657_v61  ;;  %v680_v6 = vrot.slane %v658_v62, %v4363_v10  ;;  %v706_v9 = vrot.slane %v692_v63, %v4363_v10  ;;  %v673_v12 = vrot.slane %v657_v61, %v4363_v10 }
 0x107   : > { %v881_v11 = vrot.slane %v762_v1, %v4363_v10  ;;  %v707_v13 = vcombine.high %v699_v2, %v699_v2  ;;  %v715_v14 = vrot.slane %v699_v2, %v4363_v10 }
 0x108   : > { %v687_v15 = vrot.slane %v659_v4, %v4363_v10  ;;  %v763_v16 = vcombine.low %v666_v5, %v680_v6  ;;  %v4026_v17 = vcombine.high %v666_v5, %v680_v6  ;;  %v708_v18 = vcombine.high %v706_v9, %v706_v9 }
 0x109   : > { %v888_v19 = vrot.slane %v881_v11, %v4363_v10  ;;  %v722_v20 = vrot.slane %v706_v9, %v4363_v10  ;;  %v729_v21 = vrot.slane %v707_v13, %v4363_v10  ;;  %v737_v22 = vcombine.high %v715_v14, %v715_v14 }
 0x10a   : > { %v765_v23 = vcombine.low %v673_v12, %v687_v15  ;;  %v4027_v24 = vcombine.high %v673_v12, %v687_v15  ;;  %v773_v25 = vrot.slane %v763_v16, %v4363_v10  ;;  %v780_v26 = vrot.slane %v4026_v17, %v4363_v10 }
 0x10b   : > { %v736_v27 = vrot.slane %v708_v18, %v4363_v10  ;;  %v738_v28 = vcombine.high %v722_v20, %v722_v20  ;;  %v739_v29 = vcombine.high %v729_v21, %v729_v21  ;;  %v818_v30 = vrot.slane %v715_v14, %v4363_v10  ;;  %898 = vst.msk [vmem:[#allocation2 + $0x18] sm:$0x1] %vm895_vm2, %v888_v19 }
 0x10c   : > { %v787_v31 = vrot.slane %v765_v23, %v4363_v10  ;;  %v794_v32 = vrot.slane %v4027_v24, %v4363_v10  ;;  %v795_v33 = vcombine.low %v773_v25, %v780_v26  ;;  %v826_v34 = vcombine.low %v729_v21, %v737_v22 }
 0x10d   : > { %v740_v35 = vcombine.high %v736_v27, %v736_v27  ;;  %v825_v36 = vrot.slane %v818_v30, %v4363_v10  ;;  %v827_v37 = vcombine.low %v739_v29, %v722_v20  ;;  %v828_v38 = vcombine.low %v736_v27, %v738_v28 }
 0x10e   : > { %v796_v39 = vcombine.low %v787_v31, %v794_v32  ;;  %v836_v41 = vrot.slane %v826_v34, %v4363_v10  ;;  %v803_v43 = vrot.slane %v795_v33, %v4363_v10 }
 0x10f   : > { %v829_v40 = vcombine.low %v740_v35, %v755_v0  ;;  %v843_v42 = vrot.slane %v827_v37, %v4363_v10  ;;  %896 = vst.msk [vmem:[#allocation2 + $0x8] sm:$0x1] %vm895_vm2, %v825_v36  ;;  %v850_v45 = vrot.slane %v828_v38, %v4363_v10 }
 0x110   : > { %v810_v44 = vrot.slane %v796_v39, %v4363_v10 }
 0x111   : > { %v857_v46 = vrot.slane %v829_v40, %v4363_v10  ;;  %v858_v47 = vcombine.low %v836_v41, %v843_v42 }
 0x112   : > { %v811_v48 = vcombine.low %v803_v43, %v810_v44 }
 0x113   : > { %v859_v49 = vcombine.low %v850_v45, %v857_v46  ;;  %v866_v50 = vrot.slane %v858_v47, %v4363_v10 }
 0x114   : > { %894 = vst.msk [vmem:[#allocation2] sm:$0xff] %vm893_vm3, %v811_v48 }
 0x115   : > { %v873_v51 = vrot.slane %v859_v49, %v4363_v10 }
 0x117   : > { %v874_v52 = vcombine.low %v866_v50, %v873_v51 }
 0x119   : > { %897 = vst.msk [vmem:[#allocation2 + $0x10] sm:$0xff] %vm893_vm3, %v874_v52 }
 0x11a LB: >> { %v4249_v53 = vmov 0.0   ;;  %vm4250_vm4 = vmmov 0   ;;  %s912_s19 = scalar_lea.vmem [#allocation2], %s4237_s18  ;;  %vm918_vm5 = vcmask 1041409   ;;  %s4031_s21 = sshll.u32 %s4237_s18, 3  ;;  %vm997_vm6 = vcmask 12288   ;;  %s4237_s18 = sphi %s4235_s18, %s911_s18  }
 0x11b   : >> { %4066 = vmatprep.subr.mxu0 %v4249_v53  ;;  %4068 = vmatprep.mubr.msk.f32.mxu0 %vm4250_vm4, %v4249_v53  ;;  %s996_s22 = scalar_lea.vmem [#allocation3], %s4031_s21  ;;  %s911_s18 = sadd.s32 1, %s4237_s18  }
 0x11c   : >> { %p908_p5 = scmp.ge.s32.totalorder %s911_s18, 9  }
 0x11d   : > { %v1000_v60 = vld [vmem:[%s5897_s5] sm:$0x1f] (%p908_p5)  ;;  %v4429_v62 = vsub.s32 (%p908_p5), 0, %v4324_v3  ;;  %v5906_v63 = vmov (%p908_p5), 0   ;;  %v1721_v0 = vsub.s32 (%p908_p5), 4, %v4324_v3  ;;  %v1499_v2 = vsub.s32 (%p908_p5), 2, %v4324_v3 }
 0x11e   : > { %v999_v61 = vld [vmem:[%s5899_s7] sm:$0x1f] (%p908_p5)  ;;  %4113 = vset.pattern.permute.xlu0 (%p908_p5), %v5906_v63  ;;  %2039 = vst.msk [vmem:[#allocation4] sm:$0x1f] (%p908_p5), %vm997_vm6, %v5906_v63  ;;  %v1610_v6 = vsub.s32 (%p908_p5), 3, %v4324_v3  ;;  %s5861_s15 = smov (%p908_p5), 0  }
 0x11f   : > { %5954 = vst [vmem:[#allocation7_spill] sm:$0xff] (%p908_p5), %v4429_v62  ;;  %1288 = vperm.xlu0 (%p908_p5), %4113, %v1000_v60   ;;  %v1302_v1 = vrot.slane (%p908_p5), %v999_v61, %v4429_v62  ;;  %v1722_v4 = vrot.slane (%p908_p5), %v999_v61, %v1721_v0  ;;  %v1500_v9 = vrot.slane (%p908_p5), %v999_v61, %v1499_v2  ;;  %v1001_v12 = vld [vmem:[%s5898_s6] sm:$0x1f] (%p908_p5) }
 0x120   : >> { %v913_v54 = vld [vmem:[%s912_s19] sm:$0x1]  ;;  %v914_v55 = vld [vmem:[%s912_s19 + $0x10] sm:$0x1]  ;;  %v1611_v11 = vrot.slane (%p908_p5), %v999_v61, %v1610_v6 }
 0x121   : >> { %v917_v56 = vrot.slane %v914_v55, 7  ;;  %1724 = vbcast.lane.b32.xlu1 (%p908_p5), %v1722_v4, 256 }
 0x123   : >> { %v919_v57 = vsel %vm918_vm5, %v917_v56, %v913_v54  ;;  %1304 = vbcast.lane.b32.xlu0 (%p908_p5), %v1302_v1, 256  ;;  %v2042_v54 = vld [vmem:[%s4342_s23 + $0x1] sm:$0x1] (%p908_p5) }
 0x124   : >> { %4067 = vmatpush3.xpose.msk.msra.mxu0 %vm893_vm3, %v919_v57  ;;  %v2043_v56 = vcvt.s32.f32 (%p908_p5), %v2042_v54 }
 0x126   : > { %vm2155_vm7 = vcmp.gt.f32.partialorder (%p908_p5), %v2043_v56, 0.0 }
 0x127   : >> { %4069 = vmatmul.mubr.msk.f32.vlgmr.msra.gmra.mrb[0].mxu0 %vm893_vm3, %v4351_v8  ;;  %v1388_v8 = vsub.s32 (%p908_p5), 1, %v4324_v3  ;;  %1502 = vbcast.lane.b32.xlu0 (%p908_p5), %v1500_v9, 256 }
 0x129   : > { %v1389_v5 = vrot.slane (%p908_p5), %v999_v61, %v1388_v8 }
 0x12b   : > { %1391 = vbcast.lane.b32.xlu1 (%p908_p5), %v1389_v5, 256  ;;  %2023 = vperm.xlu0 (%p908_p5), %4113, %v1001_v12   ;;  %v2156_v5 = vsel (%p908_p5), %vm2155_vm7, 1, %v5906_v63  ;;  %v2191_v12 = vld [vmem:[%s4342_s23 + $0x2] sm:$0x1] (%p908_p5) }
 0x12c   : > { %v2160_v6 = vrot.slane (%p908_p5), %v2156_v5, %v4429_v62 }
 0x12e   : > { %vm4490_vm8 = vcmp.eq.s32.totalorder (%p908_p5), %v2160_v6, 1 }
 0x12f   : > { %1613 = vbcast.lane.b32.xlu1 (%p908_p5), %v1611_v11, 256 }
 0x193   : > { %v4444_v15 = vpop.permute.xlu1 (%p908_p5), %1724 }
 0x19d   : > { %v4451_v18 = vpop.permute.xlu1 (%p908_p5), %1391 }
 0x19e   : > { %v4442_v13 = vpop.permute.xlu0 (%p908_p5), %1288 }
 0x19f   : > { %5955 = vst [vmem:[#allocation8_spill] sm:$0xff] (%p908_p5), %v4442_v13 }
 0x1a1   : > { %v4465_v31 = vpop.permute.xlu1 (%p908_p5), %1613 }
 0x1a2   : > { %v4446_v16 = vpop.permute.xlu0 (%p908_p5), %1304  ;;  %5957 = vst [vmem:[#allocation10_spill] sm:$0xff] (%p908_p5), %v4465_v31 }
 0x1a6   : > { %v4457_v21 = vpop.permute.xlu0 (%p908_p5), %1502 }
 0x1a7   : > { %5956 = vst [vmem:[#allocation9_spill] sm:$0xff] (%p908_p5), %v4457_v21 }
 0x1f5   : > { %910 = sbr.rel (!%p908_p5) target bundleno = 282 (0x11a), region = 134 }
 0x1fa   : >> { %v991_v58 = vpop.f32.mrb[0].mxu0 }
 0x1fb   : >> { %998 = vst.msk [vmem:[%s996_s22] sm:$0x1f] %vm997_vm6, %v991_v58  ;;  %v4070_v59 = vpop.f32.mrb[1].mxu0 }
 0x202   : > { %v2037_v14 = vld [vmem:[#allocation3] sm:$0x1f]  ;;  %v2041_v23 = vld [vmem:[#allocation3 + $0x8] sm:$0x1f] }
 0x203   : > { %v4449_v17 = vadd.f32 %v2037_v14, %v4442_v13  ;;  %v2044_v26 = vadd.f32 %v2041_v23, %v4446_v16  ;;  %v2046_v28 = vadd.f32 %v2041_v23, %v4457_v21  ;;  %v2045_v32 = vadd.f32 %v2041_v23, %v4451_v18 }
 0x204   : > { %v2048_v33 = vadd.f32 %v2041_v23, %v4444_v15  ;;  %v2047_v36 = vadd.f32 %v2041_v23, %v4465_v31  ;;  %v5904_v23 = vmov 5  }
 0x205   : > { %v2050_v19 = vcombine.high %v4449_v17, %v4449_v17  ;;  %v2057_v20 = vrot.slane %v4449_v17, %v4363_v10 }
 0x207   : > { %v2064_v22 = vrot.slane %v2050_v19, %v4363_v10  ;;  %v2065_v24 = vcombine.high %v2057_v20, %v2057_v20  ;;  %v2072_v25 = vrot.slane %v2057_v20, %v4363_v10 }
 0x209   : > { %v2079_v27 = vrot.slane %v2064_v22, %v4363_v10  ;;  %v2086_v29 = vrot.slane %v2065_v24, %v4363_v10  ;;  %v2087_v30 = vcombine.high %v2072_v25, %v2072_v25  ;;  %v2092_v34 = vrot.slane %v2072_v25, %v4429_v62 }
 0x20b   : > { %v2108_v35 = vrot.slane %v2079_v27, %v4429_v62  ;;  %v2088_v37 = vcombine.high %v2086_v29, %v2086_v29  ;;  %v2096_v38 = vrot.slane %v2086_v29, %v4429_v62  ;;  %v2100_v39 = vrot.slane %v2087_v30, %v4429_v62 }
 0x20c   : > { %v2114_v40 = vadd.f32 %v2092_v34, %v2044_v26  ;;  %v2192_v27 = vcvt.s32.f32 %v2191_v12 }
 0x20d   : > { %v2118_v41 = vadd.f32 %v2108_v35, %v2048_v33  ;;  %v2104_v42 = vrot.slane %v2088_v37, %v4429_v62  ;;  %v2115_v43 = vadd.f32 %v2096_v38, %v2045_v32  ;;  %v2116_v44 = vadd.f32 %v2100_v39, %v2046_v28  ;;  %v2190_v32 = vld [vmem:[#allocation3 + $0x10] sm:$0x1f] }
 0x20e   : > { %v2119_v45 = vsel %vm997_vm6, %v2114_v40, -inf  ;;  %v4516_v39 = vadd.f32 %v2190_v32, %v4446_v16  ;;  %vm4536_vm1 = vcmp.gt.f32.partialorder %v2192_v27, 0.0 }
 0x20f   : > { %v2123_v46 = vsel %vm997_vm6, %v2118_v41, -inf  ;;  %v2117_v47 = vadd.f32 %v2104_v42, %v2047_v36  ;;  %v2120_v49 = vsel %vm997_vm6, %v2115_v43, -inf  ;;  %v2121_v50 = vsel %vm997_vm6, %v2116_v44, -inf }
 0x210   : > { %v2124_v48 = vmax.f32 %v2119_v45, %v2123_v46 }
 0x211   : > { %v2122_v51 = vsel %vm997_vm6, %v2117_v47, -inf }
 0x212   : > { %v2125_v52 = vmax.f32 %v2124_v48, %v2120_v49  ;;  %v2126_v53 = vmax.f32 %v2121_v50, %v2122_v51 }
 0x214   : > { %v4481_v55 = vmax.f32 %v2125_v52, %v2126_v53  ;;  %v4532_v52 = vadd.f32 %v2190_v32, %v4444_v15 }
 0x216   : > { %v2128_v57 = vsub.f32 %v2114_v40, %v4481_v55  ;;  %v2129_v58 = vsub.f32 %v2115_v43, %v4481_v55  ;;  %v2130_v59 = vsub.f32 %v2116_v44, %v4481_v55  ;;  %v2131_v60 = vsub.f32 %v2117_v47, %v4481_v55 }
 0x217   : > { %v2132_v61 = vsub.f32 %v2118_v41, %v4481_v55  ;;  %vm2163_vm9 = vcmp.ge.f32.partialorder %v2114_v40, %v4481_v55  ;;  %vm2165_vm10 = vcmp.ge.f32.partialorder %v2116_v44, %v4481_v55  ;;  %vm2166_vm11 = vcmp.ge.f32.partialorder %v2117_v47, %v4481_v55 }
 0x218   : > { %v2133_v0 = vmul.f32 1.442695, %v2128_v57  ;;  %v2135_v8 = vmul.f32 1.442695, %v2129_v58  ;;  %v2137_v1 = vmul.f32 1.442695, %v2130_v59  ;;  %vm2167_vm12 = vcmp.ge.f32.partialorder %v2118_v41, %v4481_v55 }
 0x219   : > { %v2139_v2 = vmul.f32 1.442695, %v2131_v60  ;;  %v2141_v4 = vmul.f32 1.442695, %v2132_v61  ;;  %vm2164_vm13 = vcmp.ge.f32.partialorder %v2115_v43, %v4481_v55  ;;  %v2168_v24 = vsel %vm2163_vm9, 0, %v5904_v23 }
 0x21a   : > { %4115 = vpow2.f32 %v2133_v0  ;;  %v2170_v28 = vsel %vm2165_vm10, 2, %v5904_v23  ;;  %v2171_v29 = vsel %vm2166_vm11, 3, %v5904_v23  ;;  %v2172_v33 = vsel %vm2167_vm12, 4, %v5904_v23 }
 0x21b   : > { %4117 = vpow2.f32 %v2135_v8  ;;  %v2173_v34 = vsel %vm997_vm6, %v2168_v24, 2147483647  ;;  %v4512_v35 = vsel %vm4490_vm8, %v4481_v55, %v4449_v17  ;;  %v2169_v40 = vsel %vm2164_vm13, 1, %v5904_v23 }
 0x21c   : > { %4119 = vpow2.f32 %v2137_v1  ;;  %v2175_v41 = vsel %vm997_vm6, %v2170_v28, 2147483647  ;;  %v2176_v42 = vsel %vm997_vm6, %v2171_v29, 2147483647  ;;  %v2177_v44 = vsel %vm997_vm6, %v2172_v33, 2147483647 }
 0x21d   : > { %4121 = vpow2.f32 %v2139_v2  ;;  %v2313_v45 = vcombine.high %v4512_v35, %v4512_v35  ;;  %vm2178_vm14 = vcmp.lt.s32.totalorder %v2173_v34, %v2177_v44  ;;  %vm2182_vm15 = vcmp.lt.s32.totalorder %v2175_v41, %v2176_v42 }
 0x21e   : > { %4123 = vpow2.f32 %v2141_v4  ;;  %v2320_v47 = vrot.slane %v4512_v35, %v4363_v10  ;;  %v2174_v43 = vsel %vm997_vm6, %v2169_v40, 2147483647  ;;  %v2179_v49 = vsel %vm2178_vm14, %v2173_v34, %v2177_v44  ;;  %v2419_v4 = vld [vmem:[%s4342_s23 + $0x3] sm:$0x1]  ;;  %v2418_v40 = vld [vmem:[#allocation3 + $0x18] sm:$0x1f] }
 0x21f   : > { %v2327_v50 = vrot.slane %v2313_v45, %v4363_v10  ;;  %vm2180_vm0 = vcmp.lt.s32.totalorder %v2179_v49, %v2174_v43  ;;  %v2183_v56 = vsel %vm2182_vm15, %v2175_v41, %v2176_v42  ;;  %v4544_v2 = vadd.f32 %v2190_v32, %v4451_v18 }
 0x220   : > { %v2328_v53 = vcombine.high %v2320_v47, %v2320_v47  ;;  %v2181_v54 = vsel %vm2180_vm0, %v2179_v49, %v2174_v43  ;;  %v2335_v57 = vrot.slane %v2320_v47, %v4363_v10  ;;  %v4572_v44 = vadd.f32 %v2418_v40, %v4446_v16 }
 0x221   : > { %v2342_v58 = vrot.slane %v2327_v50, %v4363_v10  ;;  %vm2184_vm2 = vcmp.lt.s32.totalorder %v2181_v54, %v2183_v56  ;;  %v4578_v47 = vadd.f32 %v2418_v40, %v4457_v21  ;;  %v4585_v49 = vadd.f32 %v2418_v40, %v4465_v31 }
 0x222   : > { %v2349_v60 = vrot.slane %v2328_v53, %v4363_v10  ;;  %v2185_v61 = vsel %vm2184_vm2, %v2181_v54, %v2183_v56  ;;  %v2350_v0 = vcombine.high %v2335_v57, %v2335_v57  ;;  %v2355_v8 = vrot.slane %v2335_v57, %v4429_v62 }
 0x223   : > { %v2371_v1 = vrot.slane %v2342_v58, %v4429_v62  ;;  %2187 = vst.msk [vmem:[#allocation4 + $0x8] sm:$0x1f] %vm997_vm6, %v2185_v61  ;;  %v4588_v50 = vadd.f32 %v2418_v40, %v4444_v15 }
 0x224   : > { %v4116_v9 = vpop.eup %4115  ;;  %v2351_v5 = vcombine.high %v2349_v60, %v2349_v60  ;;  %v2359_v6 = vrot.slane %v2349_v60, %v4429_v62  ;;  %v2363_v12 = vrot.slane %v2350_v0, %v4429_v62 }
 0x225   : > { %v4118_v14 = vpop.eup %4117  ;;  %v2143_v19 = vsel %vm997_vm6, %v4116_v9, 0.0  ;;  %v4550_v9 = vadd.f32 %v2190_v32, %v4457_v21 }
 0x226   : > { %v4120_v20 = vpop.eup %4119  ;;  %v2144_v22 = vsel %vm997_vm6, %v4118_v14, 0.0  ;;  %v2377_v14 = vadd.f32 %v2355_v8, %v4516_v39  ;;  %v2367_v24 = vrot.slane %v2351_v5, %v4429_v62 }
 0x227   : > { %v4122_v25 = vpop.eup %4121  ;;  %v2145_v26 = vadd.f32 %v2144_v22, %v2143_v19  ;;  %v2146_v30 = vsel %vm997_vm6, %v4120_v20, 0.0  ;;  %v2381_v19 = vadd.f32 %v2371_v1, %v4532_v52  ;;  %v4556_v20 = vadd.f32 %v2190_v32, %v4465_v31 }
 0x228   : > { %v4124_v36 = vpop.eup %4123  ;;  %v2148_v38 = vsel %vm997_vm6, %v4122_v25, 0.0  ;;  %v2305_v22 = vsel %vm4536_vm1, 1, %v5906_v63  ;;  %v2378_v25 = vadd.f32 %v2359_v6, %v4544_v2  ;;  %v2379_v27 = vadd.f32 %v2363_v12, %v4550_v9 }
 0x229   : > { %v2147_v37 = vadd.f32 %v2146_v30, %v2145_v26  ;;  %v2150_v48 = vsel %vm997_vm6, %v4124_v36, 0.0  ;;  %v2420_v26 = vcvt.s32.f32 %v2419_v4  ;;  %v2382_v28 = vsel %vm997_vm6, %v2377_v14, -inf }
 0x22a   : > { %v2386_v29 = vsel %vm997_vm6, %v2381_v19, -inf  ;;  %v2380_v30 = vadd.f32 %v2367_v24, %v4556_v20  ;;  %v2383_v32 = vsel %vm997_vm6, %v2378_v25, -inf  ;;  %v2309_v34 = vrot.slane %v2305_v22, %v4429_v62 }
 0x22b   : > { %v2149_v46 = vadd.f32 %v2148_v38, %v2147_v37  ;;  %v2387_v33 = vmax.f32 %v2382_v28, %v2386_v29  ;;  %v2384_v36 = vsel %vm997_vm6, %v2379_v27, -inf  ;;  %vm2532_vm3 = vcmp.gt.f32.partialorder %v2420_v26, 0.0 }
 0x22c   : > { %v2385_v37 = vsel %vm997_vm6, %v2380_v30, -inf  ;;  %vm4580_vm4 = vcmp.eq.s32.totalorder %v2309_v34, 1 }
 0x22d   : > { %v2151_v51 = vadd.f32 %v2150_v48, %v2149_v46  ;;  %v2388_v38 = vmax.f32 %v2387_v33, %v2383_v32  ;;  %v2389_v41 = vmax.f32 %v2384_v36, %v2385_v37  ;;  %v4575_v46 = vadd.f32 %v2418_v40, %v4451_v18 }
 0x22f   : > { %4125 = vlog2.f32 %v2151_v51  ;;  %v2390_v48 = vmax.f32 %v2388_v38, %v2389_v41  ;;  %v4591_v51 = vsel %vm2532_vm3, 1, %v5906_v63 }
 0x231   : > { %vm2391_vm7 = vcmp.ge.f32.partialorder %v2377_v14, %v2390_v48  ;;  %vm2392_vm9 = vcmp.ge.f32.partialorder %v2378_v25, %v2390_v48  ;;  %vm2393_vm10 = vcmp.ge.f32.partialorder %v2379_v27, %v2390_v48  ;;  %vm2394_vm11 = vcmp.ge.f32.partialorder %v2380_v30, %v2390_v48 }
 0x232   : > { %vm2395_vm12 = vcmp.ge.f32.partialorder %v2381_v19, %v2390_v48  ;;  %v2396_v54 = vsel %vm2391_vm7, 0, %v5904_v23  ;;  %v2397_v56 = vsel %vm2392_vm9, 1, %v5904_v23  ;;  %v2398_v58 = vsel %vm2393_vm10, 2, %v5904_v23 }
 0x233   : > { %v2399_v59 = vsel %vm2394_vm11, 3, %v5904_v23  ;;  %v2401_v0 = vsel %vm997_vm6, %v2396_v54, 2147483647  ;;  %v2402_v8 = vsel %vm997_vm6, %v2397_v56, 2147483647  ;;  %v4616_v4 = vsel %vm4580_vm4, %v2390_v48, %v4512_v35 }
 0x234   : > { %v2403_v11 = vsel %vm997_vm6, %v2398_v58, 2147483647  ;;  %v2541_v19 = vcombine.high %v4616_v4, %v4616_v4  ;;  %v2548_v22 = vrot.slane %v4616_v4, %v4363_v10 }
 0x236   : > { %v2555_v28 = vrot.slane %v2541_v19, %v4363_v10  ;;  %v2556_v29 = vcombine.high %v2548_v22, %v2548_v22  ;;  %v2563_v38 = vrot.slane %v2548_v22, %v4363_v10 }
 0x238   : > { %v2570_v40 = vrot.slane %v2555_v28, %v4363_v10  ;;  %v2577_v54 = vrot.slane %v2556_v29, %v4363_v10  ;;  %v2578_v56 = vcombine.high %v2563_v38, %v2563_v38 }
 0x239   : > { %v4126_v42 = vpop.eup %4125 }
 0x23a   : > { %v2153_v45 = vmul.f32 0.6931472, %v4126_v42 }
 0x23c   : > { %v2154_v53 = vadd.f32 %v2153_v45, %v4481_v55  ;;  %v2400_v55 = vsel %vm2395_vm12, 4, %v5904_v23 }
 0x23d   : > { %v2405_v1 = vsel %vm997_vm6, %v2400_v55, 2147483647 }
 0x23e   : > { %v4599_v57 = vsel %vm4490_vm8, %v2154_v53, %v4449_v17  ;;  %v2404_v17 = vsel %vm997_vm6, %v2399_v59, 2147483647  ;;  %vm2406_vm8 = vcmp.lt.s32.totalorder %v2401_v0, %v2405_v1 }
 0x23f   : > { %v2199_v60 = vcombine.high %v4599_v57, %v4599_v57  ;;  %v2206_v61 = vrot.slane %v4599_v57, %v4363_v10  ;;  %v2407_v14 = vsel %vm2406_vm8, %v2401_v0, %v2405_v1  ;;  %vm2410_vm13 = vcmp.lt.s32.totalorder %v2403_v11, %v2404_v17 }
 0x240   : > { %vm2408_vm14 = vcmp.lt.s32.totalorder %v2407_v14, %v2402_v8  ;;  %v2411_v27 = vsel %vm2410_vm13, %v2403_v11, %v2404_v17  ;;  %v2587_v0 = vrot.slane %v2577_v54, %v4429_v62 }
 0x241   : > { %v2213_v5 = vrot.slane %v2199_v60, %v4363_v10  ;;  %v2214_v6 = vcombine.high %v2206_v61, %v2206_v61  ;;  %v2221_v12 = vrot.slane %v2206_v61, %v4363_v10  ;;  %v2409_v37 = vsel %vm2408_vm14, %v2407_v14, %v2402_v8 }
 0x242   : > { %vm2412_vm15 = vcmp.lt.s32.totalorder %v2409_v37, %v2411_v27  ;;  %v2579_v61 = vcombine.high %v2577_v54, %v2577_v54  ;;  %v2591_v8 = vrot.slane %v2578_v56, %v4429_v62  ;;  %v2647_v54 = vld [vmem:[%s4342_s23 + $0x4] sm:$0x1] }
 0x243   : > { %v2228_v24 = vrot.slane %v2213_v5, %v4363_v10  ;;  %v2235_v25 = vrot.slane %v2214_v6, %v4363_v10  ;;  %v2236_v35 = vcombine.high %v2221_v12, %v2221_v12  ;;  %v2241_v26 = vrot.slane %v2221_v12, %v4429_v62 }
 0x244   : > { %v2595_v1 = vrot.slane %v2579_v61, %v4429_v62  ;;  %v2606_v6 = vadd.f32 %v2587_v0, %v4575_v46  ;;  %v2607_v12 = vadd.f32 %v2591_v8, %v4578_v47 }
 0x245   : > { %v2237_v30 = vcombine.high %v2235_v25, %v2235_v25  ;;  %v2245_v33 = vrot.slane %v2235_v25, %v4429_v62  ;;  %v2249_v32 = vrot.slane %v2236_v35, %v4429_v62  ;;  %v2257_v34 = vrot.slane %v2228_v24, %v4429_v62 }
 0x246   : > { %v2263_v36 = vadd.f32 %v2241_v26, %v4516_v39  ;;  %v2608_v22 = vadd.f32 %v2595_v1, %v4585_v49  ;;  %v2537_v24 = vrot.slane %v4591_v51, %v4429_v62  ;;  %v2611_v35 = vsel %vm997_vm6, %v2606_v6, -inf }
 0x247   : > { %v2253_v41 = vrot.slane %v2237_v30, %v4429_v62  ;;  %v2264_v42 = vadd.f32 %v2245_v33, %v4544_v2  ;;  %v2265_v45 = vadd.f32 %v2249_v32, %v4550_v9  ;;  %v2267_v48 = vadd.f32 %v2257_v34, %v4532_v52 }
 0x248   : > { %v2268_v53 = vsel %vm997_vm6, %v2263_v36, -inf  ;;  %v2413_v2 = vsel %vm2412_vm15, %v2409_v37, %v2411_v27  ;;  %v2583_v9 = vrot.slane %v2563_v38, %v4429_v62  ;;  %v2612_v32 = vsel %vm997_vm6, %v2607_v12, -inf }
 0x249   : > { %v2266_v39 = vadd.f32 %v2253_v41, %v4556_v20  ;;  %v2269_v58 = vsel %vm997_vm6, %v2264_v42, -inf  ;;  %v2270_v59 = vsel %vm997_vm6, %v2265_v45, -inf  ;;  %v2272_v55 = vsel %vm997_vm6, %v2267_v48, -inf  ;;  %2415 = vst.msk [vmem:[#allocation4 + $0x10] sm:$0x1f] %vm997_vm6, %v2413_v2 }
 0x24a   : > { %v2273_v60 = vmax.f32 %v2268_v53, %v2272_v55  ;;  %v2599_v20 = vrot.slane %v2570_v40, %v4429_v62  ;;  %v2605_v5 = vadd.f32 %v2583_v9, %v4572_v44  ;;  %v2613_v51 = vsel %vm997_vm6, %v2608_v22, -inf }
 0x24b   : > { %v2271_v52 = vsel %vm997_vm6, %v2266_v39, -inf  ;;  %v2617_v41 = vmax.f32 %v2612_v32, %v2613_v51  ;;  %vm4671_vm0 = vcmp.eq.s32.totalorder %v2537_v24, 1 }
 0x24c   : > { %v2274_v11 = vmax.f32 %v2273_v60, %v2269_v58  ;;  %v2275_v17 = vmax.f32 %v2270_v59, %v2271_v52  ;;  %v2609_v14 = vadd.f32 %v2599_v20, %v4588_v50  ;;  %v2610_v25 = vsel %vm997_vm6, %v2605_v5, -inf }
 0x24e   : > { %v4655_v19 = vmax.f32 %v2274_v11, %v2275_v17  ;;  %v2614_v26 = vsel %vm997_vm6, %v2609_v14, -inf }
 0x24f   : > { %v2615_v34 = vmax.f32 %v2610_v25, %v2614_v26 }
 0x250   : > { %v2277_v27 = vsub.f32 %v2263_v36, %v4655_v19  ;;  %v2278_v28 = vsub.f32 %v2264_v42, %v4655_v19  ;;  %v2279_v29 = vsub.f32 %v2265_v45, %v4655_v19  ;;  %v2280_v30 = vsub.f32 %v2266_v39, %v4655_v19  ;;  %v2646_v39 = vld [vmem:[#allocation3 + $0x20] sm:$0x1f] }
 0x251   : > { %v2281_v33 = vsub.f32 %v2267_v48, %v4655_v19  ;;  %v2616_v36 = vmax.f32 %v2615_v34, %v2611_v35  ;;  %v2648_v48 = vcvt.s32.f32 %v2647_v54  ;;  %v4676_v58 = vadd.f32 %v2646_v39, %v4446_v16 }
 0x252   : > { %v2282_v37 = vmul.f32 1.442695, %v2277_v27  ;;  %v2284_v38 = vmul.f32 1.442695, %v2278_v28  ;;  %v2286_v40 = vmul.f32 1.442695, %v2279_v29  ;;  %v4697_v1 = vadd.f32 %v2646_v39, %v4451_v18 }
 0x253   : > { %v2288_v53 = vmul.f32 1.442695, %v2280_v30  ;;  %v2290_v42 = vmul.f32 1.442695, %v2281_v33  ;;  %v2618_v45 = vmax.f32 %v2616_v36, %v2617_v41  ;;  %v4705_v24 = vadd.f32 %v2646_v39, %v4444_v15 }
 0x254   : > { %4127 = vpow2.f32 %v2282_v37  ;;  %vm4713_vm13 = vcmp.gt.f32.partialorder %v2648_v48, 0.0 }
 0x255   : > { %4129 = vpow2.f32 %v2284_v38  ;;  %vm2619_vm1 = vcmp.ge.f32.partialorder %v2605_v5, %v2618_v45  ;;  %vm2620_vm2 = vcmp.ge.f32.partialorder %v2606_v6, %v2618_v45  ;;  %vm2621_vm3 = vcmp.ge.f32.partialorder %v2607_v12, %v2618_v45 }
 0x256   : > { %4131 = vpow2.f32 %v2286_v40  ;;  %vm2622_vm7 = vcmp.ge.f32.partialorder %v2608_v22, %v2618_v45  ;;  %vm2623_vm9 = vcmp.ge.f32.partialorder %v2609_v14, %v2618_v45  ;;  %v2624_v59 = vsel %vm2619_vm1, 0, %v5904_v23 }
 0x257   : > { %4133 = vpow2.f32 %v2288_v53  ;;  %v2626_v55 = vsel %vm2621_vm3, 2, %v5904_v23  ;;  %v2627_v60 = vsel %vm2622_vm7, 3, %v5904_v23  ;;  %v2628_v2 = vsel %vm2623_vm9, 4, %v5904_v23 }
 0x258   : > { %4135 = vpow2.f32 %v2290_v42  ;;  %v2625_v61 = vsel %vm2620_vm2, 1, %v5904_v23  ;;  %v2629_v9 = vsel %vm997_vm6, %v2624_v59, 2147483647  ;;  %v2631_v52 = vsel %vm997_vm6, %v2626_v55, 2147483647 }
 0x259   : > { %v4688_v0 = vsel %vm4671_vm0, %v2618_v45, %v4616_v4  ;;  %v2632_v8 = vsel %vm997_vm6, %v2627_v60, 2147483647  ;;  %v2633_v20 = vsel %vm997_vm6, %v2628_v2, 2147483647  ;;  %v4700_v5 = vadd.f32 %v2646_v39, %v4457_v21 }
 0x25a   : > { %v2769_v11 = vcombine.high %v4688_v0, %v4688_v0  ;;  %v2776_v17 = vrot.slane %v4688_v0, %v4363_v10  ;;  %vm2634_vm10 = vcmp.lt.s32.totalorder %v2629_v9, %v2633_v20  ;;  %vm2638_vm11 = vcmp.lt.s32.totalorder %v2631_v52, %v2632_v8 }
 0x25b   : > { %v2630_v4 = vsel %vm997_vm6, %v2625_v61, 2147483647  ;;  %v2635_v6 = vsel %vm2634_vm10, %v2629_v9, %v2633_v20  ;;  %v2639_v25 = vsel %vm2638_vm11, %v2631_v52, %v2632_v8  ;;  %v4723_v60 = vadd.f32 %v2646_v39, %v4465_v31 }
 0x25c   : > { %v2783_v12 = vrot.slane %v2769_v11, %v4363_v10  ;;  %v2784_v14 = vcombine.high %v2776_v17, %v2776_v17  ;;  %vm2636_vm12 = vcmp.lt.s32.totalorder %v2635_v6, %v2630_v4  ;;  %v2791_v35 = vrot.slane %v2776_v17, %v4363_v10 }
 0x25d   : > { %v2637_v28 = vsel %vm2636_vm12, %v2635_v6, %v2630_v4  ;;  %v2761_v11 = vsel %vm4713_vm13, 1, %v5906_v63 }
 0x25e   : > { %v4128_v22 = vpop.eup %4127  ;;  %v2798_v29 = vrot.slane %v2783_v12, %v4363_v10  ;;  %v2805_v30 = vrot.slane %v2784_v14, %v4363_v10  ;;  %vm2640_vm8 = vcmp.lt.s32.totalorder %v2637_v28, %v2639_v25  ;;  %v2806_v51 = vcombine.high %v2791_v35, %v2791_v35 }
 0x25f   : > { %v4130_v26 = vpop.eup %4129  ;;  %v2292_v27 = vsel %vm997_vm6, %v4128_v22, 0.0  ;;  %v2811_v34 = vrot.slane %v2791_v35, %v4429_v62  ;;  %v2641_v41 = vsel %vm2640_vm8, %v2637_v28, %v2639_v25  ;;  %v2765_v35 = vrot.slane %v2761_v11, %v4429_v62 }
 0x260   : > { %v4132_v33 = vpop.eup %4131  ;;  %v2293_v32 = vsel %vm997_vm6, %v4130_v26, 0.0  ;;  %v2807_v53 = vcombine.high %v2805_v30, %v2805_v30  ;;  %2643 = vst.msk [vmem:[#allocation4 + $0x18] sm:$0x1f] %vm997_vm6, %v2641_v41  ;;  %v2815_v36 = vrot.slane %v2805_v30, %v4429_v62  ;;  %v2819_v42 = vrot.slane %v2806_v51, %v4429_v62 }
 0x261   : > { %v4134_v37 = vpop.eup %4133  ;;  %v2294_v38 = vadd.f32 %v2293_v32, %v2292_v27  ;;  %v2295_v54 = vsel %vm997_vm6, %v4132_v33, 0.0  ;;  %v2827_v45 = vrot.slane %v2798_v29, %v4429_v62  ;;  %v2833_v2 = vadd.f32 %v2811_v34, %v4676_v58  ;;  %v2875_v33 = vld [vmem:[%s4342_s23 + $0x5] sm:$0x1] }
 0x262   : > { %v4136_v59 = vpop.eup %4135  ;;  %v2823_v48 = vrot.slane %v2807_v53, %v4429_v62  ;;  %v2297_v61 = vsel %vm997_vm6, %v4134_v37, 0.0  ;;  %v2834_v9 = vadd.f32 %v2815_v36, %v4697_v1  ;;  %v2835_v52 = vadd.f32 %v2819_v42, %v4700_v5  ;;  %v2874_v42 = vld [vmem:[#allocation3 + $0x28] sm:$0x1f] }
 0x263   : > { %v2296_v55 = vadd.f32 %v2295_v54, %v2294_v38  ;;  %v2837_v8 = vadd.f32 %v2827_v45, %v4705_v24  ;;  %v2299_v17 = vsel %vm997_vm6, %v4136_v59, 0.0  ;;  %v2838_v4 = vsel %vm997_vm6, %v2833_v2, -inf }
 0x264   : > { %v2836_v39 = vadd.f32 %v2823_v48, %v4723_v60  ;;  %v2840_v14 = vsel %vm997_vm6, %v2835_v52, -inf  ;;  %v2839_v26 = vsel %vm997_vm6, %v2834_v9, -inf  ;;  %vm4742_vm14 = vcmp.eq.s32.totalorder %v2765_v35, 1 }
 0x265   : > { %v2298_v20 = vadd.f32 %v2297_v61, %v2296_v55  ;;  %v2842_v6 = vsel %vm997_vm6, %v2837_v8, -inf  ;;  %v2876_v55 = vcvt.s32.f32 %v2875_v33  ;;  %v4766_v48 = vadd.f32 %v2874_v42, %v4446_v16 }
 0x266   : > { %v2841_v22 = vsel %vm997_vm6, %v2836_v39, -inf  ;;  %v2843_v25 = vmax.f32 %v2838_v4, %v2842_v6  ;;  %v4772_v11 = vadd.f32 %v2874_v42, %v4451_v18 }
 0x267   : > { %v2300_v12 = vadd.f32 %v2299_v17, %v2298_v20  ;;  %v2845_v27 = vmax.f32 %v2840_v14, %v2841_v22  ;;  %v4778_v22 = vadd.f32 %v2874_v42, %v4457_v21  ;;  %vm2988_vm8 = vcmp.gt.f32.partialorder %v2876_v55, 0.0 }
 0x268   : > { %v2844_v28 = vmax.f32 %v2843_v25, %v2839_v26 }
 0x269   : > { %4137 = vlog2.f32 %v2300_v12 }
 0x26a   : > { %v2846_v29 = vmax.f32 %v2844_v28, %v2845_v27 }
 0x26c   : > { %vm2847_vm15 = vcmp.ge.f32.partialorder %v2833_v2, %v2846_v29  ;;  %vm2848_vm1 = vcmp.ge.f32.partialorder %v2834_v9, %v2846_v29  ;;  %vm2849_vm2 = vcmp.ge.f32.partialorder %v2835_v52, %v2846_v29  ;;  %vm2850_vm3 = vcmp.ge.f32.partialorder %v2836_v39, %v2846_v29 }
 0x26d   : > { %vm2851_vm7 = vcmp.ge.f32.partialorder %v2837_v8, %v2846_v29  ;;  %v2852_v32 = vsel %vm2847_vm15, 0, %v5904_v23  ;;  %v2854_v51 = vsel %vm2849_vm2, 2, %v5904_v23  ;;  %v2853_v34 = vsel %vm2848_vm1, 1, %v5904_v23 }
 0x26e   : > { %v2855_v37 = vsel %vm2850_vm3, 3, %v5904_v23  ;;  %v2856_v38 = vsel %vm2851_vm7, 4, %v5904_v23  ;;  %v2857_v40 = vsel %vm997_vm6, %v2852_v32, 2147483647  ;;  %v2859_v41 = vsel %vm997_vm6, %v2854_v51, 2147483647 }
 0x26f   : > { %v2860_v53 = vsel %vm997_vm6, %v2855_v37, 2147483647  ;;  %v2861_v54 = vsel %vm997_vm6, %v2856_v38, 2147483647  ;;  %v4759_v36 = vsel %vm4742_vm14, %v2846_v29, %v4688_v0  ;;  %v2858_v2 = vsel %vm997_vm6, %v2853_v34, 2147483647 }
 0x270   : > { %vm2862_vm9 = vcmp.lt.s32.totalorder %v2857_v40, %v2861_v54  ;;  %vm2866_vm10 = vcmp.lt.s32.totalorder %v2859_v41, %v2860_v53  ;;  %v2997_v45 = vcombine.high %v4759_v36, %v4759_v36  ;;  %v3004_v59 = vrot.slane %v4759_v36, %v4363_v10 }
 0x271   : > { %v2863_v61 = vsel %vm2862_vm9, %v2857_v40, %v2861_v54  ;;  %v2867_v17 = vsel %vm2866_vm10, %v2859_v41, %v2860_v53  ;;  %v4794_v32 = vadd.f32 %v2874_v42, %v4444_v15 }
 0x272   : > { %vm2864_vm11 = vcmp.lt.s32.totalorder %v2863_v61, %v2858_v2  ;;  %v3011_v0 = vrot.slane %v2997_v45, %v4363_v10  ;;  %v3012_v52 = vcombine.high %v3004_v59, %v3004_v59  ;;  %v3019_v8 = vrot.slane %v3004_v59, %v4363_v10 }
 0x273   : > { %v4138_v9 = vpop.eup %4137  ;;  %v2865_v39 = vsel %vm2864_vm11, %v2863_v61, %v2858_v2  ;;  %v2989_v45 = vsel %vm2988_vm8, 1, %v5906_v63 }
 0x274   : > { %v2302_v20 = vmul.f32 0.6931472, %v4138_v9  ;;  %vm2868_vm12 = vcmp.lt.s32.totalorder %v2865_v39, %v2867_v17  ;;  %v3026_v4 = vrot.slane %v3011_v0, %v4363_v10  ;;  %v3033_v6 = vrot.slane %v3012_v52, %v4363_v10 }
 0x275   : > { %v3034_v12 = vcombine.high %v3019_v8, %v3019_v8  ;;  %v2869_v25 = vsel %vm2868_vm12, %v2865_v39, %v2867_v17  ;;  %v3039_v35 = vrot.slane %v3019_v8, %v4429_v62 }
 0x276   : > { %v2303_v14 = vadd.f32 %v2302_v20, %v4655_v19  ;;  %2871 = vst.msk [vmem:[#allocation4 + $0x20] sm:$0x1f] %vm997_vm6, %v2869_v25  ;;  %v3035_v26 = vcombine.high %v3033_v6, %v3033_v6  ;;  %v3043_v27 = vrot.slane %v3033_v6, %v4429_v62  ;;  %v3055_v29 = vrot.slane %v3026_v4, %v4429_v62 }
 0x277   : > { %v3047_v28 = vrot.slane %v3034_v12, %v4429_v62  ;;  %v4791_v19 = vadd.f32 %v2874_v42, %v4465_v31  ;;  %v3061_v51 = vadd.f32 %v3039_v35, %v4766_v48 }
 0x278   : > { %v4788_v33 = vsel %vm4580_vm4, %v2303_v14, %v4599_v57  ;;  %v3051_v38 = vrot.slane %v3035_v26, %v4429_v62  ;;  %v3062_v43 = vadd.f32 %v3043_v27, %v4772_v11  ;;  %v3065_v40 = vadd.f32 %v3055_v29, %v4794_v32  ;;  %v4821_v14 = vld [vmem:[%s4342_s23 + $0x6] sm:$0x1] }
 0x279   : > { %v2427_v34 = vcombine.high %v4788_v33, %v4788_v33  ;;  %v2434_v37 = vrot.slane %v4788_v33, %v4363_v10  ;;  %v3063_v57 = vadd.f32 %v3047_v28, %v4778_v22  ;;  %v3066_v59 = vsel %vm997_vm6, %v3061_v51, -inf }
 0x27a   : > { %v3064_v42 = vadd.f32 %v3051_v38, %v4791_v19  ;;  %v3070_v55 = vsel %vm997_vm6, %v3065_v40, -inf  ;;  %v3067_v52 = vsel %vm997_vm6, %v3062_v43, -inf  ;;  %v2993_v38 = vrot.slane %v2989_v45, %v4429_v62 }
 0x27b   : > { %v2441_v41 = vrot.slane %v2427_v34, %v4363_v10  ;;  %v2442_v53 = vcombine.high %v2434_v37, %v2434_v37  ;;  %v2449_v54 = vrot.slane %v2434_v37, %v4363_v10  ;;  %v3068_v8 = vsel %vm997_vm6, %v3063_v57, -inf }
 0x27c   : > { %v3069_v20 = vsel %vm997_vm6, %v3064_v42, -inf  ;;  %v3071_v39 = vmax.f32 %v3066_v59, %v3070_v55  ;;  %vm4837_vm3 = vcmp.eq.s32.totalorder %v2993_v38, 1 }
 0x27d   : > { %v2456_v2 = vrot.slane %v2441_v41, %v4363_v10  ;;  %v2463_v61 = vrot.slane %v2442_v53, %v4363_v10  ;;  %v2464_v9 = vcombine.high %v2449_v54, %v2449_v54  ;;  %v2469_v0 = vrot.slane %v2449_v54, %v4429_v62 }
 0x27e   : > { %v3072_v35 = vmax.f32 %v3071_v39, %v3067_v52  ;;  %v3073_v26 = vmax.f32 %v3068_v8, %v3069_v20  ;;  %v3104_v41 = vcvt.s32.f32 %v4821_v14 }
 0x27f   : > { %v2465_v17 = vcombine.high %v2463_v61, %v2463_v61  ;;  %v2473_v4 = vrot.slane %v2463_v61, %v4429_v62  ;;  %v2477_v6 = vrot.slane %v2464_v9, %v4429_v62  ;;  %v2485_v12 = vrot.slane %v2456_v2, %v4429_v62  ;;  %v3102_v61 = vld [vmem:[#allocation3 + $0x30] sm:$0x1f] }
 0x280   : > { %v2491_v25 = vadd.f32 %v2469_v0, %v4572_v44  ;;  %v3074_v53 = vmax.f32 %v3072_v35, %v3073_v26  ;;  %v4852_v20 = vadd.f32 %v3102_v61, %v4446_v16  ;;  %vm3216_vm12 = vcmp.gt.f32.partialorder %v3104_v41, 0.0 }
 0x281   : > { %v2481_v27 = vrot.slane %v2465_v17, %v4429_v62  ;;  %v2492_v28 = vadd.f32 %v2473_v4, %v4575_v46  ;;  %v2493_v29 = vadd.f32 %v2477_v6, %v4578_v47  ;;  %v2495_v34 = vadd.f32 %v2485_v12, %v4588_v50 }
 0x282   : > { %v2496_v37 = vsel %vm997_vm6, %v2491_v25, -inf  ;;  %vm3075_vm4 = vcmp.ge.f32.partialorder %v3061_v51, %v3074_v53  ;;  %vm3076_vm13 = vcmp.ge.f32.partialorder %v3062_v43, %v3074_v53  ;;  %vm3077_vm15 = vcmp.ge.f32.partialorder %v3063_v57, %v3074_v53 }
 0x283   : > { %v2494_v54 = vadd.f32 %v2481_v27, %v4585_v49  ;;  %v2497_v44 = vsel %vm997_vm6, %v2492_v28, -inf  ;;  %v2498_v59 = vsel %vm997_vm6, %v2493_v29, -inf  ;;  %v2500_v55 = vsel %vm997_vm6, %v2495_v34, -inf }
 0x284   : > { %v2501_v46 = vmax.f32 %v2496_v37, %v2500_v55  ;;  %vm3078_vm1 = vcmp.ge.f32.partialorder %v3064_v42, %v3074_v53  ;;  %vm3079_vm2 = vcmp.ge.f32.partialorder %v3065_v40, %v3074_v53  ;;  %v3080_v50 = vsel %vm3075_vm4, 0, %v5904_v23 }
 0x285   : > { %v2499_v47 = vsel %vm997_vm6, %v2494_v54, -inf  ;;  %v3082_v9 = vsel %vm3077_vm15, 2, %v5904_v23  ;;  %v3081_v0 = vsel %vm3076_vm13, 1, %v5904_v23  ;;  %v3083_v51 = vsel %vm3078_vm1, 3, %v5904_v23 }
 0x286   : > { %v2502_v45 = vmax.f32 %v2501_v46, %v2497_v44  ;;  %v2503_v2 = vmax.f32 %v2498_v59, %v2499_v47  ;;  %v3084_v43 = vsel %vm3079_vm2, 4, %v5904_v23  ;;  %v3085_v57 = vsel %vm997_vm6, %v3080_v50, 2147483647 }
 0x287   : > { %v3087_v42 = vsel %vm997_vm6, %v3082_v9, 2147483647  ;;  %v3088_v52 = vsel %vm997_vm6, %v3083_v51, 2147483647  ;;  %v3089_v8 = vsel %vm997_vm6, %v3084_v43, 2147483647  ;;  %v4857_v39 = vsel %vm4837_vm3, %v3074_v53, %v4759_v36 }
 0x288   : > { %v4846_v40 = vmax.f32 %v2502_v45, %v2503_v2  ;;  %vm3090_vm7 = vcmp.lt.s32.totalorder %v3085_v57, %v3089_v8  ;;  %vm3094_vm9 = vcmp.lt.s32.totalorder %v3087_v42, %v3088_v52  ;;  %v3086_v26 = vsel %vm997_vm6, %v3081_v0, 2147483647 }
 0x289   : > { %v3091_v27 = vsel %vm3090_vm7, %v3085_v57, %v3089_v8  ;;  %v3225_v37 = vcombine.high %v4857_v39, %v4857_v39  ;;  %v4873_v47 = vadd.f32 %v3102_v61, %v4451_v18  ;;  %v4876_v50 = vadd.f32 %v3102_v61, %v4457_v21 }
 0x28a   : > { %v2505_v17 = vsub.f32 %v2491_v25, %v4846_v40  ;;  %v2506_v4 = vsub.f32 %v2492_v28, %v4846_v40  ;;  %v2507_v6 = vsub.f32 %v2493_v29, %v4846_v40  ;;  %v2508_v12 = vsub.f32 %v2494_v54, %v4846_v40 }
 0x28b   : > { %v2509_v35 = vsub.f32 %v2495_v34, %v4846_v40  ;;  %vm3092_vm10 = vcmp.lt.s32.totalorder %v3091_v27, %v3086_v26  ;;  %v3095_v28 = vsel %vm3094_vm9, %v3087_v42, %v3088_v52  ;;  %v3232_v29 = vrot.slane %v4857_v39, %v4363_v10 }
 0x28c   : > { %v2510_v38 = vmul.f32 1.442695, %v2505_v17  ;;  %v2512_v44 = vmul.f32 1.442695, %v2506_v4  ;;  %v2514_v36 = vmul.f32 1.442695, %v2507_v6  ;;  %v3093_v25 = vsel %vm3092_vm10, %v3091_v27, %v3086_v26 }
 0x28d   : > { %v2516_v53 = vmul.f32 1.442695, %v2508_v12  ;;  %v2518_v54 = vmul.f32 1.442695, %v2509_v35  ;;  %vm3096_vm11 = vcmp.lt.s32.totalorder %v3093_v25, %v3095_v28  ;;  %v3239_v34 = vrot.slane %v3225_v37, %v4363_v10 }
 0x28e   : > { %4139 = vpow2.f32 %v2510_v38  ;;  %v3097_v59 = vsel %vm3096_vm11, %v3093_v25, %v3095_v28  ;;  %v3240_v55 = vcombine.high %v3232_v29, %v3232_v29  ;;  %v3247_v46 = vrot.slane %v3232_v29, %v4363_v10 }
 0x28f   : > { %4141 = vpow2.f32 %v2512_v44  ;;  %3099 = vst.msk [vmem:[#allocation4 + $0x28] sm:$0x1f] %vm997_vm6, %v3097_v59  ;;  %v3254_v45 = vrot.slane %v3239_v34, %v4363_v10  ;;  %v4883_v51 = vadd.f32 %v3102_v61, %v4444_v15  ;;  %v4892_v17 = vadd.f32 %v3102_v61, %v4465_v31 }
 0x290   : > { %4143 = vpow2.f32 %v2514_v36  ;;  %v3261_v2 = vrot.slane %v3240_v55, %v4363_v10  ;;  %v3262_v9 = vcombine.high %v3247_v46, %v3247_v46  ;;  %v3267_v0 = vrot.slane %v3247_v46, %v4429_v62 }
 0x291   : > { %4145 = vpow2.f32 %v2516_v53  ;;  %v3283_v43 = vrot.slane %v3254_v45, %v4429_v62  ;;  %v3217_v6 = vsel %vm3216_vm12, 1, %v5906_v63 }
 0x292   : > { %4147 = vpow2.f32 %v2518_v54  ;;  %v3263_v57 = vcombine.high %v3261_v2, %v3261_v2  ;;  %v3271_v42 = vrot.slane %v3261_v2, %v4429_v62  ;;  %v3275_v52 = vrot.slane %v3262_v9, %v4429_v62 }
 0x293   : > { %v3289_v8 = vadd.f32 %v3267_v0, %v4852_v20  ;;  %v3293_v4 = vadd.f32 %v3283_v43, %v4883_v51  ;;  %v3221_v61 = vrot.slane %v3217_v6, %v4429_v62 }
 0x294   : > { %v3279_v12 = vrot.slane %v3263_v57, %v4429_v62  ;;  %v3290_v14 = vadd.f32 %v3271_v42, %v4873_v47  ;;  %v3291_v41 = vadd.f32 %v3275_v52, %v4876_v50 }
 0x295   : > { %v3294_v35 = vsel %vm997_vm6, %v3289_v8, -inf  ;;  %v3298_v26 = vsel %vm997_vm6, %v3293_v4, -inf  ;;  %vm4910_vm8 = vcmp.eq.s32.totalorder %v3221_v61, 1 }
 0x296   : > { %v3292_v27 = vadd.f32 %v3279_v12, %v4892_v17  ;;  %v3299_v37 = vmax.f32 %v3294_v35, %v3298_v26  ;;  %v3295_v44 = vsel %vm997_vm6, %v3290_v14, -inf  ;;  %v3296_v25 = vsel %vm997_vm6, %v3291_v41, -inf }
 0x298   : > { %v4140_v38 = vpop.eup %4139  ;;  %v3297_v28 = vsel %vm997_vm6, %v3292_v27, -inf  ;;  %v3300_v29 = vmax.f32 %v3299_v37, %v3295_v44 }
 0x299   : > { %v4142_v36 = vpop.eup %4141  ;;  %v2520_v53 = vsel %vm997_vm6, %v4140_v38, 0.0  ;;  %v3301_v59 = vmax.f32 %v3296_v25, %v3297_v28 }
 0x29a   : > { %v4144_v54 = vpop.eup %4143  ;;  %v2521_v34 = vsel %vm997_vm6, %v4142_v36, 0.0 }
 0x29b   : > { %v4146_v55 = vpop.eup %4145  ;;  %v2522_v46 = vadd.f32 %v2521_v34, %v2520_v53  ;;  %v2523_v2 = vsel %vm997_vm6, %v4144_v54, 0.0  ;;  %v3302_v9 = vmax.f32 %v3300_v29, %v3301_v59  ;;  %v3330_v54 = vld [vmem:[#allocation3 + $0x38] sm:$0x1f] }
 0x29c   : > { %v4148_v45 = vpop.eup %4147  ;;  %v2525_v43 = vsel %vm997_vm6, %v4146_v55, 0.0 }
 0x29d   : > { %v2524_v0 = vadd.f32 %v2523_v2, %v2522_v46  ;;  %vm3303_vm4 = vcmp.ge.f32.partialorder %v3289_v8, %v3302_v9  ;;  %vm3304_vm13 = vcmp.ge.f32.partialorder %v3290_v14, %v3302_v9  ;;  %vm3305_vm15 = vcmp.ge.f32.partialorder %v3291_v41, %v3302_v9 }
 0x29e   : > { %vm3306_vm1 = vcmp.ge.f32.partialorder %v3292_v27, %v3302_v9  ;;  %v2527_v52 = vsel %vm997_vm6, %v4148_v45, 0.0  ;;  %vm3307_vm2 = vcmp.ge.f32.partialorder %v3293_v4, %v3302_v9  ;;  %v3308_v6 = vsel %vm3303_vm4, 0, %v5904_v23  ;;  %v3331_v27 = vld [vmem:[%s4342_s23 + $0x7] sm:$0x1] }
 0x29f   : > { %v2526_v42 = vadd.f32 %v2525_v43, %v2524_v0  ;;  %v3310_v12 = vsel %vm3305_vm15, 2, %v5904_v23  ;;  %v3311_v35 = vsel %vm3306_vm1, 3, %v5904_v23  ;;  %v3312_v26 = vsel %vm3307_vm2, 4, %v5904_v23 }
 0x2a0   : > { %v3313_v37 = vsel %vm997_vm6, %v3308_v6, 2147483647  ;;  %v3309_v8 = vsel %vm3304_vm13, 1, %v5904_v23  ;;  %v3315_v14 = vsel %vm997_vm6, %v3310_v12, 2147483647  ;;  %v4928_v61 = vsel %vm4910_vm8, %v3302_v9, %v4857_v39 }
 0x2a1   : > { %v2528_v38 = vadd.f32 %v2527_v52, %v2526_v42  ;;  %v3316_v41 = vsel %vm997_vm6, %v3311_v35, 2147483647  ;;  %v3317_v4 = vsel %vm997_vm6, %v3312_v26, 2147483647  ;;  %v3453_v44 = vcombine.high %v4928_v61, %v4928_v61 }
 0x2a2   : > { %vm3318_vm7 = vcmp.lt.s32.totalorder %v3313_v37, %v3317_v4  ;;  %vm3322_vm9 = vcmp.lt.s32.totalorder %v3315_v14, %v3316_v41  ;;  %v3314_v36 = vsel %vm997_vm6, %v3309_v8, 2147483647  ;;  %v3460_v25 = vrot.slane %v4928_v61, %v4363_v10 }
 0x2a3   : > { %4149 = vlog2.f32 %v2528_v38  ;;  %v3319_v53 = vsel %vm3318_vm7, %v3313_v37, %v3317_v4  ;;  %v3332_v28 = vcvt.s32.f32 %v3331_v27  ;;  %v3467_v29 = vrot.slane %v3453_v44, %v4363_v10 }
 0x2a4   : > { %vm3320_vm10 = vcmp.lt.s32.totalorder %v3319_v53, %v3314_v36  ;;  %v3323_v39 = vsel %vm3322_vm9, %v3315_v14, %v3316_v41  ;;  %v3468_v59 = vcombine.high %v3460_v25, %v3460_v25  ;;  %v3475_v55 = vrot.slane %v3460_v25, %v4363_v10 }
 0x2a5   : > { %v3321_v34 = vsel %vm3320_vm10, %v3319_v53, %v3314_v36  ;;  %v4938_v46 = vadd.f32 %v3330_v54, %v4446_v16  ;;  %v4941_v45 = vadd.f32 %v3330_v54, %v4451_v18  ;;  %v3482_v2 = vrot.slane %v3467_v29, %v4363_v10 }
 0x2a6   : > { %vm3324_vm11 = vcmp.lt.s32.totalorder %v3321_v34, %v3323_v39  ;;  %v3489_v0 = vrot.slane %v3468_v59, %v4363_v10  ;;  %v3490_v43 = vcombine.high %v3475_v55, %v3475_v55  ;;  %v3495_v42 = vrot.slane %v3475_v55, %v4429_v62 }
 0x2a7   : > { %v3325_v9 = vsel %vm3324_vm11, %v3321_v34, %v3323_v39  ;;  %v4947_v52 = vadd.f32 %v3330_v54, %v4457_v21  ;;  %v4950_v6 = vadd.f32 %v3330_v54, %v4444_v15  ;;  %vm3444_vm12 = vcmp.gt.f32.partialorder %v3332_v28, 0.0 }
 0x2a8   : > { %3327 = vst.msk [vmem:[#allocation4 + $0x30] sm:$0x1f] %vm997_vm6, %v3325_v9  ;;  %v3511_v12 = vrot.slane %v3482_v2, %v4429_v62  ;;  %v3491_v35 = vcombine.high %v3489_v0, %v3489_v0  ;;  %v3499_v26 = vrot.slane %v3489_v0, %v4429_v62  ;;  %v3503_v37 = vrot.slane %v3490_v43, %v4429_v62 }
 0x2a9   : > { %v3517_v38 = vadd.f32 %v3495_v42, %v4938_v46  ;;  %v4958_v8 = vadd.f32 %v3330_v54, %v4465_v31  ;;  %v3445_v41 = vsel %vm3444_vm12, 1, %v5906_v63  ;;  %v3558_v42 = vld [vmem:[#allocation3 + $0x40] sm:$0x1f] }
 0x2aa   : > { %v3521_v14 = vadd.f32 %v3511_v12, %v4950_v6  ;;  %v3507_v27 = vrot.slane %v3491_v35, %v4429_v62  ;;  %v3518_v4 = vadd.f32 %v3499_v26, %v4941_v45  ;;  %v3519_v44 = vadd.f32 %v3503_v37, %v4947_v52 }
 0x2ab   : > { %v3522_v29 = vsel %vm997_vm6, %v3517_v38, -inf  ;;  %v3449_v54 = vrot.slane %v3445_v41, %v4429_v62  ;;  %v4983_v35 = vadd.f32 %v3558_v42, %v4446_v16  ;;  %v5975_v37 = vmov 0 }
 0x2ac   : > { %v3526_v53 = vsel %vm997_vm6, %v3521_v14, -inf  ;;  %v3520_v28 = vadd.f32 %v3507_v27, %v4958_v8  ;;  %v3523_v59 = vsel %vm997_vm6, %v3518_v4, -inf  ;;  %v3524_v55 = vsel %vm997_vm6, %v3519_v44, -inf }
 0x2ad   : > { %v4150_v36 = vpop.eup %4149  ;;  %v3527_v34 = vmax.f32 %v3522_v29, %v3526_v53  ;;  %5974 = vst [vmem:[#allocation11_spill] sm:$0xff] %v4983_v35  ;;  %vm4985_vm4 = vcmp.eq.s32.totalorder %v3449_v54, 1  ;;  %v4990_v41 = vadd.f32 %v3558_v42, %v4451_v18  ;;  %v4993_v56 = vadd.f32 %v3558_v42, %v4457_v21 }
 0x2ae   : > { %v2530_v25 = vmul.f32 0.6931472, %v4150_v36  ;;  %v3525_v2 = vsel %vm997_vm6, %v3520_v28, -inf  ;;  %v5976_v37 = vsel %vm4985_vm4, 4294967295, %v5975_v37 }
 0x2af   : > { %v3528_v9 = vmax.f32 %v3527_v34, %v3523_v59  ;;  %v3529_v0 = vmax.f32 %v3524_v55, %v3525_v2  ;;  %5977 = vst [vmem:[#allocation12_spill] sm:$0xff] %v5976_v37  ;;  %5978 = vst [vmem:[#allocation13_spill] sm:$0xff] %v4990_v41 }
 0x2b0   : > { %v2531_v39 = vadd.f32 %v2530_v25, %v4846_v40  ;;  %5979 = vst [vmem:[#allocation14_spill] sm:$0xff] %v4993_v56 }
 0x2b1   : > { %v3530_v26 = vmax.f32 %v3528_v9, %v3529_v0  ;;  %v5012_v9 = vadd.f32 %v3558_v42, %v4444_v15 }
 0x2b2   : > { %v4976_v43 = vsel %vm4671_vm0, %v2531_v39, %v4788_v33  ;;  %v4996_v33 = vadd.f32 %v3558_v42, %v4465_v31 }
 0x2b3   : > { %v2655_v12 = vcombine.high %v4976_v43, %v4976_v43  ;;  %v2662_v40 = vrot.slane %v4976_v43, %v4363_v10  ;;  %vm3531_vm0 = vcmp.ge.f32.partialorder %v3517_v38, %v3530_v26  ;;  %vm3532_vm13 = vcmp.ge.f32.partialorder %v3518_v4, %v3530_v26  ;;  %5981 = vst [vmem:[#allocation16_spill] sm:$0xff] %v5012_v9 }
 0x2b4   : > { %5980 = vst [vmem:[#allocation15_spill] sm:$0xff] %v4996_v33  ;;  %vm3533_vm15 = vcmp.ge.f32.partialorder %v3519_v44, %v3530_v26  ;;  %vm3534_vm1 = vcmp.ge.f32.partialorder %v3520_v28, %v3530_v26  ;;  %vm3535_vm2 = vcmp.ge.f32.partialorder %v3521_v14, %v3530_v26  ;;  %v3536_v39 = vsel %vm3531_vm0, 0, %v5904_v23 }
 0x2b5   : > { %v2669_v27 = vrot.slane %v2655_v12, %v4363_v10  ;;  %v2670_v36 = vcombine.high %v2662_v40, %v2662_v40  ;;  %v2677_v53 = vrot.slane %v2662_v40, %v4363_v10  ;;  %v3537_v59 = vsel %vm3532_vm13, 1, %v5904_v23 }
 0x2b6   : > { %v3538_v55 = vsel %vm3533_vm15, 2, %v5904_v23  ;;  %v3539_v2 = vsel %vm3534_vm1, 3, %v5904_v23  ;;  %v3540_v0 = vsel %vm3535_vm2, 4, %v5904_v23  ;;  %v3541_v12 = vsel %vm997_vm6, %v3536_v39, 2147483647 }
 0x2b7   : > { %v2684_v25 = vrot.slane %v2669_v27, %v4363_v10  ;;  %v2691_v29 = vrot.slane %v2670_v36, %v4363_v10  ;;  %v2692_v54 = vcombine.high %v2677_v53, %v2677_v53  ;;  %v2697_v34 = vrot.slane %v2677_v53, %v4429_v62 }
 0x2b8   : > { %v3544_v42 = vsel %vm997_vm6, %v3539_v2, 2147483647 }
 0x2b9   : > { %v2693_v38 = vcombine.high %v2691_v29, %v2691_v29  ;;  %v2701_v4 = vrot.slane %v2691_v29, %v4429_v62  ;;  %v2705_v14 = vrot.slane %v2692_v54, %v4429_v62  ;;  %v2713_v44 = vrot.slane %v2684_v25, %v4429_v62 }
 0x2ba   : > { %v2719_v28 = vadd.f32 %v2697_v34, %v4676_v58  ;;  %v3542_v25 = vsel %vm997_vm6, %v3537_v59, 2147483647  ;;  %v3543_v58 = vsel %vm997_vm6, %v3538_v55, 2147483647  ;;  %v5026_v29 = vsel %vm4985_vm4, %v3530_v26, %v4928_v61  ;;  %v3559_v59 = vld [vmem:[%s4342_s23 + $0x8] sm:$0x1] }
 0x2bb   : > { %v2709_v40 = vrot.slane %v2693_v38, %v4429_v62  ;;  %v2720_v27 = vadd.f32 %v2701_v4, %v4697_v1  ;;  %v2721_v36 = vadd.f32 %v2705_v14, %v4700_v5  ;;  %v2723_v53 = vadd.f32 %v2713_v44, %v4705_v24 }
 0x2bc   : > { %v2724_v34 = vsel %vm997_vm6, %v2719_v28, -inf  ;;  %v3545_v55 = vsel %vm997_vm6, %v3540_v0, 2147483647  ;;  %v3681_v2 = vcombine.high %v5026_v29, %v5026_v29  ;;  %vm3550_vm9 = vcmp.lt.s32.totalorder %v3543_v58, %v3544_v42 }
 0x2bd   : > { %v2722_v54 = vadd.f32 %v2709_v40, %v4723_v60  ;;  %v2725_v1 = vsel %vm997_vm6, %v2720_v27, -inf  ;;  %v2728_v5 = vsel %vm997_vm6, %v2723_v53, -inf  ;;  %v2726_v24 = vsel %vm997_vm6, %v2721_v36, -inf }
 0x2be   : > { %v2729_v39 = vmax.f32 %v2724_v34, %v2728_v5  ;;  %vm3546_vm7 = vcmp.lt.s32.totalorder %v3541_v12, %v3545_v55  ;;  %v3688_v60 = vrot.slane %v5026_v29, %v4363_v10  ;;  %v3695_v14 = vrot.slane %v3681_v2, %v4363_v10 }
 0x2bf   : > { %v2727_v61 = vsel %vm997_vm6, %v2722_v54, -inf  ;;  %v3547_v4 = vsel %vm3546_vm7, %v3541_v12, %v3545_v55  ;;  %v3560_v44 = vcvt.s32.f32 %v3559_v59  ;;  %v3551_v7 = vsel %vm3550_vm9, %v3543_v58, %v3544_v42 }
 0x2c0   : > { %v2730_v26 = vmax.f32 %v2729_v39, %v2725_v1  ;;  %v2731_v38 = vmax.f32 %v2726_v24, %v2727_v61  ;;  %vm3548_vm10 = vcmp.lt.s32.totalorder %v3547_v4, %v3542_v25  ;;  %v3696_v40 = vcombine.high %v3688_v60, %v3688_v60 }
 0x2c1   : > { %v3703_v0 = vrot.slane %v3688_v60, %v4363_v10  ;;  %v3549_v5 = vsel %vm3548_vm10, %v3547_v4, %v3542_v25  ;;  %v3710_v23 = vrot.slane %v3695_v14, %v4363_v10  ;;  %vm5055_vm12 = vcmp.gt.f32.partialorder %v3560_v44, 0.0 }
 0x2c2   : > { %v5042_v34 = vmax.f32 %v2730_v26, %v2731_v38  ;;  %vm3552_vm11 = vcmp.lt.s32.totalorder %v3549_v5, %v3551_v7  ;;  %v3717_v63 = vrot.slane %v3696_v40, %v4363_v10 }
 0x2c3   : > { %v3718_v13 = vcombine.high %v3703_v0, %v3703_v0  ;;  %v3723_v1 = vrot.slane %v3703_v0, %v4429_v62  ;;  %v3553_v25 = vsel %vm3552_vm11, %v3549_v5, %v3551_v7  ;;  %v5984_v0 = vmov 0  }
 0x2c4   : > { %v2733_v12 = vsub.f32 %v2719_v28, %v5042_v34  ;;  %v2734_v24 = vsub.f32 %v2720_v27, %v5042_v34  ;;  %v2735_v39 = vsub.f32 %v2721_v36, %v5042_v34  ;;  %v2736_v59 = vsub.f32 %v2722_v54, %v5042_v34  ;;  %3555 = vst.msk [vmem:[#allocation4 + $0x38] sm:$0x1f] %vm997_vm6, %v3553_v25 }
 0x2c5   : > { %v2737_v55 = vsub.f32 %v2723_v53, %v5042_v34  ;;  %v3719_v58 = vcombine.high %v3717_v63, %v3717_v63  ;;  %v3727_v42 = vrot.slane %v3717_v63, %v4429_v62  ;;  %v3731_v26 = vrot.slane %v3718_v13, %v4429_v62 }
 0x2c6   : > { %v2738_v2 = vmul.f32 1.442695, %v2733_v12  ;;  %v2740_v61 = vmul.f32 1.442695, %v2734_v24  ;;  %v2742_v60 = vmul.f32 1.442695, %v2735_v39  ;;  %v3739_v53 = vrot.slane %v3710_v23, %v4429_v62 }
 0x2c7   : > { %v2744_v28 = vmul.f32 1.442695, %v2736_v59  ;;  %v3735_v36 = vrot.slane %v3719_v58, %v4429_v62  ;;  %v2746_v7 = vmul.f32 1.442695, %v2737_v55  ;;  %v3745_v63 = vadd.f32 %v3723_v1, %v4983_v35 }
 0x2c8   : > { %4151 = vpow2.f32 %v2738_v2  ;;  %v3747_v54 = vadd.f32 %v3731_v26, %v4993_v56  ;;  %v3746_v38 = vadd.f32 %v3727_v42, %v4990_v41  ;;  %v3749_v4 = vadd.f32 %v3739_v53, %v5012_v9 }
 0x2c9   : > { %4153 = vpow2.f32 %v2740_v61  ;;  %v3748_v13 = vadd.f32 %v3735_v36, %v4996_v33  ;;  %v3750_v14 = vsel %vm997_vm6, %v3745_v63, -inf  ;;  %v3673_v5 = vsel %vm5055_vm12, 1, %v5984_v0 }
 0x2ca   : > { %4155 = vpow2.f32 %v2742_v60  ;;  %v3752_v44 = vsel %vm997_vm6, %v3747_v54, -inf  ;;  %v3754_v40 = vsel %vm997_vm6, %v3749_v4, -inf  ;;  %v3751_v24 = vsel %vm997_vm6, %v3746_v38, -inf }
 0x2cb   : > { %4157 = vpow2.f32 %v2744_v28  ;;  %v3753_v23 = vsel %vm997_vm6, %v3748_v13, -inf  ;;  %v3755_v1 = vmax.f32 %v3750_v14, %v3754_v40  ;;  %v3677_v59 = vrot.slane %v3673_v5, %v4429_v62  ;;  %v5093_v40 = vpop.permute.xlu0 %2023 }
 0x2cc   : > { %v3757_v12 = vmax.f32 %v3752_v44, %v3753_v23  ;;  %4159 = vpow2.f32 %v2746_v7  ;;  %v5985_v2 = vmov 0  ;;  %v5988_v61 = vmov 5   ;;  %5989 = vst [vmem:[#allocation18_spill] sm:$0xff] %v5093_v40 }
 0x2cd   : > { %v3756_v39 = vmax.f32 %v3755_v1, %v3751_v24  ;;  %vm5076_vm2 = vcmp.eq.s32.totalorder %v3677_v59, 1 }
 0x2ce   : > { %v5986_v2 = vsel %vm5076_vm2, 4294967295, %v5985_v2 }
 0x2cf   : > { %v3758_v55 = vmax.f32 %v3756_v39, %v3757_v12  ;;  %5987 = vst [vmem:[#allocation17_spill] sm:$0xff] %v5986_v2 }
 0x2d1   : > { %vm3759_vm0 = vcmp.ge.f32.partialorder %v3745_v63, %v3758_v55  ;;  %vm3760_vm13 = vcmp.ge.f32.partialorder %v3746_v38, %v3758_v55  ;;  %vm3761_vm15 = vcmp.ge.f32.partialorder %v3747_v54, %v3758_v55  ;;  %vm3762_vm1 = vcmp.ge.f32.partialorder %v3748_v13, %v3758_v55 }
 0x2d2   : > { %v4152_v25 = vpop.eup %4151  ;;  %vm3763_vm7 = vcmp.ge.f32.partialorder %v3749_v4, %v3758_v55  ;;  %v3764_v60 = vsel %vm3759_vm0, 0, %v5988_v61  ;;  %v3766_v27 = vsel %vm3761_vm15, 2, %v5988_v61  ;;  %v3767_v36 = vsel %vm3762_vm1, 3, %v5988_v61 }
 0x2d3   : > { %v4154_v58 = vpop.eup %4153  ;;  %v2748_v42 = vsel %vm997_vm6, %v4152_v25, 0.0  ;;  %v3768_v53 = vsel %vm3763_vm7, 4, %v5988_v61  ;;  %v3765_v54 = vsel %vm3760_vm13, 1, %v5988_v61  ;;  %v3769_v38 = vsel %vm997_vm6, %v3764_v60, 2147483647 }
 0x2d4   : > { %v4156_v26 = vpop.eup %4155  ;;  %v2749_v28 = vsel %vm997_vm6, %v4154_v58, 0.0  ;;  %v3771_v4 = vsel %vm997_vm6, %v3766_v27, 2147483647  ;;  %v3772_v14 = vsel %vm997_vm6, %v3767_v36, 2147483647  ;;  %v3784_v44 = vsel %vm5076_vm2, %v3758_v55, %v5026_v29 }
 0x2d5   : > { %v4158_v7 = vpop.eup %4157  ;;  %v2750_v63 = vadd.f32 %v2749_v28, %v2748_v42  ;;  %v2751_v13 = vsel %vm997_vm6, %v4156_v26, 0.0  ;;  %v3773_v5 = vsel %vm997_vm6, %v3768_v53, 2147483647  ;;  %vm3778_vm10 = vcmp.lt.s32.totalorder %v3771_v4, %v3772_v14 }
 0x2d6   : > { %v4160_v23 = vpop.eup %4159  ;;  %v2753_v1 = vsel %vm997_vm6, %v4158_v7, 0.0  ;;  %vm3774_vm9 = vcmp.lt.s32.totalorder %v3769_v38, %v3773_v5  ;;  %v3821_v12 = vadd.f32 %v3784_v44, %v5093_v40  ;;  %v3770_v39 = vsel %vm997_vm6, %v3765_v54, 2147483647 }
 0x2d7   : > { %v2752_v0 = vadd.f32 %v2751_v13, %v2750_v63  ;;  %v3775_v59 = vsel %vm3774_vm9, %v3769_v38, %v3773_v5  ;;  %v2755_v25 = vsel %vm997_vm6, %v4160_v23, 0.0  ;;  %v3779_v42 = vsel %vm3778_vm10, %v3771_v4, %v3772_v14 }
 0x2d8   : > { %vm3776_vm11 = vcmp.lt.s32.totalorder %v3775_v59, %v3770_v39  ;;  %v3822_v29 = vsel %vm997_vm6, %v3821_v12, -inf  ;;  %vm1275_vm1 = vcmask 15360   ;;  %vm1277_vm7 = vcmask 8192  }
 0x2d9   : > { %v2754_v24 = vadd.f32 %v2753_v1, %v2752_v0  ;;  %v3777_v58 = vsel %vm3776_vm11, %v3775_v59, %v3770_v39  ;;  %v3823_v61 = vrot.slane %v3822_v29, 4 }
 0x2da   : > { %vm3780_vm12 = vcmp.lt.s32.totalorder %v3777_v58, %v3779_v42 }
 0x2db   : > { %v2756_v55 = vadd.f32 %v2755_v25, %v2754_v24  ;;  %v3781_v60 = vsel %vm3780_vm12, %v3777_v58, %v3779_v42  ;;  %v3824_v26 = vmax.f32 %v3822_v29, %v3823_v61 }
 0x2dc   : > { %3783 = vst.msk [vmem:[#allocation4 + $0x40] sm:$0x1f] %vm997_vm6, %v3781_v60 }
 0x2dd   : > { %4161 = vlog2.f32 %v2756_v55  ;;  %v3825_v28 = vrot.slane %v3824_v26, 2 }
 0x2df   : > { %v3826_v27 = vmax.f32 %v3824_v26, %v3825_v28 }
 0x2e1   : > { %v3827_v36 = vrot.slane %v3826_v27, 1 }
 0x2e3   : > { %v3828_v53 = vmax.f32 %v3826_v27, %v3827_v36 }
 0x2e5   : > { %vm3829_vm0 = vcmp.ge.f32.partialorder %v3821_v12, %v3828_v53 }
 0x2e6   : > { %v3830_v54 = vsel %vm3829_vm0, %v4324_v3, 5 }
 0x2e7   : > { %v4162_v7 = vpop.eup %4161  ;;  %v3831_v38 = vsel %vm997_vm6, %v3830_v54, 2147483647 }
 0x2e8   : > { %v2758_v63 = vmul.f32 0.6931472, %v4162_v7  ;;  %v3832_v4 = vrot.slane %v3831_v38, 4 }
 0x2ea   : > { %v2759_v13 = vadd.f32 %v2758_v63, %v5042_v34  ;;  %vm3833_vm13 = vcmp.lt.s32.totalorder %v3831_v38, %v3832_v4 }
 0x2eb   : > { %v3834_v0 = vsel %vm3833_vm13, %v3831_v38, %v3832_v4 }
 0x2ec   : > { %v5108_v14 = vsel %vm4742_vm14, %v2759_v13, %v4976_v43  ;;  %v3835_v5 = vrot.slane %v3834_v0, 2 }
 0x2ed   : > { %v2883_v44 = vcombine.high %v5108_v14, %v5108_v14  ;;  %v2890_v23 = vrot.slane %v5108_v14, %v4363_v10 }
 0x2ee   : > { %vm3836_vm15 = vcmp.lt.s32.totalorder %v3834_v0, %v3835_v5 }
 0x2ef   : > { %v2897_v1 = vrot.slane %v2883_v44, %v4363_v10  ;;  %v2898_v12 = vcombine.high %v2890_v23, %v2890_v23  ;;  %v2905_v34 = vrot.slane %v2890_v23, %v4363_v10  ;;  %v3837_v59 = vsel %vm3836_vm15, %v3834_v0, %v3835_v5 }
 0x2f0   : > { %v3838_v61 = vrot.slane %v3837_v59, 1 }
 0x2f1   : > { %v2912_v24 = vrot.slane %v2897_v1, %v4363_v10  ;;  %v2919_v30 = vrot.slane %v2898_v12, %v4363_v10  ;;  %v2920_v43 = vcombine.high %v2905_v34, %v2905_v34  ;;  %v2925_v39 = vrot.slane %v2905_v34, %v4429_v62  ;;  %v1006_v34 = vld [vmem:[%s4348_s26] sm:$0xff] }
 0x2f2   : > { %vm3839_vm14 = vcmp.lt.s32.totalorder %v3837_v59, %v3838_v61 }
 0x2f3   : > { %v2921_v25 = vcombine.high %v2919_v30, %v2919_v30  ;;  %v2929_v29 = vrot.slane %v2919_v30, %v4429_v62  ;;  %v2933_v55 = vrot.slane %v2920_v43, %v4429_v62  ;;  %v2941_v58 = vrot.slane %v2912_v24, %v4429_v62 }
 0x2f4   : > { %v2947_v42 = vadd.f32 %v2925_v39, %v4766_v48  ;;  %v5130_v54 = vsel %vm3839_vm14, %v3837_v59, %v3838_v61   ;;  %v1015_v43 = vrot.slane %v1006_v34, %v4363_v10  ;;  %v5145_v39 = vld [vmem:[%s4342_s23] sm:$0xff]  ;;  %v5148_v59 = vld [vmem:[%s4342_s23 + $0x8] sm:$0x1] }
 0x2f5   : > { %v2937_v60 = vrot.slane %v2921_v25, %v4429_v62  ;;  %v2948_v26 = vadd.f32 %v2929_v29, %v4772_v11  ;;  %v2949_v28 = vadd.f32 %v2933_v55, %v4778_v22  ;;  %v2951_v27 = vadd.f32 %v2941_v58, %v4794_v32  ;;  %5990 = vst [vmem:[#allocation19_spill] sm:$0xff] %v5130_v54 }
 0x2f6   : > { %v2952_v53 = vsel %vm997_vm6, %v2947_v42, -inf  ;;  %5991 = vst [vmem:[#allocation20_spill] sm:$0xff] %v5148_v59  ;;  %v1008_v25 = vcombine.high %v1006_v34, %v1006_v34  ;;  %v1023_v29 = vcombine.high %v1015_v43, %v1015_v43  ;;  %v1031_v55 = vrot.slane %v1015_v43, %v4363_v10 }
 0x2f7   : > { %v2950_v36 = vadd.f32 %v2937_v60, %v4791_v19  ;;  %v2956_v7 = vsel %vm997_vm6, %v2951_v27, -inf  ;;  %v2953_v48 = vsel %vm997_vm6, %v2948_v26, -inf  ;;  %v2954_v38 = vsel %vm997_vm6, %v2949_v28, -inf }
 0x2f8   : > { %v2957_v63 = vmax.f32 %v2952_v53, %v2956_v7  ;;  %v1868_v58 = vsel %vm1275_vm1, %v5145_v39, 0  ;;  %v1022_v60 = vrot.slane %v1008_v25, %v4363_v10 }
 0x2f9   : > { %v2955_v11 = vsel %vm997_vm6, %v2950_v36, -inf }
 0x2fa   : > { %v2958_v22 = vmax.f32 %v2957_v63, %v2953_v48  ;;  %v2959_v13 = vmax.f32 %v2954_v38, %v2955_v11  ;;  %v1053_v48 = vcombine.high %v1031_v55, %v1031_v55  ;;  %v1024_v11 = vcombine.high %v1022_v60, %v1022_v60 }
 0x2fc   : > { %v5135_v32 = vmax.f32 %v2958_v22, %v2959_v13 }
 0x2fe   : > { %v2961_v19 = vsub.f32 %v2947_v42, %v5135_v32  ;;  %v2962_v4 = vsub.f32 %v2948_v26, %v5135_v32  ;;  %v2963_v44 = vsub.f32 %v2949_v28, %v5135_v32  ;;  %v2964_v23 = vsub.f32 %v2950_v36, %v5135_v32 }
 0x2ff   : > { %v2965_v0 = vsub.f32 %v2951_v27, %v5135_v32  ;;  %v1869_v42 = vsel %vm1277_vm7, %v5148_v59, 0  ;;  %v1045_v26 = vrot.slane %v1023_v29, %v4363_v10 }
 0x300   : > { %v2966_v5 = vmul.f32 1.442695, %v2961_v19  ;;  %v2968_v1 = vmul.f32 1.442695, %v2962_v4  ;;  %v2970_v12 = vmul.f32 1.442695, %v2963_v44  ;;  %v1870_v53 = vadd.s32 %v1869_v42, %v1868_v58 }
 0x301   : > { %v2972_v24 = vmul.f32 1.442695, %v2964_v23  ;;  %v2974_v30 = vmul.f32 1.442695, %v2965_v0  ;;  %v1055_v22 = vcombine.high %v1045_v26, %v1045_v26  ;;  %v1078_v4 = vrot.slane %v1045_v26, %v4429_v62 }
 0x302   : > { %4163 = vpow2.f32 %v2966_v5  ;;  %v1038_v23 = vrot.slane %v1022_v60, %v4363_v10  ;;  %v1871_v0 = vrot.slane %v1870_v53, 4  ;;  %v4032_v42 = vld.sshfl [vmem:[%s4348_s26 + $0x8] sm:$0x1 pattern:$0x75316420]  ;;  %v5992_v60 = vmov 0.0  }
 0x303   : > { %4165 = vpow2.f32 %v2968_v1  ;;  %v1074_v1 = vrot.slane %v1031_v55, %v4429_v62  ;;  %vm1108_vm9 = vcmp.eq.s32.totalorder %v4324_v3, %v1078_v4 }
 0x304   : > { %4167 = vpow2.f32 %v2970_v12  ;;  %v1082_v12 = vrot.slane %v1053_v48, %v4429_v62  ;;  %v1054_v29 = vcombine.high %v1038_v23, %v1038_v23  ;;  %v1872_v58 = vadd.s32 %v1871_v0, %v1870_v53  ;;  %v1136_v48 = vld [vmem:[#allocation3 + $0x10] sm:$0x1f] }
 0x305   : > { %4169 = vpow2.f32 %v2972_v24  ;;  %v1052_v24 = vrot.slane %v1024_v11, %v4363_v10  ;;  %vm1107_vm10 = vcmp.eq.s32.totalorder %v4324_v3, %v1074_v1  ;;  %v5175_v26 = vsel %vm1108_vm9, 1.0, %v5992_v60 }
 0x306   : > { %4171 = vpow2.f32 %v2974_v30  ;;  %v1086_v30 = vrot.slane %v1055_v22, %v4429_v62  ;;  %vm1109_vm11 = vcmp.eq.s32.totalorder %v4324_v3, %v1082_v12  ;;  %v1098_v53 = vrot.slane %v1054_v29, %v4429_v62 }
 0x307   : > { %v1056_v55 = vcombine.high %v1052_v24, %v1052_v24  ;;  %v1070_v11 = vrot.slane %v4032_v42, %v4363_v10 }
 0x308   : > { %vm1110_vm12 = vcmp.eq.s32.totalorder %v4324_v3, %v1086_v30  ;;  %vm1113_vm15 = vcmp.eq.s32.totalorder %v4324_v3, %v1098_v53  ;;  %v5203_v30 = vcvt.s32.f32 %v5145_v39 }
 0x309   : > { %v5188_v22 = vsel %vm1110_vm12, 1.0, %v5992_v60  ;;  %v1102_v4 = vrot.slane %v1056_v55, %v4429_v62  ;;  %v5210_v42 = vsel %vm1113_vm15, 1.0, %v5992_v60  ;;  %vm1262_vm12 = vcmask 1044484  }
 0x30a   : > { %5993 = vst [vmem:[#allocation21_spill] sm:$0xff] %v5203_v30 }
 0x30b   : > { %vm1114_vm14 = vcmp.eq.s32.totalorder %v4324_v3, %v1102_v4 }
 0x30c   : > { %v4164_v61 = vpop.eup %4163 }
 0x30d   : > { %v4166_v28 = vpop.eup %4165  ;;  %v2976_v27 = vsel %vm997_vm6, %v4164_v61, 0.0  ;;  %v1090_v61 = vrot.slane %v1038_v23, %v4429_v62 }
 0x30e   : > { %v4168_v36 = vpop.eup %4167  ;;  %v2977_v7 = vsel %vm997_vm6, %v4166_v28, 0.0  ;;  %v1135_v28 = vld [vmem:[#allocation3 + $0x8] sm:$0x1f] }
 0x30f   : > { %v4170_v63 = vpop.eup %4169  ;;  %v2978_v38 = vadd.f32 %v2977_v7, %v2976_v27  ;;  %v2979_v13 = vsel %vm997_vm6, %v4168_v36, 0.0  ;;  %v1094_v27 = vrot.slane %v1052_v24, %v4429_v62  ;;  %v1134_v36 = vld [vmem:[#allocation3] sm:$0x1f]  ;;  %v5180_v7 = vsel %vm1107_vm10, 1.0, %v5992_v60 }
 0x310   : > { %v4172_v19 = vpop.eup %4171  ;;  %v2981_v5 = vsel %vm997_vm6, %v4170_v63, 0.0  ;;  %v5183_v63 = vsel %vm1109_vm11, 1.0, %v5992_v60  ;;  %vm1111_vm0 = vcmp.eq.s32.totalorder %v4324_v3, %v1090_v61  ;;  %v1140_v61 = vld [vmem:[#allocation3 + $0x30] sm:$0x1f]  ;;  %vm1256_vm10 = vcmask 1042434  }
 0x311   : > { %v2980_v44 = vadd.f32 %v2979_v13, %v2978_v38  ;;  %v2983_v43 = vsel %vm997_vm6, %v4172_v19, 0.0  ;;  %v1873_v38 = vrot.slane %v1872_v58, 2  ;;  %v1137_v13 = vld [vmem:[#allocation3 + $0x18] sm:$0x1f]  ;;  %v1144_v19 = vmul.f32 %v5175_v26, %v1135_v28 }
 0x312   : > { %vm1112_vm13 = vcmp.eq.s32.totalorder %v4324_v3, %v1094_v27  ;;  %v1145_v23 = vmul.f32 %v5183_v63, %v1136_v48  ;;  %v5197_v0 = vsel %vm1111_vm0, 1.0, %v5992_v60  ;;  %v1146_v1 = vmul.f32 %v5188_v22, %v1137_v13 }
 0x313   : > { %v2982_v34 = vadd.f32 %v2981_v5, %v2980_v44  ;;  %v1143_v44 = vmul.f32 %v5180_v7, %v1134_v36  ;;  %v1138_v5 = vld [vmem:[#allocation3 + $0x20] sm:$0x1f]  ;;  %v1874_v12 = vadd.s32 %v1873_v38, %v1872_v58  ;;  %v1160_v24 = vsel %vm997_vm6, %v1144_v19, 0.0 }
 0x314   : > { %v1147_v58 = vmul.f32 %v5197_v0, %v1138_v5  ;;  %v1167_v28 = vsel %vm997_vm6, %v1145_v23, 0.0  ;;  %v1161_v27 = vrot.slane %v1160_v24, 4  ;;  %v1174_v39 = vsel %vm997_vm6, %v1146_v1, 0.0  ;;  %v1141_v23 = vld [vmem:[#allocation3 + $0x38] sm:$0x1f] }
 0x315   : > { %v2984_v25 = vadd.f32 %v2983_v43, %v2982_v34  ;;  %v1106_v34 = vrot.slane %v1070_v11, %v4429_v62  ;;  %v5207_v43 = vsel %vm1112_vm13, 1.0, %v5992_v60  ;;  %v1153_v55 = vsel %vm997_vm6, %v1143_v44, 0.0 }
 0x316   : > { %v1875_v36 = vrot.slane %v1874_v12, 1  ;;  %v1149_v38 = vmul.f32 %v5210_v42, %v1140_v61  ;;  %v1154_v11 = vrot.slane %v1153_v55, 4  ;;  %v1168_v13 = vrot.slane %v1167_v28, 4 }
 0x317   : > { %4173 = vlog2.f32 %v2984_v25  ;;  %v1139_v25 = vld [vmem:[#allocation3 + $0x28] sm:$0x1f]  ;;  %vm1115_vm9 = vcmp.eq.s32.totalorder %v4324_v3, %v1106_v34  ;;  %v5223_v44 = vsel %vm1114_vm14, 1.0, %v5992_v60  ;;  %v1175_v5 = vrot.slane %v1174_v39, 4 }
 0x318   : > { %v1148_v48 = vmul.f32 %v5207_v43, %v1139_v25  ;;  %v1181_v34 = vsel %vm997_vm6, %v1147_v58, 0.0  ;;  %v1876_v54 = vadd.s32 %v1875_v36, %v1874_v12  ;;  %v1155_v58 = vadd.f32 %v1154_v11, %v1153_v55 }
 0x319   : > { %v1169_v12 = vadd.f32 %v1168_v13, %v1167_v28  ;;  %v1182_v49 = vrot.slane %v1181_v34, 4  ;;  %vm1259_vm11 = vcmask 1043459   ;;  %vm1265_vm13 = vcmask 1045509  }
 0x31a   : > { %v1188_v4 = vsel %vm997_vm6, %v1148_v48, 0.0  ;;  %v1176_v48 = vadd.f32 %v1175_v5, %v1174_v39  ;;  %v5244_v2 = vadd.s32 4294967295, %v1876_v54  ;;  %v1156_v28 = vrot.slane %v1155_v58, 2 }
 0x31b   : > { %v1189_v40 = vrot.slane %v1188_v4, 4  ;;  %v1183_v56 = vadd.f32 %v1182_v49, %v1181_v34 }
 0x31c   : > { %5995 = vst [vmem:[#allocation23_spill] sm:$0xff] %v5244_v2 }
 0x31d   : > { %v1190_v35 = vadd.f32 %v1189_v40, %v1188_v4  ;;  %v1184_v49 = vrot.slane %v1183_v56, 2 }
 0x31f   : > { %v1185_v21 = vadd.f32 %v1184_v49, %v1183_v56 }
 0x321   : > { %v4174_v29 = vpop.eup %4173 }
 0x322   : > { %v2986_v53 = vmul.f32 0.6931472, %v4174_v29  ;;  %v1162_v29 = vadd.f32 %v1161_v27, %v1160_v24  ;;  %v1150_v24 = vmul.f32 %v5223_v44, %v1141_v23  ;;  %v1195_v27 = vsel %vm997_vm6, %v1149_v38, 0.0 }
 0x323   : > { %v1170_v38 = vrot.slane %v1169_v12, 2  ;;  %v1196_v11 = vrot.slane %v1195_v27, 4 }
 0x324   : > { %v2987_v19 = vadd.f32 %v2986_v53, %v5135_v32  ;;  %v5233_v32 = vsel %vm1115_vm9, 1.0, %v5992_v60  ;;  %v1163_v1 = vrot.slane %v1162_v29, 2  ;;  %v1202_v13 = vsel %vm997_vm6, %v1150_v24, 0.0 }
 0x325   : > { %5994 = vst [vmem:[#allocation22_spill] sm:$0xff] %v5233_v32  ;;  %v1203_v31 = vrot.slane %v1202_v13, 4 }
 0x326   : > { %v5230_v25 = vsel %vm4837_vm3, %v2987_v19, %v5108_v14  ;;  %v1164_v5 = vadd.f32 %v1163_v1, %v1162_v29  ;;  %vm1879_vm3 = vcmp.eq.s32.totalorder %v4324_v3, %v5244_v2 }
 0x327   : > { %v3111_v61 = vcombine.high %v5230_v25, %v5230_v25  ;;  %v3118_v53 = vrot.slane %v5230_v25, %v4363_v10 }
 0x328   : > { %v1165_v40 = vrot.slane %v1164_v5, 1 }
 0x329   : > { %v3125_v14 = vrot.slane %v3111_v61, %v4363_v10  ;;  %v3126_v36 = vcombine.high %v3118_v53, %v3118_v53  ;;  %v3133_v19 = vrot.slane %v3118_v53, %v4363_v10 }
 0x32a   : > { %v1166_v37 = vadd.f32 %v1165_v40, %v1164_v5 }
 0x32b   : > { %v3140_v33 = vrot.slane %v3125_v14, %v4363_v10  ;;  %v3147_v9 = vrot.slane %v3126_v36, %v4363_v10  ;;  %v3148_v23 = vcombine.high %v3133_v19, %v3133_v19  ;;  %v3153_v55 = vrot.slane %v3133_v19, %v4429_v62 }
 0x32d   : > { %v3149_v61 = vcombine.high %v3147_v9, %v3147_v9  ;;  %v3157_v53 = vrot.slane %v3147_v9, %v4429_v62  ;;  %v3161_v39 = vrot.slane %v3148_v23, %v4429_v62  ;;  %v3169_v54 = vrot.slane %v3140_v33, %v4429_v62 }
 0x32e   : > { %v3175_v14 = vadd.f32 %v3153_v55, %v4852_v20  ;;  %v1177_v9 = vrot.slane %v1176_v48, 2  ;;  %v1197_v23 = vadd.f32 %v1196_v11, %v1195_v27  ;;  %v1157_v33 = vadd.f32 %v1156_v28, %v1155_v58 }
 0x32f   : > { %v3165_v36 = vrot.slane %v3149_v61, %v4429_v62  ;;  %v3176_v19 = vadd.f32 %v3157_v53, %v4873_v47  ;;  %v3177_v24 = vadd.f32 %v3161_v39, %v4876_v50  ;;  %v3179_v41 = vadd.f32 %v3169_v54, %v4883_v51  ;;  %v1142_v51 = vld [vmem:[#allocation3 + $0x40] sm:$0x1f] }
 0x330   : > { %v3180_v29 = vsel %vm997_vm6, %v3175_v14, -inf  ;;  %v1171_v20 = vadd.f32 %v1170_v38, %v1169_v12  ;;  %v5267_v47 = vsel %vm1879_vm3, 1.0, %v5992_v60  ;;  %v1178_v38 = vadd.f32 %v1177_v9, %v1176_v48 }
 0x331   : > { %v3178_v1 = vadd.f32 %v3165_v36, %v4892_v17  ;;  %v3184_v34 = vsel %vm997_vm6, %v3179_v41, -inf  ;;  %v3181_v4 = vsel %vm997_vm6, %v3176_v19, -inf  ;;  %v3182_v58 = vsel %vm997_vm6, %v3177_v24, -inf }
 0x332   : > { %v3185_v50 = vmax.f32 %v3180_v29, %v3184_v34  ;;  %v1204_v11 = vadd.f32 %v1203_v31, %v1202_v13  ;;  %v1894_v53 = vrot.slane %v5267_v47, %v4363_v10  ;;  %v1151_v39 = vmul.f32 %v5233_v32, %v1142_v51 }
 0x333   : > { %v3183_v17 = vsel %vm997_vm6, %v3178_v1, -inf  ;;  %v1191_v54 = vrot.slane %v1190_v35, 2  ;;  %v1198_v36 = vrot.slane %v1197_v23, 2  ;;  %v1158_v34 = vrot.slane %v1157_v33, 1 }
 0x334   : > { %v3186_v55 = vmax.f32 %v3185_v50, %v3181_v4  ;;  %v3187_v28 = vmax.f32 %v3182_v58, %v3183_v17  ;;  %v1172_v27 = vrot.slane %v1171_v20, 1  ;;  %v1179_v9 = vrot.slane %v1178_v38, 1 }
 0x335   : > { %v1205_v4 = vrot.slane %v1204_v11, 2  ;;  %v1902_v58 = vcombine.high %v1894_v53, %v1894_v53  ;;  %v1192_v17 = vadd.f32 %v1191_v54, %v1190_v35  ;;  %v1159_v5 = vadd.f32 %v1158_v34, %v1157_v33 }
 0x336   : > { %v5278_v29 = vmax.f32 %v3186_v55, %v3187_v28  ;;  %v1199_v40 = vadd.f32 %v1198_v36, %v1197_v23  ;;  %v1209_v56 = vsel %vm997_vm6, %v1151_v39, 0.0  ;;  %v1173_v49 = vadd.f32 %v1172_v27, %v1171_v20 }
 0x337   : > { %v1193_v54 = vrot.slane %v1192_v17, 1  ;;  %v1210_v33 = vrot.slane %v1209_v56, 4  ;;  %v1180_v23 = vadd.f32 %v1179_v9, %v1178_v38  ;;  %v5923_v39 = vrot.slane %v5203_v30, 5 }
 0x338   : > { %v3189_v50 = vsub.f32 %v3175_v14, %v5278_v29  ;;  %v3190_v48 = vsub.f32 %v3176_v19, %v5278_v29  ;;  %v3191_v31 = vsub.f32 %v3177_v24, %v5278_v29  ;;  %v3192_v13 = vsub.f32 %v3178_v1, %v5278_v29 }
 0x339   : > { %v3193_v51 = vsub.f32 %v3179_v41, %v5278_v29  ;;  %v1186_v19 = vrot.slane %v1185_v21, 1  ;;  %v5996_v24 = vrot.slane %v5203_v30, 1  ;;  %v1910_v1 = vrot.slane %v1894_v53, %v4363_v10 }
 0x33a   : > { %v3194_v55 = vmul.f32 1.442695, %v3189_v50  ;;  %v3196_v28 = vmul.f32 1.442695, %v3190_v48  ;;  %v3198_v61 = vmul.f32 1.442695, %v3191_v31  ;;  %v1924_v41 = vrot.slane %v1902_v58, %v4363_v10 }
 0x33b   : > { %v3200_v14 = vmul.f32 1.442695, %v3192_v13  ;;  %v1235_v12 = vmul.f32 %v5996_v24, %v1166_v37  ;;  %v3202_v35 = vmul.f32 1.442695, %v3193_v51  ;;  %v1206_v50 = vadd.f32 %v1205_v4, %v1204_v11 }
 0x33c   : > { %4175 = vpow2.f32 %v3194_v55  ;;  %v1887_v20 = vcombine.high %v5267_v47, %v5267_v47  ;;  %v1200_v37 = vrot.slane %v1199_v40, 1  ;;  %v1234_v27 = vmul.f32 %v1159_v5, %v5203_v30 }
 0x33d   : > { %4177 = vpow2.f32 %v3196_v28  ;;  %v5997_v53 = vrot.slane %v5203_v30, 2  ;;  %v1252_v34 = vrot.slane %v1235_v12, 7  ;;  %v1932_v48 = vcombine.high %v1910_v1, %v1910_v1 }
 0x33e   : > { %4179 = vpow2.f32 %v3198_v61  ;;  %v1953_v11 = vrot.slane %v1910_v1, %v4429_v62  ;;  %v1957_v61 = vrot.slane %v1924_v41, %v4429_v62  ;;  %v1187_v38 = vadd.f32 %v1186_v19, %v1185_v21 }
 0x33f   : > { %4181 = vpow2.f32 %v3200_v14  ;;  %v1236_v36 = vmul.f32 %v5997_v53, %v1173_v49  ;;  %v1194_v31 = vadd.f32 %v1193_v54, %v1192_v17  ;;  %v1207_v13 = vrot.slane %v1206_v50, 1 }
 0x340   : > { %4183 = vpow2.f32 %v3202_v35  ;;  %v1211_v9 = vadd.f32 %v1210_v33, %v1209_v56  ;;  %v5922_v4 = vrot.slane %v5203_v30, 6  ;;  %v5998_v58 = vrot.slane %v5203_v30, 3 }
 0x341   : > { %v1901_v12 = vrot.slane %v1887_v20, %v4363_v10  ;;  %v1201_v55 = vadd.f32 %v1200_v37, %v1199_v40  ;;  %v5921_v28 = vrot.slane %v5203_v30, 7  ;;  %v1255_v5 = vrot.slane %v1236_v36, 6 }
 0x342   : > { %v1237_v51 = vmul.f32 %v5998_v58, %v1180_v23  ;;  %v1934_v14 = vcombine.high %v1924_v41, %v1924_v41  ;;  %v1254_v21 = vsel %vm918_vm5, %v1252_v34, %v1234_v27  ;;  %v1961_v17 = vrot.slane %v1932_v48, %v4429_v62 }
 0x343   : > { %v1995_v56 = vmul.f32 %v5180_v7, %v1953_v11  ;;  %v1996_v49 = vmul.f32 %v5175_v26, %v1957_v61  ;;  %v1208_v24 = vadd.f32 %v1207_v13, %v1206_v50  ;;  %v1212_v1 = vrot.slane %v1211_v9, 2 }
 0x344   : > { %v5999_v35 = vrot.slane %v5203_v30, 4  ;;  %v1239_v40 = vmul.f32 %v5923_v39, %v1194_v31  ;;  %v1258_v23 = vrot.slane %v1237_v51, 5  ;;  %v1903_v41 = vcombine.high %v1901_v12, %v1901_v12 }
 0x345   : > { %v1917_v20 = vrot.slane %v1901_v12, %v4363_v10  ;;  %v1257_v53 = vsel %vm1256_vm10, %v1255_v5, %v1254_v21  ;;  %v1878_v36 = vadd.s32 8, %v4324_v3  ;;  %v1965_v50 = vrot.slane %v1934_v14, %v4429_v62 }
 0x346   : > { %v4176_v19 = vpop.eup %4175  ;;  %v1238_v54 = vmul.f32 %v5999_v35, %v1187_v38  ;;  %v1997_v11 = vmul.f32 %v5183_v63, %v1961_v17  ;;  %v2004_v61 = vsel %vm997_vm6, %v1995_v56, 0.0  ;;  %v2005_v38 = vsel %vm997_vm6, %v1996_v49, 0.0 }
 0x347   : > { %v4178_v33 = vpop.eup %4177  ;;  %v3204_v37 = vsel %vm997_vm6, %v4176_v19, 0.0  ;;  %v5321_v13 = vadd.f32 %v1212_v1, %v1211_v9  ;;  %v5325_v58 = vmul.f32 %v5922_v4, %v1201_v55  ;;  %v1260_v14 = vsel %vm1259_vm11, %v1258_v23, %v1257_v53 }
 0x348   : > { %v4180_v27 = vpop.eup %4179  ;;  %v3205_v34 = vsel %vm997_vm6, %v4178_v33, 0.0  ;;  %v1261_v51 = vrot.slane %v1238_v54, 4  ;;  %v5330_v21 = vrot.slane %v1903_v41, %v4363_v10  ;;  %v1969_v17 = vrot.slane %v1917_v20, %v4429_v62 }
 0x349   : > { %v4182_v48 = vpop.eup %4181  ;;  %v3206_v31 = vadd.f32 %v3205_v34, %v3204_v37  ;;  %6000 = vst [vmem:[#allocation24_spill] sm:$0xff] %v5321_v13  ;;  %6001 = vst [vmem:[#allocation25_spill] sm:$0xff] %v5325_v58  ;;  %v3207_v12 = vsel %vm997_vm6, %v4180_v27, 0.0  ;;  %vm1880_vm0 = vcmp.eq.s32.totalorder %v1878_v36, %v5244_v2  ;;  %v1998_v9 = vmul.f32 %v5188_v22, %v1965_v50 }
 0x34a   : > { %v4184_v5 = vpop.eup %4183  ;;  %6002 = vst [vmem:[#allocation26_spill] sm:$0xff] %v5330_v21  ;;  %v2006_v49 = vadd.f32 %v2005_v38, %v2004_v61  ;;  %v3209_v55 = vsel %vm997_vm6, %v4182_v48, 0.0  ;;  %v5338_v19 = vmul.f32 %v5921_v28, %v1208_v24  ;;  %v1264_v1 = vrot.slane %v1239_v40, 3 }
 0x34b   : > { %v3208_v56 = vadd.f32 %v3207_v12, %v3206_v31  ;;  %v2007_v35 = vsel %vm997_vm6, %v1997_v11, 0.0  ;;  %v3211_v41 = vsel %vm997_vm6, %v4184_v5, 0.0  ;;  %v1263_v37 = vsel %vm1262_vm12, %v1261_v51, %v1260_v14 }
 0x34c   : > { %6003 = vst [vmem:[#allocation27_spill] sm:$0xff] %v5338_v19  ;;  %v5346_v27 = vsel %vm1880_vm0, 1.0, %v5992_v60  ;;  %v1933_v53 = vcombine.high %v1917_v20, %v1917_v20  ;;  %v1973_v24 = vrot.slane %v5330_v21, %v4429_v62  ;;  %v1999_v40 = vmul.f32 %v5197_v0, %v1969_v17 }
 0x34d   : > { %v3210_v54 = vadd.f32 %v3209_v55, %v3208_v56  ;;  %6004 = vst [vmem:[#allocation28_spill] sm:$0xff] %v5346_v27  ;;  %v2008_v50 = vadd.f32 %v2007_v35, %v2006_v49  ;;  %v2009_v34 = vsel %vm997_vm6, %v1998_v9, 0.0  ;;  %v1726_v48 = vmul.f32 %v5175_v26, %v4444_v15 }
 0x34e   : > { %v1727_v11 = vmul.f32 %v5183_v63, %v4444_v15  ;;  %v1728_v60 = vmul.f32 %v5188_v22, %v4444_v15  ;;  %v5359_v20 = vsel %vm1265_vm13, %v1264_v1, %v1263_v37  ;;  %v1729_v61 = vmul.f32 %v5197_v0, %v4444_v15 }
 0x34f   : > { %v3212_v36 = vadd.f32 %v3211_v41, %v3210_v54  ;;  %6005 = vst [vmem:[#allocation29_spill] sm:$0xff] %v5359_v20  ;;  %v1393_v51 = vmul.f32 %v5175_v26, %v4451_v18  ;;  %v1394_v12 = vmul.f32 %v5183_v63, %v4451_v18  ;;  %v1395_v5 = vmul.f32 %v5188_v22, %v4451_v18 }
 0x350   : > { %v5374_v14 = vrot.slane %v1933_v53, %v4429_v62  ;;  %v5378_v17 = vmul.f32 %v5207_v43, %v4444_v15  ;;  %v5381_v56 = vmul.f32 %v5207_v43, %v1973_v24  ;;  %v5383_v9 = vadd.f32 %v2009_v34, %v2008_v50 }
 0x351   : > { %4185 = vlog2.f32 %v3212_v36  ;;  %v5386_v49 = vsel %vm997_vm6, %v1999_v40, 0.0  ;;  %v1396_v55 = vmul.f32 %v5197_v0, %v4451_v18  ;;  %v5391_v1 = vsel %vm997_vm6, %v1726_v48, 0.0 }
 0x352   : > { %6006 = vst [vmem:[#allocation30_spill] sm:$0xff] %v5374_v14  ;;  %6007 = vst [vmem:[#allocation31_spill] sm:$0xff] %v5378_v17  ;;  %v5394_v35 = vsel %vm997_vm6, %v1727_v11, 0.0  ;;  %v5397_v54 = vsel %vm997_vm6, %v1728_v60, 0.0  ;;  %v5401_v41 = vmul.f32 %v5210_v42, %v4444_v15  ;;  %v5405_v37 = vmul.f32 %v5223_v44, %v4444_v15 }
 0x353   : > { %6008 = vst [vmem:[#allocation32_spill] sm:$0xff] %v5381_v56  ;;  %6009 = vst [vmem:[#allocation33_spill] sm:$0xff] %v5383_v9  ;;  %v5409_v53 = vmul.f32 %v5233_v32, %v4444_v15  ;;  %v5412_v36 = vsel %vm997_vm6, %v1729_v61, 0.0  ;;  %v1306_v24 = vmul.f32 %v5175_v26, %v4446_v16  ;;  %v1401_v40 = vsel %vm997_vm6, %v1393_v51, 0.0 }
 0x354   : > { %6010 = vst [vmem:[#allocation34_spill] sm:$0xff] %v5386_v49  ;;  %6011 = vst [vmem:[#allocation35_spill] sm:$0xff] %v5391_v1  ;;  %v1408_v50 = vsel %vm997_vm6, %v1394_v12, 0.0  ;;  %v1415_v34 = vsel %vm997_vm6, %v1395_v5, 0.0  ;;  %v1397_v48 = vmul.f32 %v5207_v43, %v4451_v18  ;;  %v1398_v61 = vmul.f32 %v5210_v42, %v4451_v18 }
 0x355   : > { %6012 = vst [vmem:[#allocation36_spill] sm:$0xff] %v5394_v35  ;;  %6013 = vst [vmem:[#allocation37_spill] sm:$0xff] %v5397_v54  ;;  %v1399_v47 = vmul.f32 %v5223_v44, %v4451_v18  ;;  %v1422_v51 = vsel %vm997_vm6, %v1396_v55, 0.0  ;;  %v1400_v5 = vmul.f32 %v5233_v32, %v4451_v18  ;;  %v1402_v28 = vrot.slane %v1401_v40, 4 }
 0x356   : > { %6014 = vst [vmem:[#allocation38_spill] sm:$0xff] %v5401_v41  ;;  %6015 = vst [vmem:[#allocation39_spill] sm:$0xff] %v5405_v37  ;;  %v1409_v23 = vrot.slane %v1408_v50, 4  ;;  %v1416_v4 = vrot.slane %v1415_v34, 4  ;;  %v1307_v39 = vmul.f32 %v5183_v63, %v4446_v16  ;;  %v1308_v38 = vmul.f32 %v5188_v22, %v4446_v16 }
 0x357   : > { %6016 = vst [vmem:[#allocation40_spill] sm:$0xff] %v5409_v53  ;;  %6017 = vst [vmem:[#allocation41_spill] sm:$0xff] %v5412_v36  ;;  %v1309_v31 = vmul.f32 %v5197_v0, %v4446_v16  ;;  %v1314_v55 = vsel %vm997_vm6, %v1306_v24, 0.0  ;;  %v1310_v12 = vmul.f32 %v5207_v43, %v4446_v16  ;;  %v1423_v11 = vrot.slane %v1422_v51, 4 }
 0x358   : > { %v5442_v18 = vsel %vm997_vm6, %v1397_v48, 0.0  ;;  %v1311_v15 = vmul.f32 %v5210_v42, %v4446_v16  ;;  %v1312_v3 = vmul.f32 %v5223_v44, %v4446_v16  ;;  %v5449_v2 = vsel %vm997_vm6, %v1398_v61, 0.0 }
 0x359   : > { %v5452_v59 = vsel %vm997_vm6, %v1399_v47, 0.0  ;;  %v1315_v24 = vrot.slane %v1314_v55, 4  ;;  %v5454_v58 = vadd.f32 %v1402_v28, %v1401_v40  ;;  %v5457_v20 = vsel %vm997_vm6, %v1400_v5, 0.0 }
 0x35a   : > { %v1321_v48 = vsel %vm997_vm6, %v1307_v39, 0.0  ;;  %v1328_v13 = vsel %vm997_vm6, %v1308_v38, 0.0  ;;  %v1335_v19 = vsel %vm997_vm6, %v1309_v31, 0.0  ;;  %v5463_v56 = vadd.f32 %v1409_v23, %v1408_v50 }
 0x35b   : > { %v4186_v33 = vpop.eup %4185  ;;  %v1342_v61 = vsel %vm997_vm6, %v1310_v12, 0.0  ;;  %v5466_v47 = vadd.f32 %v1416_v4, %v1415_v34  ;;  %v5468_v14 = vadd.f32 %v1423_v11, %v1422_v51  ;;  %v1356_v39 = vsel %vm997_vm6, %v1312_v3, 0.0 }
 0x35c   : > { %v3214_v60 = vmul.f32 0.6931472, %v4186_v33  ;;  %v1316_v31 = vadd.f32 %v1315_v24, %v1314_v55  ;;  %v1322_v4 = vrot.slane %v1321_v48, 4  ;;  %v1329_v40 = vrot.slane %v1328_v13, 4 }
 0x35d   : > { %v1336_v50 = vrot.slane %v1335_v19, 4  ;;  %v1357_v3 = vrot.slane %v1356_v39, 4 }
 0x35e   : > { %v3215_v33 = vadd.f32 %v3214_v60, %v5278_v29  ;;  %v1349_v29 = vsel %vm997_vm6, %v1311_v15, 0.0  ;;  %v1343_v15 = vrot.slane %v1342_v61, 4  ;;  %v1323_v49 = vadd.f32 %v1322_v4, %v1321_v48 }
 0x35f   : > { %v1350_v60 = vrot.slane %v1349_v29, 4  ;;  %v1330_v34 = vadd.f32 %v1329_v40, %v1328_v13  ;;  %v1337_v9 = vadd.f32 %v1336_v50, %v1335_v19  ;;  %v1358_v53 = vadd.f32 %v1357_v3, %v1356_v39 }
 0x360   : > { %v5473_v28 = vsel %vm4910_vm8, %v3215_v33, %v5230_v25  ;;  %v1317_v33 = vrot.slane %v1316_v31, 2  ;;  %v1344_v30 = vadd.f32 %v1343_v15, %v1342_v61  ;;  %v1313_v19 = vmul.f32 %v5233_v32, %v4446_v16 }
 0x361   : > { %v3339_v38 = vcombine.high %v5473_v28, %v5473_v28  ;;  %v3346_v23 = vrot.slane %v5473_v28, %v4363_v10  ;;  %v1351_v51 = vadd.f32 %v1350_v60, %v1349_v29  ;;  %v1324_v4 = vrot.slane %v1323_v49, 2 }
 0x362   : > { %v1331_v40 = vrot.slane %v1330_v34, 2  ;;  %v1338_v61 = vrot.slane %v1337_v9, 2  ;;  %v1318_v15 = vadd.f32 %v1317_v33, %v1316_v31  ;;  %v1359_v60 = vrot.slane %v1358_v53, 2 }
 0x363   : > { %v3353_v57 = vrot.slane %v3339_v38, %v4363_v10  ;;  %v3354_v25 = vcombine.high %v3346_v23, %v3346_v23  ;;  %v3361_v11 = vrot.slane %v3346_v23, %v4363_v10  ;;  %v1363_v3 = vsel %vm997_vm6, %v1313_v19, 0.0 }
 0x364   : > { %v1411_v31 = vrot.slane %v5463_v56, 2  ;;  %v1319_v33 = vrot.slane %v1318_v15, 1  ;;  %v1360_v37 = vadd.f32 %v1359_v60, %v1358_v53  ;;  %v1364_v19 = vrot.slane %v1363_v3, 4 }
 0x365   : > { %v3368_v12 = vrot.slane %v3353_v57, %v4363_v10  ;;  %v3375_v5 = vrot.slane %v3354_v25, %v4363_v10  ;;  %v3376_v55 = vcombine.high %v3361_v11, %v3361_v11  ;;  %v3381_v24 = vrot.slane %v3361_v11, %v4429_v62 }
 0x366   : > { %vm1268_vm8 = vcmask 1046534  }
 0x367   : > { %v3377_v38 = vcombine.high %v3375_v5, %v3375_v5  ;;  %v3385_v21 = vrot.slane %v3375_v5, %v4429_v62  ;;  %v3389_v23 = vrot.slane %v3376_v55, %v4429_v62  ;;  %v3397_v27 = vrot.slane %v3368_v12, %v4429_v62 }
 0x368   : > { %v3403_v57 = vadd.f32 %v3381_v24, %v4938_v46  ;;  %v1404_v12 = vrot.slane %v5454_v58, 2  ;;  %v1325_v55 = vadd.f32 %v1324_v4, %v1323_v49  ;;  %v1332_v24 = vadd.f32 %v1331_v40, %v1330_v34 }
 0x369   : > { %v3393_v25 = vrot.slane %v3377_v38, %v4429_v62  ;;  %v3404_v11 = vadd.f32 %v3385_v21, %v4941_v45  ;;  %v3405_v48 = vadd.f32 %v3389_v23, %v4947_v52  ;;  %v3407_v13 = vadd.f32 %v3397_v27, %v4950_v6 }
 0x36a   : > { %v3408_v46 = vsel %vm997_vm6, %v3403_v57, -inf  ;;  %v1345_v45 = vrot.slane %v1344_v30, 2  ;;  %v1352_v21 = vrot.slane %v1351_v51, 2  ;;  %v1339_v38 = vadd.f32 %v1338_v61, %v1337_v9 }
 0x36b   : > { %v3406_v29 = vadd.f32 %v3393_v25, %v4958_v8  ;;  %v3412_v39 = vsel %vm997_vm6, %v3407_v13, -inf  ;;  %v3409_v6 = vsel %vm997_vm6, %v3404_v11, -inf  ;;  %v3410_v16 = vsel %vm997_vm6, %v3405_v48, -inf }
 0x36c   : > { %v3413_v52 = vmax.f32 %v3408_v46, %v3412_v39  ;;  %v1418_v23 = vrot.slane %v5466_v47, 2  ;;  %v1425_v25 = vrot.slane %v5468_v14, 2  ;;  %v1346_v39 = vadd.f32 %v1345_v45, %v1344_v30 }
 0x36d   : > { %v3411_v27 = vsel %vm997_vm6, %v3406_v29, -inf  ;;  %v1353_v50 = vadd.f32 %v1352_v21, %v1351_v51  ;;  %v1326_v34 = vrot.slane %v1325_v55, 1  ;;  %v1333_v4 = vrot.slane %v1332_v24, 1 }
 0x36e   : > { %v3414_v8 = vmax.f32 %v3413_v52, %v3409_v6  ;;  %v3415_v5 = vmax.f32 %v3410_v16, %v3411_v27  ;;  %v1340_v40 = vrot.slane %v1339_v38, 1  ;;  %v6018_v6 = vrot.slane %v5442_v18, 4 }
 0x36f   : > { %v1354_v21 = vrot.slane %v1353_v50, 1  ;;  %v1412_v16 = vadd.f32 %v1411_v31, %v5463_v56  ;;  %v1320_v27 = vadd.f32 %v1319_v33, %v1318_v15  ;;  %v6020_v15 = vrot.slane %v5452_v59, 4 }
 0x370   : > { %v5510_v46 = vmax.f32 %v3414_v8, %v3415_v5  ;;  %v5520_v30 = vadd.f32 %v6018_v6, %v5442_v18  ;;  %v1327_v18 = vadd.f32 %v1326_v34, %v1325_v55  ;;  %v1334_v5 = vadd.f32 %v1333_v4, %v1332_v24 }
 0x371   : > { %v1413_v55 = vrot.slane %v1412_v16, 1 }
 0x372   : > { %v3417_v36 = vsub.f32 %v3403_v57, %v5510_v46  ;;  %v3418_v52 = vsub.f32 %v3404_v11, %v5510_v46  ;;  %v3419_v49 = vsub.f32 %v3405_v48, %v5510_v46  ;;  %v3420_v9 = vsub.f32 %v3406_v29, %v5510_v46 }
 0x373   : > { %v3421_v61 = vsub.f32 %v3407_v13, %v5510_v46  ;;  %v1347_v57 = vrot.slane %v1346_v39, 1  ;;  %v1365_v11 = vadd.f32 %v1364_v19, %v1363_v3  ;;  %v1361_v48 = vrot.slane %v1360_v37, 1 }
 0x374   : > { %v3422_v53 = vmul.f32 1.442695, %v3417_v36  ;;  %v3424_v51 = vmul.f32 1.442695, %v3418_v52  ;;  %v3426_v45 = vmul.f32 1.442695, %v3419_v49  ;;  %v1405_v29 = vadd.f32 %v1404_v12, %v5454_v58 }
 0x375   : > { %v3428_v60 = vmul.f32 1.442695, %v3420_v9  ;;  %v1419_v13 = vadd.f32 %v1418_v23, %v5466_v47  ;;  %v3430_v8 = vmul.f32 1.442695, %v3421_v61  ;;  %v1341_v36 = vadd.f32 %v1340_v40, %v1339_v38  ;;  %v6021_v23 = vld [vmem:[#allocation9_spill] sm:$0xff] }
 0x376   : > { %4187 = vpow2.f32 %v3422_v53  ;;  %v1348_v52 = vadd.f32 %v1347_v57, %v1346_v39  ;;  %v1355_v49 = vadd.f32 %v1354_v21, %v1353_v50  ;;  %v1366_v6 = vrot.slane %v1365_v11, 2 }
 0x377   : > { %4189 = vpow2.f32 %v3424_v51  ;;  %v1362_v3 = vadd.f32 %v1361_v48, %v1360_v37  ;;  %v1406_v19 = vrot.slane %v1405_v29, 1  ;;  %v6019_v58 = vrot.slane %v5449_v2, 4 }
 0x378   : > { %4191 = vpow2.f32 %v3426_v45  ;;  %v1445_v47 = vadd.f32 %v6020_v15, %v5452_v59  ;;  %v5532_v12 = vmul.f32 %v5180_v7, %v1320_v27  ;;  %v1420_v24 = vrot.slane %v1419_v13, 1 }
 0x379   : > { %4193 = vpow2.f32 %v3428_v60  ;;  %v1438_v56 = vadd.f32 %v6019_v58, %v5449_v2  ;;  %v5535_v50 = vmul.f32 %v5175_v26, %v1327_v18  ;;  %v5538_v37 = vmul.f32 %v5183_v63, %v1334_v5 }
 0x37a   : > { %4195 = vpow2.f32 %v3430_v8  ;;  %v5541_v38 = vmul.f32 %v5188_v22, %v1341_v36  ;;  %v1451_v2 = vrot.slane %v5457_v20, 4  ;;  %v1367_v31 = vadd.f32 %v1366_v6, %v1365_v11 }
 0x37b   : > { %v5545_v59 = vmul.f32 %v5197_v0, %v1348_v52  ;;  %v5548_v33 = vmul.f32 %v5207_v43, %v1355_v49  ;;  %v1504_v39 = vmul.f32 %v5175_v26, %v6021_v23  ;;  %v5553_v9 = vmul.f32 %v5210_v42, %v1362_v3 }
 0x37c   : > { %v1407_v34 = vadd.f32 %v1406_v19, %v1405_v29  ;;  %v1505_v4 = vmul.f32 %v5183_v63, %v6021_v23  ;;  %v1506_v40 = vmul.f32 %v5188_v22, %v6021_v23  ;;  %v1414_v61 = vadd.f32 %v1413_v55, %v1412_v16 }
 0x37d   : > { %v1421_v53 = vadd.f32 %v1420_v24, %v1419_v13  ;;  %v1426_v51 = vadd.f32 %v1425_v25, %v5468_v14  ;;  %v1507_v45 = vmul.f32 %v5197_v0, %v6021_v23  ;;  %v1432_v21 = vrot.slane %v5520_v30, 2 }
 0x37e   : > { %v1439_v11 = vrot.slane %v1438_v56, 2  ;;  %v1446_v60 = vrot.slane %v1445_v47, 2  ;;  %v1452_v48 = vadd.f32 %v1451_v2, %v5457_v20  ;;  %v1368_v27 = vrot.slane %v1367_v31, 1 }
 0x37f   : > { %v1508_v8 = vmul.f32 %v5207_v43, %v6021_v23  ;;  %v1512_v16 = vsel %vm997_vm6, %v1504_v39, 0.0  ;;  %v5569_v25 = vmul.f32 %v5180_v7, %v1407_v34  ;;  %v1519_v18 = vsel %vm997_vm6, %v1505_v4, 0.0 }
 0x380   : > { %v4188_v57 = vpop.eup %4187  ;;  %v1526_v5 = vsel %vm997_vm6, %v1506_v40, 0.0  ;;  %v5575_v52 = vmul.f32 %v5175_v26, %v1414_v61  ;;  %v1509_v49 = vmul.f32 %v5210_v42, %v6021_v23  ;;  %v1533_v6 = vsel %vm997_vm6, %v1507_v45, 0.0 }
 0x381   : > { %v4190_v29 = vpop.eup %4189  ;;  %v3432_v13 = vsel %vm997_vm6, %v4188_v57, 0.0  ;;  %v1427_v19 = vrot.slane %v1426_v51, 1  ;;  %v1453_v58 = vrot.slane %v1452_v48, 2  ;;  %v1513_v15 = vrot.slane %v1512_v16, 4 }
 0x382   : > { %v4192_v14 = vpop.eup %4191  ;;  %v3433_v36 = vsel %vm997_vm6, %v4190_v29, 0.0  ;;  %v1520_v2 = vrot.slane %v1519_v18, 4  ;;  %v1527_v39 = vrot.slane %v1526_v5, 4  ;;  %v1540_v34 = vsel %vm997_vm6, %v1508_v8, 0.0 }
 0x383   : > { %v4194_v20 = vpop.eup %4193  ;;  %v3434_v3 = vadd.f32 %v3433_v36, %v3432_v13  ;;  %v3435_v55 = vsel %vm997_vm6, %v4192_v14, 0.0  ;;  %v1433_v40 = vadd.f32 %v1432_v21, %v5520_v30  ;;  %v1440_v61 = vadd.f32 %v1439_v11, %v1438_v56 }
 0x384   : > { %v4196_v24 = vpop.eup %4195  ;;  %v1534_v57 = vrot.slane %v1533_v6, 4  ;;  %v3437_v29 = vsel %vm997_vm6, %v4194_v20, 0.0  ;;  %v1447_v41 = vadd.f32 %v1446_v60, %v1445_v47  ;;  %v1510_v45 = vmul.f32 %v5223_v44, %v6021_v23 }
 0x385   : > { %v3436_v4 = vadd.f32 %v3435_v55, %v3434_v3  ;;  %v1547_v13 = vsel %vm997_vm6, %v1509_v49, 0.0  ;;  %v1369_v14 = vadd.f32 %v1368_v27, %v1367_v31  ;;  %v1514_v1 = vadd.f32 %v1513_v15, %v1512_v16 }
 0x386   : > { %v1541_v17 = vrot.slane %v1540_v34, 4  ;;  %v3439_v54 = vsel %vm997_vm6, %v4196_v24, 0.0  ;;  %v1454_v8 = vadd.f32 %v1453_v58, %v1452_v48  ;;  %v1521_v3 = vadd.f32 %v1520_v2, %v1519_v18 }
 0x387   : > { %v3438_v36 = vadd.f32 %v3437_v29, %v3436_v4  ;;  %v1528_v55 = vadd.f32 %v1527_v39, %v1526_v5  ;;  %v1434_v56 = vrot.slane %v1433_v40, 1  ;;  %v1459_v21 = vmul.f32 %v5183_v63, %v1421_v53 }
 0x388   : > { %v1535_v11 = vadd.f32 %v1534_v57, %v1533_v6  ;;  %v1548_v47 = vrot.slane %v1547_v13, 4  ;;  %v1441_v60 = vrot.slane %v1440_v61, 1  ;;  %v1448_v20 = vrot.slane %v1447_v41, 1 }
 0x389   : > { %v3440_v30 = vadd.f32 %v3439_v54, %v3438_v36  ;;  %v1554_v35 = vsel %vm997_vm6, %v1510_v45, 0.0  ;;  %v1428_v49 = vadd.f32 %v1427_v19, %v1426_v51  ;;  %v1473_v31 = vrot.slane %v5569_v25, 1 }
 0x38a   : > { %v1515_v27 = vrot.slane %v1514_v1, 2  ;;  %v1542_v16 = vadd.f32 %v1541_v17, %v1540_v34  ;;  %v1455_v15 = vrot.slane %v1454_v8, 1  ;;  %v1511_v48 = vmul.f32 %v5233_v32, %v6021_v23 }
 0x38b   : > { %4197 = vlog2.f32 %v3440_v30  ;;  %v1522_v54 = vrot.slane %v1521_v3, 2  ;;  %v1529_v18 = vrot.slane %v1528_v55, 2  ;;  %v1377_v53 = vmul.f32 %v5223_v44, %v1369_v14 }
 0x38c   : > { %v1536_v5 = vrot.slane %v1535_v11, 2  ;;  %v1549_v6 = vadd.f32 %v1548_v47, %v1547_v13  ;;  %v1555_v58 = vrot.slane %v1554_v35, 4  ;;  %v1435_v24 = vadd.f32 %v1434_v56, %v1433_v40 }
 0x38d   : > { %v1442_v2 = vadd.f32 %v1441_v60, %v1440_v61  ;;  %v1449_v39 = vadd.f32 %v1448_v20, %v1447_v41  ;;  %v1474_v51 = vrot.slane %v5575_v52, 1  ;;  %v1460_v25 = vmul.f32 %v5188_v22, %v1428_v49 }
 0x38e   : > { %v1475_v19 = vrot.slane %v1459_v21, 1  ;;  %v1516_v17 = vadd.f32 %v1515_v27, %v1514_v1  ;;  %v1543_v34 = vrot.slane %v1542_v16, 2  ;;  %v1456_v4 = vadd.f32 %v1455_v15, %v1454_v8 }
 0x38f   : > { %v1523_v57 = vadd.f32 %v1522_v54, %v1521_v3  ;;  %v1530_v23 = vadd.f32 %v1529_v18, %v1528_v55  ;;  %v1561_v29 = vsel %vm997_vm6, %v1511_v48, 0.0  ;;  %v5598_v45 = vadd.f32 %v1473_v31, %v5532_v12 }
 0x390   : > { %v1537_v13 = vadd.f32 %v1536_v5, %v1535_v11  ;;  %v1550_v36 = vrot.slane %v1549_v6, 2  ;;  %v1556_v40 = vadd.f32 %v1555_v58, %v1554_v35  ;;  %v1461_v41 = vmul.f32 %v5197_v0, %v1435_v24 }
 0x391   : > { %v1462_v52 = vmul.f32 %v5207_v43, %v1442_v2  ;;  %v1463_v61 = vmul.f32 %v5210_v42, %v1449_v39  ;;  %v5604_v1 = vadd.f32 %v1474_v51, %v5535_v50  ;;  %v5607_v14 = vadd.f32 %v1475_v19, %v5538_v37  ;;  %v6028_v39 = vld [vmem:[#allocation15_spill] sm:$0xff] }
 0x392   : > { %v1517_v8 = vrot.slane %v1516_v17, 1  ;;  %v1544_v3 = vadd.f32 %v1543_v34, %v1542_v16  ;;  %v1562_v55 = vrot.slane %v1561_v29, 4  ;;  %v1464_v30 = vmul.f32 %v5223_v44, %v1456_v4 }
 0x393   : > { %v1476_v56 = vrot.slane %v1460_v25, 1  ;;  %v1524_v35 = vrot.slane %v1523_v57, 1  ;;  %v1531_v21 = vrot.slane %v1530_v23, 1  ;;  %v1538_v11 = vrot.slane %v1537_v13, 1 }
 0x394   : > { %v1551_v47 = vadd.f32 %v1550_v36, %v1549_v6  ;;  %v1557_v60 = vrot.slane %v1556_v40, 2  ;;  %v1477_v49 = vrot.slane %v1461_v41, 1  ;;  %v1478_v31 = vrot.slane %v1462_v52, 1 }
 0x395   : > { %v4198_v12 = vpop.eup %4197  ;;  %v1479_v50 = vrot.slane %v1463_v61, 1  ;;  %v5611_v27 = vadd.f32 %v1476_v56, %v5541_v38  ;;  %v1518_v37 = vadd.f32 %v1517_v8, %v1516_v17  ;;  %v1545_v15 = vrot.slane %v1544_v3, 1 }
 0x396   : > { %v3442_v20 = vmul.f32 0.6931472, %v4198_v12  ;;  %v1563_v16 = vadd.f32 %v1562_v55, %v1561_v29  ;;  %v1480_v54 = vrot.slane %v1464_v30, 1  ;;  %v5615_v18 = vadd.f32 %v1477_v49, %v5545_v59  ;;  %v6023_v55 = vld [vmem:[#allocation10_spill] sm:$0xff] }
 0x397   : > { %v1525_v5 = vadd.f32 %v1524_v35, %v1523_v57  ;;  %v1532_v58 = vadd.f32 %v1531_v21, %v1530_v23  ;;  %v1539_v6 = vadd.f32 %v1538_v11, %v1537_v13  ;;  %v1552_v24 = vrot.slane %v1551_v47, 1 }
 0x398   : > { %v3443_v48 = vadd.f32 %v3442_v20, %v5510_v46  ;;  %v1558_v2 = vadd.f32 %v1557_v60, %v1556_v40  ;;  %v5623_v38 = vadd.f32 %v1478_v31, %v5548_v33  ;;  %v5626_v25 = vadd.f32 %v1479_v50, %v5553_v9  ;;  %v6024_v20 = vld [vmem:[#allocation11_spill] sm:$0xff]  ;;  %v6025_v50 = vld [vmem:[#allocation13_spill] sm:$0xff] }
 0x399   : > { %v5632_v19 = vadd.f32 %v1480_v54, %v1377_v53  ;;  %v1546_v17 = vadd.f32 %v1545_v15, %v1544_v3  ;;  %v1564_v34 = vrot.slane %v1563_v16, 2  ;;  %v1568_v4 = vmul.f32 %v5180_v7, %v1518_v37  ;;  %v6026_v15 = vld [vmem:[#allocation14_spill] sm:$0xff] }
 0x39a   : > { %v5620_v51 = vsel %vm4985_vm4, %v3443_v48, %v5473_v28  ;;  %v1569_v28 = vmul.f32 %v5175_v26, %v1525_v5  ;;  %v1553_v23 = vadd.f32 %v1552_v24, %v1551_v47  ;;  %v1559_v29 = vrot.slane %v1558_v2, 1  ;;  %v6027_v48 = vld [vmem:[#allocation16_spill] sm:$0xff] }
 0x39b   : > { %v3567_v46 = vcombine.high %v5620_v51, %v5620_v51  ;;  %v3574_v59 = vrot.slane %v5620_v51, %v4363_v10  ;;  %v5639_v13 = vmul.f32 %v5183_v63, %v1532_v58  ;;  %v5642_v36 = vmul.f32 %v5188_v22, %v1539_v6 }
 0x39c   : > { %v1565_v61 = vadd.f32 %v1564_v34, %v1563_v16  ;;  %v5648_v8 = vmul.f32 %v5197_v0, %v1546_v17  ;;  %v1584_v3 = vrot.slane %v1568_v4, 2  ;;  %v1615_v12 = vmul.f32 %v5175_v26, %v6023_v55 }
 0x39d   : > { %v3581_v33 = vrot.slane %v3567_v46, %v4363_v10  ;;  %v3582_v57 = vcombine.high %v3574_v59, %v3574_v59  ;;  %v3589_v9 = vrot.slane %v3574_v59, %v4363_v10  ;;  %v1560_v11 = vadd.f32 %v1559_v29, %v1558_v2 }
 0x39e   : > { %v1585_v47 = vrot.slane %v1569_v28, 2  ;;  %v1616_v60 = vmul.f32 %v5183_v63, %v6023_v55  ;;  %v5663_v5 = vmul.f32 %v5207_v43, %v1553_v23  ;;  %v1586_v58 = vrot.slane %v5639_v13, 2 }
 0x39f   : > { %v3596_v53 = vrot.slane %v3581_v33, %v4363_v10  ;;  %v3603_v40 = vrot.slane %v3582_v57, %v4363_v10  ;;  %v3604_v41 = vcombine.high %v3589_v9, %v3589_v9  ;;  %v3609_v52 = vrot.slane %v3589_v9, %v4429_v62 }
 0x3a0   : > { %v1617_v6 = vmul.f32 %v5188_v22, %v6023_v55  ;;  %v1623_v24 = vsel %vm997_vm6, %v1615_v12, 0.0  ;;  %v1587_v2 = vrot.slane %v5642_v36, 2  ;;  %v1618_v34 = vmul.f32 %v5197_v0, %v6023_v55 }
 0x3a1   : > { %v3605_v30 = vcombine.high %v3603_v40, %v3603_v40  ;;  %v3613_v56 = vrot.slane %v3603_v40, %v4429_v62  ;;  %v3617_v35 = vrot.slane %v3604_v41, %v4429_v62  ;;  %v3625_v21 = vrot.slane %v3596_v53, %v4429_v62 }
 0x3a2   : > { %v3631_v49 = vadd.f32 %v3609_v52, %v6024_v20  ;;  %v1619_v4 = vmul.f32 %v5207_v43, %v6023_v55  ;;  %v1630_v28 = vsel %vm997_vm6, %v1616_v60, 0.0  ;;  %v1624_v57 = vrot.slane %v1623_v24, 4 }
 0x3a3   : > { %v3621_v31 = vrot.slane %v3605_v30, %v4429_v62  ;;  %v3632_v37 = vadd.f32 %v3613_v56, %v6025_v50  ;;  %v3633_v16 = vadd.f32 %v3617_v35, %v6026_v15  ;;  %v3635_v54 = vadd.f32 %v3625_v21, %v6027_v48 }
 0x3a4   : > { %v3636_v59 = vsel %vm997_vm6, %v3631_v49, -inf  ;;  %v1566_v13 = vrot.slane %v1565_v61, 1  ;;  %v1637_v36 = vsel %vm997_vm6, %v1617_v6, 0.0  ;;  %v1588_v41 = vrot.slane %v5648_v8, 2 }
 0x3a5   : > { %v3634_v46 = vadd.f32 %v3621_v31, %v6028_v39  ;;  %v3640_v17 = vsel %vm997_vm6, %v3635_v54, -inf  ;;  %v3637_v9 = vsel %vm997_vm6, %v3632_v37, -inf  ;;  %v3638_v23 = vsel %vm997_vm6, %v3633_v16, -inf }
 0x3a6   : > { %v3641_v33 = vmax.f32 %v3636_v59, %v3640_v17  ;;  %v5684_v52 = vadd.f32 %v1584_v3, %v5598_v45  ;;  %v1620_v12 = vmul.f32 %v5210_v42, %v6023_v55  ;;  %v1631_v30 = vrot.slane %v1630_v28, 4 }
 0x3a7   : > { %v3639_v29 = vsel %vm997_vm6, %v3634_v46, -inf  ;;  %v5689_v56 = vmul.f32 %v5210_v42, %v1560_v11  ;;  %v5692_v35 = vadd.f32 %v1585_v47, %v5604_v1  ;;  %v1644_v21 = vsel %vm997_vm6, %v1618_v34, 0.0 }
 0x3a8   : > { %v3642_v53 = vmax.f32 %v3641_v33, %v3637_v9  ;;  %v3643_v40 = vmax.f32 %v3638_v23, %v3639_v29  ;;  %v1621_v8 = vmul.f32 %v5223_v44, %v6023_v55  ;;  %v1625_v20 = vadd.f32 %v1624_v57, %v1623_v24 }
 0x3a9   : > { %v1638_v45 = vrot.slane %v1637_v36, 4  ;;  %v1651_v3 = vsel %vm997_vm6, %v1619_v4, 0.0  ;;  %v1632_v47 = vadd.f32 %v1631_v30, %v1630_v28  ;;  %v1645_v15 = vrot.slane %v1644_v21, 4 }
 0x3aa   : > { %v5695_v60 = vmax.f32 %v3642_v53, %v3643_v40  ;;  %v1658_v48 = vsel %vm997_vm6, %v1620_v12, 0.0  ;;  %v1567_v39 = vadd.f32 %v1566_v13, %v1565_v61  ;;  %v1622_v34 = vmul.f32 %v5233_v32, %v6023_v55  ;;  %v6029_v13 = vld [vmem:[#allocation36_spill] sm:$0xff] }
 0x3ab   : > { %v1652_v33 = vrot.slane %v1651_v3, 4  ;;  %v1633_v28 = vrot.slane %v1632_v47, 2  ;;  %v1646_v57 = vadd.f32 %v1645_v15, %v1644_v21  ;;  %v1589_v61 = vrot.slane %v5663_v5, 2  ;;  %v6034_v15 = vld [vmem:[#allocation31_spill] sm:$0xff] }
 0x3ac   : > { %v3645_v31 = vsub.f32 %v3631_v49, %v5695_v60  ;;  %v3646_v50 = vsub.f32 %v3632_v37, %v5695_v60  ;;  %v3647_v11 = vsub.f32 %v3633_v16, %v5695_v60  ;;  %v3648_v1 = vsub.f32 %v3634_v46, %v5695_v60 }
 0x3ad   : > { %v3649_v6 = vsub.f32 %v3635_v54, %v5695_v60  ;;  %v1639_v49 = vadd.f32 %v1638_v45, %v1637_v36  ;;  %v1665_v37 = vsel %vm997_vm6, %v1621_v8, 0.0  ;;  %v1626_v16 = vrot.slane %v1625_v20, 2  ;;  %v6032_v45 = vld [vmem:[#allocation37_spill] sm:$0xff] }
 0x3ae   : > { %v3650_v59 = vmul.f32 1.442695, %v3645_v31  ;;  %v3652_v24 = vmul.f32 1.442695, %v3646_v50  ;;  %v3654_v17 = vmul.f32 1.442695, %v3647_v11  ;;  %v5711_v54 = vadd.f32 %v1586_v58, %v5607_v14 }
 0x3af   : > { %v3656_v4 = vmul.f32 1.442695, %v3648_v1  ;;  %v1659_v46 = vrot.slane %v1658_v48, 4  ;;  %v3658_v9 = vmul.f32 1.442695, %v3649_v6  ;;  %v1666_v23 = vrot.slane %v1665_v37, 4 }
 0x3b0   : > { %4199 = vpow2.f32 %v3650_v59  ;;  %v5714_v55 = vadd.f32 %v1587_v2, %v5611_v27  ;;  %v1640_v29 = vrot.slane %v1639_v49, 2  ;;  %v6030_v36 = vrot.slane %v6029_v13, 4 }
 0x3b1   : > { %4201 = vpow2.f32 %v3652_v24  ;;  %v5720_v40 = vmul.f32 %v5223_v44, %v1567_v39  ;;  %v1653_v12 = vadd.f32 %v1652_v33, %v1651_v3  ;;  %v1660_v30 = vadd.f32 %v1659_v46, %v1658_v48  ;;  %v6035_v24 = vld [vmem:[#allocation35_spill] sm:$0xff] }
 0x3b2   : > { %4203 = vpow2.f32 %v3654_v17  ;;  %v1743_v53 = vadd.f32 %v6030_v36, %v6029_v13  ;;  %v1672_v5 = vsel %vm997_vm6, %v1622_v34, 0.0  ;;  %v1627_v14 = vadd.f32 %v1626_v16, %v1625_v20  ;;  %v6037_v16 = vld [vmem:[#allocation38_spill] sm:$0xff] }
 0x3b3   : > { %4205 = vpow2.f32 %v3656_v4  ;;  %6031 = vst [vmem:[#allocation9_spill] sm:$0xff] %v5720_v40  ;;  %v1634_v58 = vadd.f32 %v1633_v28, %v1632_v47  ;;  %v1647_v21 = vrot.slane %v1646_v57, 2  ;;  %v5725_v2 = vadd.f32 %v1588_v41, %v5615_v18  ;;  %v6040_v47 = vld [vmem:[#allocation39_spill] sm:$0xff] }
 0x3b4   : > { %4207 = vpow2.f32 %v3658_v9  ;;  %v1667_v8 = vadd.f32 %v1666_v23, %v1665_v37  ;;  %v6033_v31 = vrot.slane %v6032_v45, 4  ;;  %v5731_v11 = vadd.f32 %v1589_v61, %v5623_v38  ;;  %v6038_v61 = vld [vmem:[#allocation41_spill] sm:$0xff] }
 0x3b5   : > { %v1641_v3 = vadd.f32 %v1640_v29, %v1639_v49  ;;  %v1744_v1 = vrot.slane %v1743_v53, 2  ;;  %v1762_v20 = vsel %vm997_vm6, %v6034_v15, 0.0  ;;  %v1654_v48 = vrot.slane %v1653_v12, 2 }
 0x3b6   : > { %v1750_v50 = vadd.f32 %v6033_v31, %v6032_v45  ;;  %v1661_v6 = vrot.slane %v1660_v30, 2  ;;  %v1673_v39 = vrot.slane %v1672_v5, 4  ;;  %v1628_v18 = vrot.slane %v1627_v14, 1 }
 0x3b7   : > { %v1635_v41 = vrot.slane %v1634_v58, 1  ;;  %v1648_v59 = vadd.f32 %v1647_v21, %v1646_v57  ;;  %v6036_v17 = vrot.slane %v6035_v24, 4  ;;  %v1668_v38 = vrot.slane %v1667_v8, 2 }
 0x3b8   : > { %v1751_v4 = vrot.slane %v1750_v50, 2  ;;  %v1763_v49 = vrot.slane %v1762_v20, 4  ;;  %v1769_v33 = vsel %vm997_vm6, %v6037_v16, 0.0  ;;  %v1642_v28 = vrot.slane %v1641_v3, 1 }
 0x3b9   : > { %v1736_v34 = vadd.f32 %v6036_v17, %v6035_v24  ;;  %v1745_v9 = vadd.f32 %v1744_v1, %v1743_v53  ;;  %v6039_v23 = vrot.slane %v6038_v61, 4  ;;  %v1655_v36 = vadd.f32 %v1654_v48, %v1653_v12 }
 0x3ba   : > { %v4200_v37 = vpop.eup %4199  ;;  %v1662_v21 = vadd.f32 %v1661_v6, %v1660_v30  ;;  %v1674_v45 = vadd.f32 %v1673_v39, %v1672_v5  ;;  %v1770_v17 = vrot.slane %v1769_v33, 4  ;;  %v1776_v16 = vsel %vm997_vm6, %v6040_v47, 0.0  ;;  %v6041_v6 = vld [vmem:[#allocation40_spill] sm:$0xff] }
 0x3bb   : > { %v4202_v46 = vpop.eup %4201  ;;  %v1757_v29 = vadd.f32 %v6039_v23, %v6038_v61  ;;  %v3660_v57 = vsel %vm997_vm6, %v4200_v37, 0.0  ;;  %v1737_v24 = vrot.slane %v1736_v34, 2  ;;  %v1636_v53 = vadd.f32 %v1635_v41, %v1634_v58 }
 0x3bc   : > { %v4204_v13 = vpop.eup %4203  ;;  %v3661_v31 = vsel %vm997_vm6, %v4202_v46, 0.0  ;;  %v1752_v1 = vadd.f32 %v1751_v4, %v1750_v50  ;;  %v1764_v32 = vadd.f32 %v1763_v49, %v1762_v20  ;;  %v1629_v37 = vadd.f32 %v1628_v18, %v1627_v14 }
 0x3bd   : > { %v4206_v15 = vpop.eup %4205  ;;  %v3662_v27 = vadd.f32 %v3661_v31, %v3660_v57  ;;  %v3663_v61 = vsel %vm997_vm6, %v4204_v13, 0.0  ;;  %v1746_v62 = vrot.slane %v1745_v9, 1  ;;  %v1758_v12 = vrot.slane %v1757_v29, 2 }
 0x3be   : > { %v4208_v23 = vpop.eup %4207  ;;  %v1649_v5 = vrot.slane %v1648_v59, 1  ;;  %v1777_v48 = vrot.slane %v1776_v16, 4  ;;  %v1783_v39 = vsel %vm997_vm6, %v6041_v6, 0.0  ;;  %v3665_v46 = vsel %vm997_vm6, %v4206_v15, 0.0 }
 0x3bf   : > { %v3664_v30 = vadd.f32 %v3663_v61, %v3662_v27  ;;  %v1643_v10 = vadd.f32 %v1642_v28, %v1641_v3  ;;  %v1738_v47 = vadd.f32 %v1737_v24, %v1736_v34  ;;  %v1771_v57 = vadd.f32 %v1770_v17, %v1769_v33 }
 0x3c0   : > { %v1680_v50 = vmul.f32 %v5175_v26, %v1636_v53  ;;  %v1753_v20 = vrot.slane %v1752_v1, 1  ;;  %v1765_v41 = vrot.slane %v1764_v32, 2  ;;  %v3667_v14 = vsel %vm997_vm6, %v4208_v23, 0.0 }
 0x3c1   : > { %v3666_v58 = vadd.f32 %v3665_v46, %v3664_v30  ;;  %v1747_v18 = vadd.f32 %v1746_v62, %v1745_v9  ;;  %v1759_v4 = vadd.f32 %v1758_v12, %v1757_v29  ;;  %v1784_v27 = vrot.slane %v1783_v39, 4 }
 0x3c2   : > { %v1656_v13 = vrot.slane %v1655_v36, 1  ;;  %v1663_v31 = vrot.slane %v1662_v21, 1  ;;  %v1669_v61 = vadd.f32 %v1668_v38, %v1667_v8  ;;  %v1778_v6 = vadd.f32 %v1777_v48, %v1776_v16 }
 0x3c3   : > { %v3668_v49 = vadd.f32 %v3667_v14, %v3666_v58  ;;  %v1675_v40 = vrot.slane %v1674_v45, 2  ;;  %v1739_v15 = vrot.slane %v1738_v47, 1  ;;  %v1772_v3 = vrot.slane %v1771_v57, 2 }
 0x3c4   : > { %v1650_v34 = vadd.f32 %v1649_v5, %v1648_v59  ;;  %v1681_v33 = vmul.f32 %v5183_v63, %v1643_v10  ;;  %v1754_v28 = vadd.f32 %v1753_v20, %v1752_v1  ;;  %v1766_v24 = vadd.f32 %v1765_v41, %v1764_v32 }
 0x3c5   : > { %4209 = vlog2.f32 %v3668_v49  ;;  %v1696_v17 = vrot.slane %v1680_v50, 3  ;;  %v1760_v53 = vrot.slane %v1759_v4, 1  ;;  %v1785_v23 = vadd.f32 %v1784_v27, %v1783_v39 }
 0x3c6   : > { %v1791_v62 = vmul.f32 %v5175_v26, %v1747_v18  ;;  %v1657_v9 = vadd.f32 %v1656_v13, %v1655_v36  ;;  %v1670_v29 = vrot.slane %v1669_v61, 1  ;;  %v1679_v12 = vmul.f32 %v5180_v7, %v1629_v37 }
 0x3c7   : > { %v1779_v8 = vrot.slane %v1778_v6, 2  ;;  %v1676_v38 = vadd.f32 %v1675_v40, %v1674_v45  ;;  %v1712_v16 = vadd.f32 %v1696_v17, %v5692_v35  ;;  %v1740_v30 = vadd.f32 %v1739_v15, %v1738_v47 }
 0x3c8   : > { %v1773_v48 = vadd.f32 %v1772_v3, %v1771_v57  ;;  %v1664_v59 = vadd.f32 %v1663_v31, %v1662_v21  ;;  %v1697_v5 = vrot.slane %v1681_v33, 3  ;;  %v1767_v10 = vrot.slane %v1766_v24, 1  ;;  %v6042_v3 = vld [vmem:[#allocation21_spill] sm:$0xff] }
 0x3c9   : > { %v1792_v32 = vmul.f32 %v5183_v63, %v1754_v28  ;;  %v1682_v1 = vmul.f32 %v5188_v22, %v1650_v34  ;;  %v1761_v39 = vadd.f32 %v1760_v53, %v1759_v4  ;;  %v1786_v46 = vrot.slane %v1785_v23, 2 }
 0x3ca   : > { %v1807_v26 = vrot.slane %v1791_v62, 4  ;;  %v1671_v36 = vadd.f32 %v1670_v29, %v1669_v61  ;;  %v1695_v58 = vrot.slane %v1679_v12, 3  ;;  %v1713_v37 = vadd.f32 %v1697_v5, %v5711_v54 }
 0x3cb   : > { %v1780_v50 = vadd.f32 %v1779_v8, %v1778_v6  ;;  %v1677_v40 = vrot.slane %v1676_v38, 1  ;;  %v1774_v45 = vrot.slane %v1773_v48, 1  ;;  %v1790_v35 = vmul.f32 %v5180_v7, %v1740_v30 }
 0x3cc   : > { %v1823_v47 = vadd.f32 %v1807_v26, %v1712_v16  ;;  %v1683_v21 = vmul.f32 %v5197_v0, %v1657_v9  ;;  %v1684_v57 = vmul.f32 %v5207_v43, %v1664_v59  ;;  %v1768_v63 = vadd.f32 %v1767_v10, %v1766_v24 }
 0x3cd   : > { %v1808_v20 = vrot.slane %v1792_v32, 4  ;;  %v1698_v14 = vrot.slane %v1682_v1, 3  ;;  %v1711_v18 = vadd.f32 %v1695_v58, %v5684_v52  ;;  %v1787_v4 = vadd.f32 %v1786_v46, %v1785_v23 }
 0x3ce   : > { %v1793_v27 = vmul.f32 %v5188_v22, %v1761_v39  ;;  %v1685_v54 = vmul.f32 %v5210_v42, %v1671_v36  ;;  %v1781_v49 = vrot.slane %v1780_v50, 1  ;;  %v1775_v6 = vadd.f32 %v1774_v45, %v1773_v48 }
 0x3cf   : > { %v4210_v41 = vpop.eup %4209  ;;  %v1824_v13 = vadd.f32 %v1808_v20, %v1713_v37  ;;  %v1714_v61 = vadd.f32 %v1698_v14, %v5714_v55  ;;  %v1806_v15 = vrot.slane %v1790_v35, 4  ;;  %v6043_v34 = vrot.slane %v6042_v3, 2  ;;  %v6056_v14 = vld [vmem:[#allocation26_spill] sm:$0xff] }
 0x3d0   : > { %v3670_v31 = vmul.f32 0.6931472, %v4210_v41  ;;  %v1678_v28 = vadd.f32 %v1677_v40, %v1676_v38  ;;  %v1699_v24 = vrot.slane %v1683_v21, 3  ;;  %v1794_v17 = vmul.f32 %v5197_v0, %v1768_v63  ;;  %v6052_v21 = vld [vmem:[#allocation6_spill] sm:$0xff]  ;;  %v6055_v41 = vld [vmem:[#allocation7_spill] sm:$0xff] }
 0x3d1   : > { %v1831_v33 = vmul.f32 %v1823_v47, %v6043_v34  ;;  %v1700_v53 = vrot.slane %v1684_v57, 3  ;;  %v1788_v22 = vrot.slane %v1787_v4, 1  ;;  %v1809_v23 = vrot.slane %v1793_v27, 4  ;;  %v6053_v57 = vld [vmem:[#allocation28_spill] sm:$0xff] }
 0x3d2   : > { %v3671_v52 = vadd.f32 %v3670_v31, %v5695_v60  ;;  %v1822_v62 = vadd.f32 %v1806_v15, %v1711_v18  ;;  %v1715_v9 = vadd.f32 %v1699_v24, %v5725_v2  ;;  %v1782_v29 = vadd.f32 %v1781_v49, %v1780_v50  ;;  %v6046_v60 = vld [vmem:[#allocation18_spill] sm:$0xff]  ;;  %v6059_v31 = vld [vmem:[#allocation34_spill] sm:$0xff] }
 0x3d3   : > { %v6044_v55 = vrot.slane %v6042_v3, 3  ;;  %v1795_v38 = vmul.f32 %v5207_v43, %v1775_v6  ;;  %v1825_v0 = vadd.f32 %v1809_v23, %v1714_v61  ;;  %v1846_v30 = vrot.slane %v1831_v33, 7 }
 0x3d4   : > { %v3679_v16 = vsel %vm5076_vm2, %v3671_v52, %v5620_v51  ;;  %v6047_v59 = vrot.slane %v5689_v56, 2  ;;  %v1686_v2 = vmul.f32 %v5223_v44, %v1678_v28  ;;  %v1701_v10 = vrot.slane %v1685_v54, 3  ;;  %v6049_v56 = vld [vmem:[#allocation9_spill] sm:$0xff]  ;;  %v6061_v52 = vld [vmem:[#allocation30_spill] sm:$0xff] }
 0x3d5   : > { %v1832_v12 = vmul.f32 %v1824_v13, %v6044_v55  ;;  %v3785_v48 = vadd.f32 %v3679_v16, %v6046_v60  ;;  %v1810_v32 = vrot.slane %v1794_v17, 4  ;;  %v1716_v1 = vadd.f32 %v1700_v53, %v5731_v11  ;;  %v6058_v13 = vld [vmem:[#allocation33_spill] sm:$0xff] }
 0x3d6   : > { %v1606_v5 = vadd.f32 %v6047_v59, %v5626_v25  ;;  %v1789_v39 = vadd.f32 %v1788_v22, %v1787_v4  ;;  %v6048_v51 = vrot.slane %v6042_v3, 1  ;;  %v1796_v26 = vmul.f32 %v5210_v42, %v1782_v29  ;;  %v6062_v22 = vld [vmem:[#allocation32_spill] sm:$0xff] }
 0x3d7   : > { %v3786_v43 = vsel %vm997_vm6, %v3785_v48, -inf  ;;  %v1826_v36 = vadd.f32 %v1810_v32, %v1715_v9  ;;  %v1848_v58 = vrot.slane %v1832_v12, 6  ;;  %v6050_v25 = vrot.slane %v6049_v56, 2  ;;  %v6064_v12 = vld [vmem:[#allocation24_spill] sm:$0xff] }
 0x3d8   : > { %v1830_v46 = vmul.f32 %v1822_v62, %v6048_v51  ;;  %v3787_v37 = vrot.slane %v3786_v43, 4  ;;  %v1811_v40 = vrot.slane %v1795_v38, 4  ;;  %v6051_v45 = vrot.slane %v6042_v3, 4  ;;  %v6063_v62 = vld [vmem:[#allocation27_spill] sm:$0xff] }
 0x3d9   : > { %v1607_v50 = vadd.f32 %v6050_v25, %v5632_v19  ;;  %v1717_v47 = vadd.f32 %v1701_v10, %v1606_v5  ;;  %v6054_v63 = vrot.slane %v6053_v57, %v6052_v21  ;;  %v6057_v18 = vcombine.high %v6056_v14, %v6056_v14  ;;  %v6067_v5 = vld [vmem:[#allocation29_spill] sm:$0xff] }
 0x3da   : > { %v1833_v35 = vmul.f32 %v1825_v0, %v6051_v45  ;;  %v1847_v11 = vsel %vm918_vm5, %v1846_v30, %v1830_v46  ;;  %v3788_v27 = vmax.f32 %v3786_v43, %v3787_v37  ;;  %v1702_v54 = vrot.slane %v1686_v2, 3  ;;  %v6071_v25 = vld [vmem:[#allocation20_spill] sm:$0xff] }
 0x3db   : > { %v1949_v20 = vrot.slane %v6054_v63, %v6052_v21  ;;  %v1981_v4 = vrot.slane %v6057_v18, %v6055_v41  ;;  %v1797_v19 = vmul.f32 %v5223_v44, %v1789_v39  ;;  %v1827_v49 = vadd.f32 %v1811_v40, %v1716_v1 }
 0x3dc   : > { %v2012_v61 = vadd.f32 %v6059_v31, %v6058_v13  ;;  %v1812_v6 = vrot.slane %v1796_v26, 4  ;;  %v6060_v15 = vrot.slane %v6042_v3, 5  ;;  %v1849_v33 = vsel %vm1256_vm10, %v1848_v58, %v1847_v11 }
 0x3dd   : > { %v3789_v28 = vrot.slane %v3788_v27, 2  ;;  %v1718_v24 = vadd.f32 %v1702_v54, %v1607_v50  ;;  %v1850_v17 = vrot.slane %v1833_v35, 5  ;;  %v2001_v53 = vmul.f32 %v5210_v42, %v6061_v52  ;;  %v6068_v42 = vld [vmem:[#allocation25_spill] sm:$0xff] }
 0x3de   : > { %v1834_v34 = vmul.f32 %v1826_v36, %v6060_v15  ;;  %v2013_v23 = vsel %vm997_vm6, %v6062_v22, 0.0  ;;  %v1270_v9 = vrot.slane %v6063_v62, 1  ;;  %vm1271_vm5 = vcmask 1047559  }
 0x3df   : > { %v1828_v29 = vadd.f32 %v1812_v6, %v1717_v47  ;;  %v3790_v55 = vmax.f32 %v3788_v27, %v3789_v28  ;;  %v6065_v8 = vrot.slane %v6064_v12, 1  ;;  %v1813_v38 = vrot.slane %v1797_v19, 4  ;;  %v6075_v27 = vld [vmem:[#allocation8_spill] sm:$0xff] }
 0x3e0   : > { %v6066_v0 = vrot.slane %v6042_v3, 6  ;;  %v1851_v59 = vsel %vm1259_vm11, %v1850_v17, %v1849_v33  ;;  %v6069_v2 = vrot.slane %v6068_v42, 2  ;;  %v1852_v32 = vrot.slane %v1834_v34, 4 }
 0x3e1   : > { %v1215_v16 = vadd.f32 %v6065_v8, %v6064_v12  ;;  %v2014_v1 = vadd.f32 %v2013_v23, %v2012_v61  ;;  %v3791_v39 = vrot.slane %v3790_v55, 1  ;;  %v1829_v51 = vadd.f32 %v1813_v38, %v1718_v24 }
 0x3e2   : > { %v1835_v30 = vmul.f32 %v1827_v49, %v6066_v0  ;;  %v1269_v10 = vsel %vm1268_vm8, %v6069_v2, %v6067_v5  ;;  %v1985_v46 = vrot.slane %v1949_v20, %v6055_v41  ;;  %v2002_v43 = vmul.f32 %v5223_v44, %v1981_v4 }
 0x3e3   : > { %v2015_v26 = vsel %vm997_vm6, %v2001_v53, 0.0  ;;  %v6070_v36 = vrot.slane %v6042_v3, 7  ;;  %v1853_v37 = vsel %vm1262_vm12, %v1852_v32, %v1851_v59  ;;  %v5830_v56 = vmax.f32 %v3790_v55, %v3791_v39  ;;  %v6074_v3 = vld [vmem:[#allocation22_spill] sm:$0xff] }
 0x3e4   : > { %v6072_v50 = vcvt.s32.f32 %v6071_v25  ;;  %v1854_v45 = vrot.slane %v1835_v30, 3  ;;  %v1272_v35 = vsel %vm1271_vm5, %v1270_v9, %v1269_v10  ;;  %v2016_v11 = vadd.f32 %v2015_v26, %v2014_v1 }
 0x3e5   : > { %v1836_v58 = vmul.f32 %v1828_v29, %v6070_v36  ;;  %v3793_v47 = vsub.f32 %v3785_v48, %v5830_v56  ;;  %v2003_v63 = vmul.f32 %v6074_v3, %v1985_v46  ;;  %v2017_v20 = vsel %vm997_vm6, %v2002_v43, 0.0 }
 0x3e6   : > { %v1242_v40 = vmul.f32 %v1215_v16, %v6072_v50  ;;  %v6073_v44 = vmov %v6072_v50  ;;  %v1855_v57 = vsel %vm1265_vm13, %v1854_v45, %v1853_v37  ;;  %v1276_v18 = vsel %vm1275_vm1, %v1272_v35, 0.0 }
 0x3e7   : > { %v1837_v21 = vmul.f32 %v1829_v51, %v6073_v44  ;;  %v1856_v41 = vrot.slane %v1836_v58, 2  ;;  %v3794_v14 = vmul.f32 1.442695, %v3793_v47  ;;  %v1291_v54 = vmul.f32 %v5180_v7, %v6075_v27 }
 0x3e8   : > { %v1278_v4 = vsel %vm1277_vm7, %v1242_v40, 0.0  ;;  %v2018_v19 = vadd.f32 %v2017_v20, %v2016_v11  ;;  %v2019_v13 = vsel %vm997_vm6, %v2003_v63, 0.0  ;;  %vm3819_vm4 = vcmask 0  }
 0x3e9   : > { %v1857_v48 = vsel %vm1268_vm8, %v1856_v41, %v1855_v57  ;;  %4211 = vpow2.f32 %v3794_v14  ;;  %v1858_v49 = vrot.slane %v1837_v21, 1  ;;  %v1279_v31 = vadd.f32 %v1278_v4, %v1276_v18 }
 0x3ea   : > { %v1292_v6 = vsel %vm997_vm6, %v1291_v54, 0.0  ;;  %v2020_v15 = vadd.f32 %v2019_v13, %v2018_v19 }
 0x3eb   : > { %v1859_v61 = vsel %vm1271_vm5, %v1858_v49, %v1857_v48  ;;  %v1280_v33 = vrot.slane %v1279_v31, 4  ;;  %v1293_v28 = vrot.slane %v1292_v6, 4 }
 0x3ec   : > { %v1861_v34 = vsel %vm1275_vm1, %v1859_v61, 0.0  ;;  %v2026_v24 = vmul.f32 %v6046_v60, %v2020_v15 }
 0x3ed   : > { %v1862_v7 = vrot.slane %v1861_v34, 4  ;;  %v1281_v52 = vadd.f32 %v1280_v33, %v1279_v31  ;;  %v1294_v53 = vadd.f32 %v1293_v28, %v1292_v6 }
 0x3ee   : > { %v2027_v23 = vsel %vm997_vm6, %v2026_v24, 0.0 }
 0x3ef   : > { %v1863_v9 = vadd.f32 %v1862_v7, %v1861_v34  ;;  %v1282_v55 = vrot.slane %v1281_v52, 2  ;;  %v1295_v12 = vrot.slane %v1294_v53, 2  ;;  %v2028_v8 = vrot.slane %v2027_v23, 4 }
 0x3f1   : > { %v1864_v38 = vrot.slane %v1863_v9, 2  ;;  %v1283_v30 = vadd.f32 %v1282_v55, %v1281_v52  ;;  %v1296_v59 = vadd.f32 %v1295_v12, %v1294_v53  ;;  %v2029_v60 = vadd.f32 %v2028_v8, %v2027_v23 }
 0x3f3   : > { %v4212_v17 = vpop.eup %4211  ;;  %v1865_v42 = vadd.f32 %v1864_v38, %v1863_v9  ;;  %v1284_v10 = vrot.slane %v1283_v30, 1  ;;  %v1297_v32 = vrot.slane %v1296_v59, 1  ;;  %v2030_v1 = vrot.slane %v2029_v60, 2 }
 0x3f4   : > { %v3796_v22 = vsel %vm997_vm6, %v4212_v17, 0.0 }
 0x3f5   : > { %v3797_v62 = vrot.slane %v3796_v22, 4  ;;  %v1866_v39 = vrot.slane %v1865_v42, 1  ;;  %v1285_v51 = vadd.f32 %v1284_v10, %v1283_v30  ;;  %v1298_v46 = vadd.f32 %v1297_v32, %v1296_v59 }
 0x3f6   : > { %v2031_v43 = vadd.f32 %v2030_v1, %v2029_v60 }
 0x3f7   : > { %v3798_v29 = vadd.f32 %v3797_v62, %v3796_v22  ;;  %v1867_v26 = vadd.f32 %v1866_v39, %v1865_v42  ;;  %v2034_v58 = vadd.f32 %v1298_v46, %v1285_v51 }
 0x3f8   : > { %v2032_v36 = vrot.slane %v2031_v43, 1 }
 0x3f9   : > { %v3799_v16 = vrot.slane %v3798_v29, 2  ;;  %v2035_v37 = vadd.f32 %v2034_v58, %v1867_v26 }
 0x3fa   : > { %v2033_v50 = vadd.f32 %v2032_v36, %v2031_v43 }
 0x3fb   : > { %v3800_v0 = vadd.f32 %v3799_v16, %v3798_v29 }
 0x3fc   : > { %v2036_v45 = vadd.f32 %v2035_v37, %v2033_v50 }
 0x3fd   : > { %v3801_v5 = vrot.slane %v3800_v0, 1 }
 0x3ff   : > { %v3802_v2 = vadd.f32 %v3801_v5, %v3800_v0 }
 0x401   : > { %4213 = vlog2.f32 %v3802_v2 }
 0x40b   : > { %v4214_v25 = vpop.eup %4213 }
 0x40c   : > { %v3804_v40 = vmul.f32 0.6931472, %v4214_v25 }
 0x40e   : > { %v3805_v35 = vadd.f32 %v3804_v40, %v5830_v56  ;;  %v6076_v56 = vld [vmem:[#allocation19_spill] sm:$0xff] }
 0x40f   : > { %v4239_v18 = vmov %v6076_v56  }
 0x410   : > { %v3806_v11 = vsub.f32 %v2036_v45, %v3805_v35 }
 0x412   : > { %v3807_v47 = vsel %vm1277_vm7, %v3806_v11, 0.0 }
 0x413   : > { %3808 = vadd.xlane.f32.xlu1 %v3807_v47 }
 0x4a0   : > { %v3809_v44 = vpop.xlane.xlu1 %3808 }
 0x4a1   : > { %v3810_v21 = vrot.slane %v3809_v44, 4 }
 0x4a3   : > { %v3811_v57 = vadd.f32 %v3810_v21, %v3809_v44 }
 0x4a5   : > { %v3812_v3 = vrot.slane %v3811_v57, 2 }
 0x4a7   : > { %v3813_v63 = vadd.f32 %v3812_v3, %v3811_v57 }
 0x4a9   : > { %v3814_v20 = vrot.slane %v3813_v63, 1 }
 0x4ab   : > { %v3815_v41 = vadd.f32 %v3814_v20, %v3813_v63 }
 0x4ad   : > { %4071 = vpush %v3815_v41 }
 0x4de   : > { %s4072_s23 = spop %4071 }
 0x4df   : > { %s3817_s26 = ssub.f32 0.0, %s4072_s23 }
 0x4e1   : > { %v3818_v14 = vstv %s3817_s26 }
 0x4e2   : > { %3820 = vst.msk [vmem:[%s381_s20] sm:$0x1] %vm3819_vm4, %v3818_v14 }
 0x4e3 LB: >> { %s3848_s16 = ssub.s32 8, %s4245_s15  ;;  %v6077_v27 = vld [vmem:[#allocation23_spill] sm:$0xff]  ;;  %v6080_v48 = vld [vmem:[#allocation19_spill] sm:$0xff]  ;;  %v6081_v31 = vld [vmem:[#allocation5_spill] sm:$0xff]  ;;  %s3846_s15 = sadd.s32 1, %s4245_s15   ;;  %s4245_s15 = sphi %s5861_s15, %s3846_s15   ;;  %v4241_v18 = vphi %v4239_v18, %v3873_v18  }
 0x4e4   : >> { %v3849_v4 = vstv %s3848_s16  ;;  %s3854_s10 = scalar_lea.vmem %s386_s29, %s3848_s16  ;;  %s4045_s20 = sshll.u32 %s3848_s16, 3 }
 0x4e5   : >> { %vm3850_vm2 = vcmp.eq.s32.totalorder %v3849_v4, %v6077_v27  ;;  %vm5874_vm1 = vcmp.le.s32.totalorder %v3849_v4, %v6077_v27  ;;  %p3868_p6 = scmp.ge.s32.totalorder %s3848_s16, 1  ;;  %s3857_s21 = scalar_lea.vmem [#allocation4], %s4045_s20 }
 0x4e6   : >> { %v3851_v19 = vsel %vm3850_vm2, %v6080_v48, %v4241_v18  ;;  %v3858_v49 = vld [vmem:[%s3857_s21] sm:$0x1f]  ;;  %p3843_p7 = scmp.ge.s32.totalorder %s3846_s15, 9  }
 0x4e7   : >> { %v3853_v13 = vsel %vm5874_vm1, %v3851_v19, 0  ;;  %vm3859_vm15 = vcmp.eq.s32.totalorder %v6081_v31, %v3851_v19  ;;  %s3869_s22 = scalar_select %p3868_p6, 1, 0 }
 0x4e8   : >> { %3855 = vst.msk [vmem:[%s3854_s10] sm:$0x1] %vm1277_vm7, %v3853_v13  ;;  %v3860_v61 = vsel %vm3859_vm15, %v3858_v49, 0 }
 0x4e9   : >> { %v3861_v6 = vsel %vm997_vm6, %v3860_v61, 0  ;;  %v3870_v33 = vstv %s3869_s22 }
 0x4ea   : >> { %v3862_v15 = vrot.slane %v3861_v6, 4  ;;  %vm3871_vm14 = vcmp.eq.s32.totalorder %v3870_v33, 1 }
 0x4eb   : >> { %vm3872_vm9 = vmand %vm3871_vm14, %vm5874_vm1 }
 0x4ec   : >> { %v3863_v34 = vadd.s32 %v3862_v15, %v3861_v6 }
 0x4ee   : >> { %v3864_v28 = vrot.slane %v3863_v34, 2 }
 0x4f0   : >> { %v3865_v24 = vadd.s32 %v3864_v28, %v3863_v34  ;;  %3845 = sbr.rel (!%p3843_p7) target bundleno = 1251 (0x4e3), region = 145 }
 0x4f2   : >> { %v3866_v7 = vrot.slane %v3865_v24, 1 }
 0x4f4   : >> { %v3867_v17 = vadd.s32 %v3866_v7, %v3865_v24 }
 0x4f6   : >> { %v3873_v18 = vsel %vm3872_vm9, %v3867_v17, %v3851_v19  }
 0x4f7 PF: > { %s20_s30 = sadd.s32 1, %s4233_s30  }
 0x4f8   : > { %p17_p8 = scmp.ge.s32.totalorder %s20_s30, 4  }
 0x4fa   :  { %19 = sbr.rel (!%p17_p8) target bundleno = 1 (0x1), region = 156 }

</bundles_post_ra>
